<compile_context>
chip_gen: v7x
topology: tpu7x:2x2x1
jax: 0.10.0
libtpu: 0.0.40
codegen_flags: <defaults>
</compile_context>

<pallas_src>
import jax
import jax.numpy as jnp
from jax.experimental import pallas as pl
from jax.experimental.pallas import tpu as pltpu


# ---------------------------------------------------------------------------
# Kernel A: conv1 = im2col-matmul + bias + ReLU + fused 2x2 maxpool
# ---------------------------------------------------------------------------

def _mm_bias_relu_pool_kernel(p_ref, w_ref, b_ref, o_ref):
    # p_ref: (tm, K) bf16 patches covering `tr` full rows of ONE image
    # w_ref: (K, C) bf16 ; b_ref: (1, C) f32 ; o_ref: (1, tr//2, W//2, C)
    _, tp, wo, c = o_ref.shape
    y = jnp.dot(p_ref[...], w_ref[...], preferred_element_type=jnp.float32)
    y = jnp.maximum(y + b_ref[...], 0.0)          # (tm, C) f32
    y = y.reshape(tp, 2, wo, 2, c)                # rows are (h, w)-major
    y = jnp.maximum(y[:, 0], y[:, 1])             # pool row pairs
    y = jnp.maximum(y[:, :, 0], y[:, :, 1])       # pool column pairs
    o_ref[0] = y.astype(o_ref.dtype)


def conv_im2col_relu_pool(patches, w, b, *, B, H, W, row_cap=2048):
    """patches: (B*H*W, K) bf16 (NHWC im2col order). Returns (B, H//2, W//2, C)."""
    K = patches.shape[1]
    C = w.shape[1]
    # image rows per grid step: even, divides H, ~row_cap total M rows
    tr = min(H, max(2, (row_cap // W) & ~1))
    while H % tr:
        tr -= 2
    tm, bands = tr * W, H // tr
    return pl.pallas_call(
        _mm_bias_relu_pool_kernel,
        out_shape=jax.ShapeDtypeStruct((B, H // 2, W // 2, C), jnp.bfloat16),
        grid=(B, bands),
        in_specs=[
            pl.BlockSpec((tm, K), lambda i, r: (i * bands + r, 0)),
            pl.BlockSpec((K, C), lambda i, r: (0, 0)),      # weights resident
            pl.BlockSpec((1, C), lambda i, r: (0, 0)),
        ],
        out_specs=pl.BlockSpec((1, tr // 2, W // 2, C), lambda i, r: (i, r, 0, 0)),
        compiler_params=pltpu.CompilerParams(
            dimension_semantics=("parallel", "parallel")),
    )(patches, w, b)


# ---------------------------------------------------------------------------
# Kernel B: conv2 = in-kernel 3x3 patch extraction + bias + ReLU + 2x2 maxpool
# ---------------------------------------------------------------------------

def _conv3x3_bias_relu_pool_kernel(x_ref, w_ref, b_ref, o_ref):
    # x_ref: (1, Hi+2, Wi+2, Cin) spatially zero-padded NHWC image (bf16)
    # w_ref: (9, Cin, Cout) bf16, tap order t = 3*dy + dx ; b_ref: (1, Cout) f32
    # o_ref: (1, Hi//2, Wi//2, Cout)
    _, tp, wo, cout = o_ref.shape
    hi, wi = 2 * tp, 2 * wo
    cin = x_ref.shape[3]
    acc = jnp.zeros((hi * wi, cout), jnp.float32)
    for t in range(9):                              # static unroll: 9 MXU taps
        dy, dx = divmod(t, 3)
        xs = x_ref[0, dy:dy + hi, dx:dx + wi, :]    # shifted (hi, wi, cin) window
        acc = acc + jnp.dot(xs.reshape(hi * wi, cin), w_ref[t],
                            preferred_element_type=jnp.float32)
    y = jnp.maximum(acc + b_ref[...], 0.0)          # bias + ReLU (f32)
    y = y.reshape(tp, 2, wo, 2, cout)
    y = jnp.maximum(y[:, 0], y[:, 1])               # pool row pairs
    y = jnp.maximum(y[:, :, 0], y[:, :, 1])         # pool column pairs
    o_ref[0] = y.astype(o_ref.dtype)


def conv3x3_relu_pool(x, w, b):
    """x: (B, H, W, Cin) bf16 ; w: (9, Cin, Cout) bf16 ; b: (1, Cout) f32."""
    B, H, W, Cin = x.shape
    Cout = w.shape[2]
    xp = jnp.pad(x, ((0, 0), (1, 1), (1, 1), (0, 0)))   # glue: spatial zero pad
    return pl.pallas_call(
        _conv3x3_bias_relu_pool_kernel,
        out_shape=jax.ShapeDtypeStruct((B, H // 2, W // 2, Cout), jnp.bfloat16),
        grid=(B,),
        in_specs=[
            pl.BlockSpec((1, H + 2, W + 2, Cin), lambda i: (i, 0, 0, 0)),
            pl.BlockSpec((9, Cin, Cout), lambda i: (0, 0, 0)),
            pl.BlockSpec((1, Cout), lambda i: (0, 0)),
        ],
        out_specs=pl.BlockSpec((1, H // 2, W // 2, Cout), lambda i: (i, 0, 0, 0)),
        compiler_params=pltpu.CompilerParams(
            dimension_semantics=("parallel",)),
    )(xp, w, b)


# ---------------------------------------------------------------------------
# Kernel C: head = |e1-e2| -> fc1 (K-tiled, f32 acc) -> ReLU -> fc2 -> sigmoid
# ---------------------------------------------------------------------------

def _head_kernel(e_ref, w1_ref, b1_ref, w2_ref, b2_ref, o_ref, acc_ref):
    k = pl.program_id(0)

    @pl.when(k == 0)
    def _():
        acc_ref[...] = jnp.zeros_like(acc_ref)

    d = jnp.abs(e_ref[0] - e_ref[1])                        # (B, tk) per K-chunk
    acc_ref[...] += jnp.dot(d, w1_ref[...], preferred_element_type=jnp.float32)

    @pl.when(k == pl.num_programs(0) - 1)
    def _():
        h = jnp.maximum(acc_ref[...] + b1_ref[...], 0.0)    # (B, 256) f32
        # fc2 as VPU row-broadcast multiply + lane reduction, EUP sigmoid
        z = jnp.sum(h * w2_ref[...], axis=-1, keepdims=True) + b2_ref[...]
        o_ref[...] = jax.nn.sigmoid(z)


def siamese_head(e, w1, b1, w2, b2, *, k_budget_bytes=24 << 20, k_cap=16384):
    """e: (2, B, Din) bf16. Returns sigmoid(fc2(relu(fc1(|e[0]-e[1]|)))) (B, 1)."""
    _, B, Din = e.shape
    Dh = w1.shape[1]                                        # 256
    # Largest K tile (multiple of 128, dividing Din) whose double-buffered
    # streams (w1 tile + e tile, bf16) stay within a VMEM byte budget -- sized
    # so it also fits v7x's 64 MiB VMEM while keeping few, large grid steps.
    per_k = 2 * (Dh * 2 + 2 * B * 2)                        # bytes per unit tk
    tk = min(k_cap, Din, max(128, (k_budget_bytes // per_k) // 128 * 128))
    while Din % tk:
        tk -= 128
    return pl.pallas_call(
        _head_kernel,
        out_shape=jax.ShapeDtypeStruct((B, 1), jnp.float32),
        grid=(Din // tk,),
        in_specs=[
            pl.BlockSpec((2, B, tk), lambda k: (0, 0, k)),
            pl.BlockSpec((tk, Dh), lambda k: (k, 0)),
            pl.BlockSpec((1, Dh), lambda k: (0, 0)),
            pl.BlockSpec((1, Dh), lambda k: (0, 0)),
            pl.BlockSpec((1, 1), lambda k: (0, 0)),
        ],
        out_specs=pl.BlockSpec((B, 1), lambda k: (0, 0)),
        scratch_shapes=[pltpu.VMEM((B, Dh), jnp.float32)],
        compiler_params=pltpu.CompilerParams(
            dimension_semantics=("arbitrary",),
            vmem_limit_bytes=48 * 1024 * 1024),
    )(e, w1, b1, w2, b2)


# ---------------------------------------------------------------------------
# Glue (patch extraction for conv1 / wrappers / parameter setup)
# ---------------------------------------------------------------------------

def im2col_3x3(x):
    """x: (B, H, W, C) bf16 -> patches (B*H*W, 9*C), padding=1 (same)."""
    B, H, W, C = x.shape
    xp = jnp.pad(x, ((0, 0), (1, 1), (1, 1), (0, 0)))
    cols = [xp[:, dy:dy + H, dx:dx + W, :] for dy in range(3) for dx in range(3)]
    return jnp.concatenate(cols, axis=-1).reshape(B * H * W, 9 * C)


def siamese_forward(params, x1_nchw, x2_nchw):
    B = x1_nchw.shape[0]
    # Single feature pass over both branches (concat on batch).
    x = jnp.concatenate([x1_nchw, x2_nchw], axis=0)
    x = jnp.transpose(x, (0, 2, 3, 1)).astype(jnp.bfloat16)     # NCHW -> NHWC
    B2, H, W, _ = x.shape

    # conv1 + ReLU + pool (fused epilogue); host im2col since Cin=3 is lane-hostile.
    p1 = im2col_3x3(x)                                          # (2B*H*W, 27)
    f1 = conv_im2col_relu_pool(p1, params["w_conv1"], params["b_conv1"],
                               B=B2, H=H, W=W)                  # (2B, H/2, W/2, 64)

    # conv2 + ReLU + pool, in-kernel 3x3 patch extraction (no im2col, Cin=64).
    f2 = conv3x3_relu_pool(f1, params["w_conv2"], params["b_conv2"])
    # (2B, H/4, W/4, 128)

    e = f2.reshape(2, B, -1)            # NHWC flatten; w_fc1 rows match this order
    return siamese_head(e, params["w_fc1"], params["b_fc1"],
                        params["w_fc2"], params["b_fc2"])


def init_params(key, H, W):
    # Synthetic parameters with the PyTorch module's shapes, stored in the
    # layout the kernels use:
    #  * conv weights are HWIO bf16, flattened to (9*Cin, Cout) / (9, Cin, Cout)
    #    matching the kernels' tap order (dy, dx, ci); NO zero-channel padding.
    #  * fc1 rows are in NHWC-flatten order (a fixed permutation of torch's
    #    NCHW flatten); fc2 weight is stored as a (1, 256) row.
    k = jax.random.split(key, 6)
    d_fc1 = 128 * (H // 4) * (W // 4)     # = 128*32*32 at the module's 128x128 input
    w_c1 = jax.random.normal(k[0], (3, 3, 3, 64), jnp.float32) * 0.05
    w_c2 = jax.random.normal(k[2], (3, 3, 64, 128), jnp.float32) * 0.02
    return {
        "w_conv1": w_c1.reshape(27, 64).astype(jnp.bfloat16),
        "b_conv1": (jax.random.normal(k[1], (64,), jnp.float32) * 0.05).reshape(1, 64),
        "w_conv2": w_c2.reshape(9, 64, 128).astype(jnp.bfloat16),
        "b_conv2": (jax.random.normal(k[3], (128,), jnp.float32) * 0.02).reshape(1, 128),
        "w_fc1": (jax.random.normal(k[4], (d_fc1, 256), jnp.float32) * 0.01
                  ).astype(jnp.bfloat16),
        "b_fc1": jnp.zeros((1, 256), jnp.float32),
        "w_fc2": jax.random.normal(k[5], (1, 256), jnp.float32) * 0.05,
        "b_fc2": jnp.zeros((1, 1), jnp.float32),
    }


if __name__ == "__main__":
    B, C, H, W = 2, 3, 16, 16          # small shapes; module implies 3-channel input
    key = jax.random.PRNGKey(0)
    k1, k2, kp = jax.random.split(key, 3)
    x1 = jax.random.normal(k1, (B, C, H, W), jnp.float32)
    x2 = jax.random.normal(k2, (B, C, H, W), jnp.float32)
    params = init_params(kp, H, W)

    out = jax.jit(siamese_forward)(params, x1, x2)
    out = jax.block_until_ready(out)
    assert out.shape == (B, 1)
    assert bool(jnp.all(jnp.isfinite(out)))
    print("KERNEL_OK")
</pallas_src>

<mosaic_0001>
module attributes {stable_mosaic.version = 11 : i64} {
  func.func @_mm_bias_relu_pool_kernel(%arg0: i32, %arg1: i32, %arg2: memref<256x27xbf16, #tpu.memory_space<vmem>>, %arg3: memref<27x64xbf16, #tpu.memory_space<vmem>>, %arg4: memref<1x64xf32, #tpu.memory_space<vmem>>, %arg5: memref<1x8x8x64xbf16, #tpu.memory_space<vmem>>) attributes {dimension_semantics = [#tpu.dimension_semantics<parallel>, #tpu.dimension_semantics<parallel>], iteration_bounds = array<i64: 4, 1>, scalar_prefetch = 0 : i64, scratch_operands = 0 : i64, tpu.core_type = #tpu.core_type<tc>, window_params = [{transform_indices = @transform_0, window_bounds = array<i64: 256, 27>}, {pipeline_mode = #tpu.pipeline_mode<synchronous>, transform_indices = @transform_1, window_bounds = array<i64: 27, 64>}, {pipeline_mode = #tpu.pipeline_mode<synchronous>, transform_indices = @transform_2, window_bounds = array<i64: 1, 64>}, {transform_indices = @transform_3, window_bounds = array<i64: 1, 8, 8, 64>}]} {
    %c0 = arith.constant 0 : index
    %c0_0 = arith.constant 0 : index
    %0 = vector.load %arg2[%c0, %c0_0] : memref<256x27xbf16, #tpu.memory_space<vmem>>, vector<256x27xbf16>
    %c0_1 = arith.constant 0 : index
    %c0_2 = arith.constant 0 : index
    %1 = vector.load %arg3[%c0_1, %c0_2] : memref<27x64xbf16, #tpu.memory_space<vmem>>, vector<27x64xbf16>
    %cst = arith.constant dense<0.000000e+00> : vector<256x64xf32>
    %2 = tpu.matmul %0, %1, %cst {dimension_numbers = #tpu.dot_dimension_numbers<[1], [0], [0], [1], [0, 0, 1, 1], [], []>} : vector<256x27xbf16>, vector<27x64xbf16>, vector<256x64xf32> -> vector<256x64xf32>
    %c0_3 = arith.constant 0 : index
    %c0_4 = arith.constant 0 : index
    %3 = vector.load %arg4[%c0_3, %c0_4] : memref<1x64xf32, #tpu.memory_space<vmem>>, vector<1x64xf32>
    %4 = vector.broadcast %3 : vector<1x64xf32> to vector<256x64xf32>
    %5 = arith.addf %2, %4 : vector<256x64xf32>
    %cst_5 = arith.constant 0.000000e+00 : f32
    %6 = vector.broadcast %cst_5 : f32 to vector<256x64xf32>
    %7 = arith.maximumf %5, %6 : vector<256x64xf32>
    %8 = vector.shape_cast %7 : vector<256x64xf32> to vector<8x2x8x2x64xf32>
    %9 = vector.extract_strided_slice %8 {offsets = [0, 0, 0, 0, 0], sizes = [8, 1, 8, 2, 64], strides = [1, 1, 1, 1, 1]} : vector<8x2x8x2x64xf32> to vector<8x1x8x2x64xf32>
    %10 = vector.shape_cast %9 : vector<8x1x8x2x64xf32> to vector<8x8x2x64xf32>
    %11 = vector.extract_strided_slice %8 {offsets = [0, 1, 0, 0, 0], sizes = [8, 1, 8, 2, 64], strides = [1, 1, 1, 1, 1]} : vector<8x2x8x2x64xf32> to vector<8x1x8x2x64xf32>
    %12 = vector.shape_cast %11 : vector<8x1x8x2x64xf32> to vector<8x8x2x64xf32>
    %13 = arith.maximumf %10, %12 : vector<8x8x2x64xf32>
    %14 = vector.extract_strided_slice %13 {offsets = [0, 0, 0, 0], sizes = [8, 8, 1, 64], strides = [1, 1, 1, 1]} : vector<8x8x2x64xf32> to vector<8x8x1x64xf32>
    %15 = vector.shape_cast %14 : vector<8x8x1x64xf32> to vector<8x8x64xf32>
    %16 = vector.extract_strided_slice %13 {offsets = [0, 0, 1, 0], sizes = [8, 8, 1, 64], strides = [1, 1, 1, 1]} : vector<8x8x2x64xf32> to vector<8x8x1x64xf32>
    %17 = vector.shape_cast %16 : vector<8x8x1x64xf32> to vector<8x8x64xf32>
    %18 = arith.maximumf %15, %17 : vector<8x8x64xf32>
    %19 = arith.truncf %18 : vector<8x8x64xf32> to vector<8x8x64xbf16>
    %c0_6 = arith.constant 0 : index
    %c0_7 = arith.constant 0 : index
    %c0_8 = arith.constant 0 : index
    %c0_9 = arith.constant 0 : index
    %20 = vector.load %arg5[%c0_6, %c0_7, %c0_8, %c0_9] : memref<1x8x8x64xbf16, #tpu.memory_space<vmem>>, vector<1x8x8x64xbf16>
    %21 = vector.shape_cast %20 : vector<1x8x8x64xbf16> to vector<8x8x64xbf16>
    %22 = vector.shape_cast %19 : vector<8x8x64xbf16> to vector<1x8x8x64xbf16>
    tpu.vector_store %arg5[%c0_6, %c0_7, %c0_8, %c0_9], %22 {strides = array<i32>} : memref<1x8x8x64xbf16, #tpu.memory_space<vmem>>, vector<1x8x8x64xbf16>,
    return
  }
  func.func @transform_0(%arg0: i32, %arg1: i32) -> (i32, i32) {
    %c1_i32 = arith.constant 1 : i32
    %0 = arith.muli %arg0, %c1_i32 : i32
    %1 = arith.addi %0, %arg1 : i32
    %c0_i32 = arith.constant 0 : i32
    %c0_i32_0 = arith.constant 0 : i32
    return %1, %c0_i32 : i32, i32
  }
  func.func @transform_1(%arg0: i32, %arg1: i32) -> (i32, i32) {
    %c0_i32 = arith.constant 0 : i32
    %c0_i32_0 = arith.constant 0 : i32
    %c0_i32_1 = arith.constant 0 : i32
    return %c0_i32, %c0_i32_0 : i32, i32
  }
  func.func @transform_2(%arg0: i32, %arg1: i32) -> (i32, i32) {
    %c0_i32 = arith.constant 0 : i32
    %c0_i32_0 = arith.constant 0 : i32
    %c0_i32_1 = arith.constant 0 : i32
    return %c0_i32, %c0_i32_0 : i32, i32
  }
  func.func @transform_3(%arg0: i32, %arg1: i32) -> (i32, i32, i32, i32) {
    %c0_i32 = arith.constant 0 : i32
    %c0_i32_0 = arith.constant 0 : i32
    %c0_i32_1 = arith.constant 0 : i32
    return %arg0, %arg1, %c0_i32, %c0_i32_0 : i32, i32, i32, i32
  }
}

module attributes {stable_mosaic.version = 11 : i64} {
  func.func @_conv3x3_bias_relu_pool_kernel(%arg0: i32, %arg1: memref<1x10x10x64xbf16, #tpu.memory_space<vmem>>, %arg2: memref<9x64x128xbf16, #tpu.memory_space<vmem>>, %arg3: memref<1x128xf32, #tpu.memory_space<vmem>>, %arg4: memref<1x4x4x128xbf16, #tpu.memory_space<vmem>>) attributes {dimension_semantics = [#tpu.dimension_semantics<parallel>], iteration_bounds = array<i64: 4>, scalar_prefetch = 0 : i64, scratch_operands = 0 : i64, tpu.core_type = #tpu.core_type<tc>, window_params = [{transform_indices = @transform_0, window_bounds = array<i64: 1, 10, 10, 64>}, {pipeline_mode = #tpu.pipeline_mode<synchronous>, transform_indices = @transform_1, window_bounds = array<i64: 9, 64, 128>}, {pipeline_mode = #tpu.pipeline_mode<synchronous>, transform_indices = @transform_2, window_bounds = array<i64: 1, 128>}, {transform_indices = @transform_3, window_bounds = array<i64: 1, 4, 4, 128>}]} {
    %cst = arith.constant 0.000000e+00 : f32
    %0 = vector.broadcast %cst : f32 to vector<64x128xf32>
    %c0 = arith.constant 0 : index
    %c0_0 = arith.constant 0 : index
    %c0_1 = arith.constant 0 : index
    %c0_2 = arith.constant 0 : index
    %1 = vector.load %arg1[%c0, %c0_0, %c0_1, %c0_2] : memref<1x10x10x64xbf16, #tpu.memory_space<vmem>>, vector<1x8x8x64xbf16>
    %2 = vector.shape_cast %1 : vector<1x8x8x64xbf16> to vector<8x8x64xbf16>
    %3 = vector.shape_cast %2 : vector<8x8x64xbf16> to vector<64x64xbf16>
    %c0_3 = arith.constant 0 : index
    %c0_4 = arith.constant 0 : index
    %c0_5 = arith.constant 0 : index
    %4 = vector.load %arg2[%c0_3, %c0_4, %c0_5] : memref<9x64x128xbf16, #tpu.memory_space<vmem>>, vector<1x64x128xbf16>
    %5 = vector.shape_cast %4 : vector<1x64x128xbf16> to vector<64x128xbf16>
    %cst_6 = arith.constant dense<0.000000e+00> : vector<64x128xf32>
    %6 = tpu.matmul %3, %5, %cst_6 {dimension_numbers = #tpu.dot_dimension_numbers<[1], [0], [0], [1], [0, 0, 1, 1], [], []>} : vector<64x64xbf16>, vector<64x128xbf16>, vector<64x128xf32> -> vector<64x128xf32>
    %7 = arith.addf %0, %6 : vector<64x128xf32>
    %c0_7 = arith.constant 0 : index
    %c0_8 = arith.constant 0 : index
    %c1 = arith.constant 1 : index
    %c0_9 = arith.constant 0 : index
    %8 = vector.load %arg1[%c0_7, %c0_8, %c1, %c0_9] : memref<1x10x10x64xbf16, #tpu.memory_space<vmem>>, vector<1x8x8x64xbf16>
    %9 = vector.shape_cast %8 : vector<1x8x8x64xbf16> to vector<8x8x64xbf16>
    %10 = vector.shape_cast %9 : vector<8x8x64xbf16> to vector<64x64xbf16>
    %c1_10 = arith.constant 1 : index
    %c0_11 = arith.constant 0 : index
    %c0_12 = arith.constant 0 : index
    %11 = vector.load %arg2[%c1_10, %c0_11, %c0_12] : memref<9x64x128xbf16, #tpu.memory_space<vmem>>, vector<1x64x128xbf16>
    %12 = vector.shape_cast %11 : vector<1x64x128xbf16> to vector<64x128xbf16>
    %cst_13 = arith.constant dense<0.000000e+00> : vector<64x128xf32>
    %13 = tpu.matmul %10, %12, %cst_13 {dimension_numbers = #tpu.dot_dimension_numbers<[1], [0], [0], [1], [0, 0, 1, 1], [], []>} : vector<64x64xbf16>, vector<64x128xbf16>, vector<64x128xf32> -> vector<64x128xf32>
    %14 = arith.addf %7, %13 : vector<64x128xf32>
    %c0_14 = arith.constant 0 : index
    %c0_15 = arith.constant 0 : index
    %c2 = arith.constant 2 : index
    %c0_16 = arith.constant 0 : index
    %15 = vector.load %arg1[%c0_14, %c0_15, %c2, %c0_16] : memref<1x10x10x64xbf16, #tpu.memory_space<vmem>>, vector<1x8x8x64xbf16>
    %16 = vector.shape_cast %15 : vector<1x8x8x64xbf16> to vector<8x8x64xbf16>
    %17 = vector.shape_cast %16 : vector<8x8x64xbf16> to vector<64x64xbf16>
    %c2_17 = arith.constant 2 : index
    %c0_18 = arith.constant 0 : index
    %c0_19 = arith.constant 0 : index
    %18 = vector.load %arg2[%c2_17, %c0_18, %c0_19] : memref<9x64x128xbf16, #tpu.memory_space<vmem>>, vector<1x64x128xbf16>
    %19 = vector.shape_cast %18 : vector<1x64x128xbf16> to vector<64x128xbf16>
    %cst_20 = arith.constant dense<0.000000e+00> : vector<64x128xf32>
    %20 = tpu.matmul %17, %19, %cst_20 {dimension_numbers = #tpu.dot_dimension_numbers<[1], [0], [0], [1], [0, 0, 1, 1], [], []>} : vector<64x64xbf16>, vector<64x128xbf16>, vector<64x128xf32> -> vector<64x128xf32>
    %21 = arith.addf %14, %20 : vector<64x128xf32>
    %c0_21 = arith.constant 0 : index
    %c1_22 = arith.constant 1 : index
    %c0_23 = arith.constant 0 : index
    %c0_24 = arith.constant 0 : index
    %22 = vector.load %arg1[%c0_21, %c1_22, %c0_23, %c0_24] : memref<1x10x10x64xbf16, #tpu.memory_space<vmem>>, vector<1x8x8x64xbf16>
    %23 = vector.shape_cast %22 : vector<1x8x8x64xbf16> to vector<8x8x64xbf16>
    %24 = vector.shape_cast %23 : vector<8x8x64xbf16> to vector<64x64xbf16>
    %c3 = arith.constant 3 : index
    %c0_25 = arith.constant 0 : index
    %c0_26 = arith.constant 0 : index
    %25 = vector.load %arg2[%c3, %c0_25, %c0_26] : memref<9x64x128xbf16, #tpu.memory_space<vmem>>, vector<1x64x128xbf16>
    %26 = vector.shape_cast %25 : vector<1x64x128xbf16> to vector<64x128xbf16>
    %cst_27 = arith.constant dense<0.000000e+00> : vector<64x128xf32>
    %27 = tpu.matmul %24, %26, %cst_27 {dimension_numbers = #tpu.dot_dimension_numbers<[1], [0], [0], [1], [0, 0, 1, 1], [], []>} : vector<64x64xbf16>, vector<64x128xbf16>, vector<64x128xf32> -> vector<64x128xf32>
    %28 = arith.addf %21, %27 : vector<64x128xf32>
    %c0_28 = arith.constant 0 : index
    %c1_29 = arith.constant 1 : index
    %c1_30 = arith.constant 1 : index
    %c0_31 = arith.constant 0 : index
    %29 = vector.load %arg1[%c0_28, %c1_29, %c1_30, %c0_31] : memref<1x10x10x64xbf16, #tpu.memory_space<vmem>>, vector<1x8x8x64xbf16>
    %30 = vector.shape_cast %29 : vector<1x8x8x64xbf16> to vector<8x8x64xbf16>
    %31 = vector.shape_cast %30 : vector<8x8x64xbf16> to vector<64x64xbf16>
    %c4 = arith.constant 4 : index
    %c0_32 = arith.constant 0 : index
    %c0_33 = arith.constant 0 : index
    %32 = vector.load %arg2[%c4, %c0_32, %c0_33] : memref<9x64x128xbf16, #tpu.memory_space<vmem>>, vector<1x64x128xbf16>
    %33 = vector.shape_cast %32 : vector<1x64x128xbf16> to vector<64x128xbf16>
    %cst_34 = arith.constant dense<0.000000e+00> : vector<64x128xf32>
    %34 = tpu.matmul %31, %33, %cst_34 {dimension_numbers = #tpu.dot_dimension_numbers<[1], [0], [0], [1], [0, 0, 1, 1], [], []>} : vector<64x64xbf16>, vector<64x128xbf16>, vector<64x128xf32> -> vector<64x128xf32>
    %35 = arith.addf %28, %34 : vector<64x128xf32>
    %c0_35 = arith.constant 0 : index
    %c1_36 = arith.constant 1 : index
    %c2_37 = arith.constant 2 : index
    %c0_38 = arith.constant 0 : index
    %36 = vector.load %arg1[%c0_35, %c1_36, %c2_37, %c0_38] : memref<1x10x10x64xbf16, #tpu.memory_space<vmem>>, vector<1x8x8x64xbf16>
    %37 = vector.shape_cast %36 : vector<1x8x8x64xbf16> to vector<8x8x64xbf16>
    %38 = vector.shape_cast %37 : vector<8x8x64xbf16> to vector<64x64xbf16>
    %c5 = arith.constant 5 : index
    %c0_39 = arith.constant 0 : index
    %c0_40 = arith.constant 0 : index
    %39 = vector.load %arg2[%c5, %c0_39, %c0_40] : memref<9x64x128xbf16, #tpu.memory_space<vmem>>, vector<1x64x128xbf16>
    %40 = vector.shape_cast %39 : vector<1x64x128xbf16> to vector<64x128xbf16>
    %cst_41 = arith.constant dense<0.000000e+00> : vector<64x128xf32>
    %41 = tpu.matmul %38, %40, %cst_41 {dimension_numbers = #tpu.dot_dimension_numbers<[1], [0], [0], [1], [0, 0, 1, 1], [], []>} : vector<64x64xbf16>, vector<64x128xbf16>, vector<64x128xf32> -> vector<64x128xf32>
    %42 = arith.addf %35, %41 : vector<64x128xf32>
    %c0_42 = arith.constant 0 : index
    %c2_43 = arith.constant 2 : index
    %c0_44 = arith.constant 0 : index
    %c0_45 = arith.constant 0 : index
    %43 = vector.load %arg1[%c0_42, %c2_43, %c0_44, %c0_45] : memref<1x10x10x64xbf16, #tpu.memory_space<vmem>>, vector<1x8x8x64xbf16>
    %44 = vector.shape_cast %43 : vector<1x8x8x64xbf16> to vector<8x8x64xbf16>
    %45 = vector.shape_cast %44 : vector<8x8x64xbf16> to vector<64x64xbf16>
    %c6 = arith.constant 6 : index
    %c0_46 = arith.constant 0 : index
    %c0_47 = arith.constant 0 : index
    %46 = vector.load %arg2[%c6, %c0_46, %c0_47] : memref<9x64x128xbf16, #tpu.memory_space<vmem>>, vector<1x64x128xbf16>
    %47 = vector.shape_cast %46 : vector<1x64x128xbf16> to vector<64x128xbf16>
    %cst_48 = arith.constant dense<0.000000e+00> : vector<64x128xf32>
    %48 = tpu.matmul %45, %47, %cst_48 {dimension_numbers = #tpu.dot_dimension_numbers<[1], [0], [0], [1], [0, 0, 1, 1], [], []>} : vector<64x64xbf16>, vector<64x128xbf16>, vector<64x128xf32> -> vector<64x128xf32>
    %49 = arith.addf %42, %48 : vector<64x128xf32>
    %c0_49 = arith.constant 0 : index
    %c2_50 = arith.constant 2 : index
    %c1_51 = arith.constant 1 : index
    %c0_52 = arith.constant 0 : index
    %50 = vector.load %arg1[%c0_49, %c2_50, %c1_51, %c0_52] : memref<1x10x10x64xbf16, #tpu.memory_space<vmem>>, vector<1x8x8x64xbf16>
    %51 = vector.shape_cast %50 : vector<1x8x8x64xbf16> to vector<8x8x64xbf16>
    %52 = vector.shape_cast %51 : vector<8x8x64xbf16> to vector<64x64xbf16>
    %c7 = arith.constant 7 : index
    %c0_53 = arith.constant 0 : index
    %c0_54 = arith.constant 0 : index
    %53 = vector.load %arg2[%c7, %c0_53, %c0_54] : memref<9x64x128xbf16, #tpu.memory_space<vmem>>, vector<1x64x128xbf16>
    %54 = vector.shape_cast %53 : vector<1x64x128xbf16> to vector<64x128xbf16>
    %cst_55 = arith.constant dense<0.000000e+00> : vector<64x128xf32>
    %55 = tpu.matmul %52, %54, %cst_55 {dimension_numbers = #tpu.dot_dimension_numbers<[1], [0], [0], [1], [0, 0, 1, 1], [], []>} : vector<64x64xbf16>, vector<64x128xbf16>, vector<64x128xf32> -> vector<64x128xf32>
    %56 = arith.addf %49, %55 : vector<64x128xf32>
    %c0_56 = arith.constant 0 : index
    %c2_57 = arith.constant 2 : index
    %c2_58 = arith.constant 2 : index
    %c0_59 = arith.constant 0 : index
    %57 = vector.load %arg1[%c0_56, %c2_57, %c2_58, %c0_59] : memref<1x10x10x64xbf16, #tpu.memory_space<vmem>>, vector<1x8x8x64xbf16>
    %58 = vector.shape_cast %57 : vector<1x8x8x64xbf16> to vector<8x8x64xbf16>
    %59 = vector.shape_cast %58 : vector<8x8x64xbf16> to vector<64x64xbf16>
    %c8 = arith.constant 8 : index
    %c0_60 = arith.constant 0 : index
    %c0_61 = arith.constant 0 : index
    %60 = vector.load %arg2[%c8, %c0_60, %c0_61] : memref<9x64x128xbf16, #tpu.memory_space<vmem>>, vector<1x64x128xbf16>
    %61 = vector.shape_cast %60 : vector<1x64x128xbf16> to vector<64x128xbf16>
    %cst_62 = arith.constant dense<0.000000e+00> : vector<64x128xf32>
    %62 = tpu.matmul %59, %61, %cst_62 {dimension_numbers = #tpu.dot_dimension_numbers<[1], [0], [0], [1], [0, 0, 1, 1], [], []>} : vector<64x64xbf16>, vector<64x128xbf16>, vector<64x128xf32> -> vector<64x128xf32>
    %63 = arith.addf %56, %62 : vector<64x128xf32>
    %c0_63 = arith.constant 0 : index
    %c0_64 = arith.constant 0 : index
    %64 = vector.load %arg3[%c0_63, %c0_64] : memref<1x128xf32, #tpu.memory_space<vmem>>, vector<1x128xf32>
    %65 = vector.broadcast %64 : vector<1x128xf32> to vector<64x128xf32>
    %66 = arith.addf %63, %65 : vector<64x128xf32>
    %cst_65 = arith.constant 0.000000e+00 : f32
    %67 = vector.broadcast %cst_65 : f32 to vector<64x128xf32>
    %68 = arith.maximumf %66, %67 : vector<64x128xf32>
    %69 = vector.shape_cast %68 : vector<64x128xf32> to vector<4x2x4x2x128xf32>
    %70 = vector.extract_strided_slice %69 {offsets = [0, 0, 0, 0, 0], sizes = [4, 1, 4, 2, 128], strides = [1, 1, 1, 1, 1]} : vector<4x2x4x2x128xf32> to vector<4x1x4x2x128xf32>
    %71 = vector.shape_cast %70 : vector<4x1x4x2x128xf32> to vector<4x4x2x128xf32>
    %72 = vector.extract_strided_slice %69 {offsets = [0, 1, 0, 0, 0], sizes = [4, 1, 4, 2, 128], strides = [1, 1, 1, 1, 1]} : vector<4x2x4x2x128xf32> to vector<4x1x4x2x128xf32>
    %73 = vector.shape_cast %72 : vector<4x1x4x2x128xf32> to vector<4x4x2x128xf32>
    %74 = arith.maximumf %71, %73 : vector<4x4x2x128xf32>
    %75 = vector.extract_strided_slice %74 {offsets = [0, 0, 0, 0], sizes = [4, 4, 1, 128], strides = [1, 1, 1, 1]} : vector<4x4x2x128xf32> to vector<4x4x1x128xf32>
    %76 = vector.shape_cast %75 : vector<4x4x1x128xf32> to vector<4x4x128xf32>
    %77 = vector.extract_strided_slice %74 {offsets = [0, 0, 1, 0], sizes = [4, 4, 1, 128], strides = [1, 1, 1, 1]} : vector<4x4x2x128xf32> to vector<4x4x1x128xf32>
    %78 = vector.shape_cast %77 : vector<4x4x1x128xf32> to vector<4x4x128xf32>
    %79 = arith.maximumf %76, %78 : vector<4x4x128xf32>
    %80 = arith.truncf %79 : vector<4x4x128xf32> to vector<4x4x128xbf16>
    %c0_66 = arith.constant 0 : index
    %c0_67 = arith.constant 0 : index
    %c0_68 = arith.constant 0 : index
    %c0_69 = arith.constant 0 : index
    %81 = vector.load %arg4[%c0_66, %c0_67, %c0_68, %c0_69] : memref<1x4x4x128xbf16, #tpu.memory_space<vmem>>, vector<1x4x4x128xbf16>
    %82 = vector.shape_cast %81 : vector<1x4x4x128xbf16> to vector<4x4x128xbf16>
    %83 = vector.shape_cast %80 : vector<4x4x128xbf16> to vector<1x4x4x128xbf16>
    tpu.vector_store %arg4[%c0_66, %c0_67, %c0_68, %c0_69], %83 {strides = array<i32>} : memref<1x4x4x128xbf16, #tpu.memory_space<vmem>>, vector<1x4x4x128xbf16>,
    return
  }
  func.func @transform_0(%arg0: i32) -> (i32, i32, i32, i32) {
    %c0_i32 = arith.constant 0 : i32
    %c0_i32_0 = arith.constant 0 : i32
    %c0_i32_1 = arith.constant 0 : i32
    %c0_i32_2 = arith.constant 0 : i32
    return %arg0, %c0_i32, %c0_i32_0, %c0_i32_1 : i32, i32, i32, i32
  }
  func.func @transform_1(%arg0: i32) -> (i32, i32, i32) {
    %c0_i32 = arith.constant 0 : i32
    %c0_i32_0 = arith.constant 0 : i32
    %c0_i32_1 = arith.constant 0 : i32
    %c0_i32_2 = arith.constant 0 : i32
    return %c0_i32, %c0_i32_0, %c0_i32_1 : i32, i32, i32
  }
  func.func @transform_2(%arg0: i32) -> (i32, i32) {
    %c0_i32 = arith.constant 0 : i32
    %c0_i32_0 = arith.constant 0 : i32
    %c0_i32_1 = arith.constant 0 : i32
    return %c0_i32, %c0_i32_0 : i32, i32
  }
  func.func @transform_3(%arg0: i32) -> (i32, i32, i32, i32) {
    %c0_i32 = arith.constant 0 : i32
    %c0_i32_0 = arith.constant 0 : i32
    %c0_i32_1 = arith.constant 0 : i32
    %c0_i32_2 = arith.constant 0 : i32
    return %arg0, %c0_i32, %c0_i32_0, %c0_i32_1 : i32, i32, i32, i32
  }
}

module attributes {stable_mosaic.version = 11 : i64} {
  func.func @_head_kernel(%arg0: i32, %arg1: memref<2x2x2048xbf16, #tpu.memory_space<vmem>>, %arg2: memref<2048x256xbf16, #tpu.memory_space<vmem>>, %arg3: memref<1x256xf32, #tpu.memory_space<vmem>>, %arg4: memref<1x256xf32, #tpu.memory_space<vmem>>, %arg5: memref<1x1xf32, #tpu.memory_space<vmem>>, %arg6: memref<2x1xf32, #tpu.memory_space<vmem>>, %arg7: memref<2x256xf32, #tpu.memory_space<vmem>>) attributes {dimension_semantics = [#tpu.dimension_semantics<arbitrary>], iteration_bounds = array<i64: 1>, scalar_prefetch = 0 : i64, scratch_operands = 1 : i64, tpu.core_type = #tpu.core_type<tc>, window_params = [{transform_indices = @transform_0, window_bounds = array<i64: 2, 2, 2048>}, {transform_indices = @transform_1, window_bounds = array<i64: 2048, 256>}, {pipeline_mode = #tpu.pipeline_mode<synchronous>, transform_indices = @transform_2, window_bounds = array<i64: 1, 256>}, {pipeline_mode = #tpu.pipeline_mode<synchronous>, transform_indices = @transform_3, window_bounds = array<i64: 1, 256>}, {pipeline_mode = #tpu.pipeline_mode<synchronous>, transform_indices = @transform_4, window_bounds = array<i64: 1, 1>}, {pipeline_mode = #tpu.pipeline_mode<synchronous>, transform_indices = @transform_5, window_bounds = array<i64: 2, 1>}]} {
    %c0_i32 = arith.constant 0 : i32
    %0 = arith.cmpi eq, %arg0, %c0_i32 : i32
    %1 = arith.extui %0 : i1 to i32
    %c0_i32_0 = arith.constant 0 : i32
    %2 = arith.cmpi ne, %1, %c0_i32_0 : i32
    scf.if %2 {
      %cst_13 = arith.constant 0.000000e+00 : f32
      %17 = vector.broadcast %cst_13 : f32 to vector<2x256xf32>
      %c0_14 = arith.constant 0 : index
      %c0_15 = arith.constant 0 : index
      %18 = vector.load %arg7[%c0_14, %c0_15] : memref<2x256xf32, #tpu.memory_space<vmem>>, vector<2x256xf32>
      tpu.vector_store %arg7[%c0_14, %c0_15], %17 {strides = array<i32>} : memref<2x256xf32, #tpu.memory_space<vmem>>, vector<2x256xf32>,
    } else {
    }
    %c0 = arith.constant 0 : index
    %c0_1 = arith.constant 0 : index
    %c0_2 = arith.constant 0 : index
    %3 = vector.load %arg1[%c0, %c0_1, %c0_2] : memref<2x2x2048xbf16, #tpu.memory_space<vmem>>, vector<1x2x2048xbf16>
    %4 = vector.shape_cast %3 : vector<1x2x2048xbf16> to vector<2x2048xbf16>
    %c1 = arith.constant 1 : index
    %c0_3 = arith.constant 0 : index
    %c0_4 = arith.constant 0 : index
    %5 = vector.load %arg1[%c1, %c0_3, %c0_4] : memref<2x2x2048xbf16, #tpu.memory_space<vmem>>, vector<1x2x2048xbf16>
    %6 = vector.shape_cast %5 : vector<1x2x2048xbf16> to vector<2x2048xbf16>
    %7 = arith.subf %4, %6 : vector<2x2048xbf16>
    %8 = math.absf %7 : vector<2x2048xbf16>
    %c0_5 = arith.constant 0 : index
    %c0_6 = arith.constant 0 : index
    %9 = vector.load %arg7[%c0_5, %c0_6] : memref<2x256xf32, #tpu.memory_space<vmem>>, vector<2x256xf32>
    %c0_7 = arith.constant 0 : index
    %c0_8 = arith.constant 0 : index
    %10 = vector.load %arg2[%c0_7, %c0_8] : memref<2048x256xbf16, #tpu.memory_space<vmem>>, vector<2048x256xbf16>
    %cst = arith.constant dense<0.000000e+00> : vector<2x256xf32>
    %11 = tpu.matmul %8, %10, %cst {dimension_numbers = #tpu.dot_dimension_numbers<[1], [0], [0], [1], [0, 0, 1, 1], [], []>} : vector<2x2048xbf16>, vector<2048x256xbf16>, vector<2x256xf32> -> vector<2x256xf32>
    %12 = arith.addf %9, %11 : vector<2x256xf32>
    %c0_9 = arith.constant 0 : index
    %c0_10 = arith.constant 0 : index
    %13 = vector.load %arg7[%c0_9, %c0_10] : memref<2x256xf32, #tpu.memory_space<vmem>>, vector<2x256xf32>
    tpu.vector_store %arg7[%c0_9, %c0_10], %12 {strides = array<i32>} : memref<2x256xf32, #tpu.memory_space<vmem>>, vector<2x256xf32>,
    %c0_i32_11 = arith.constant 0 : i32
    %14 = arith.cmpi eq, %arg0, %c0_i32_11 : i32
    %15 = arith.extui %14 : i1 to i32
    %c0_i32_12 = arith.constant 0 : i32
    %16 = arith.cmpi ne, %15, %c0_i32_12 : i32
    scf.if %16 {
      %c0_13 = arith.constant 0 : index
      %c0_14 = arith.constant 0 : index
      %17 = vector.load %arg7[%c0_13, %c0_14] : memref<2x256xf32, #tpu.memory_space<vmem>>, vector<2x256xf32>
      %c0_15 = arith.constant 0 : index
      %c0_16 = arith.constant 0 : index
      %18 = vector.load %arg3[%c0_15, %c0_16] : memref<1x256xf32, #tpu.memory_space<vmem>>, vector<1x256xf32>
      %19 = vector.broadcast %18 : vector<1x256xf32> to vector<2x256xf32>
      %20 = arith.addf %17, %19 : vector<2x256xf32>
      %cst_17 = arith.constant 0.000000e+00 : f32
      %21 = vector.broadcast %cst_17 : f32 to vector<2x256xf32>
      %22 = arith.maximumf %20, %21 : vector<2x256xf32>
      %c0_18 = arith.constant 0 : index
      %c0_19 = arith.constant 0 : index
      %23 = vector.load %arg4[%c0_18, %c0_19] : memref<1x256xf32, #tpu.memory_space<vmem>>, vector<1x256xf32>
      %24 = vector.broadcast %23 : vector<1x256xf32> to vector<2x256xf32>
      %25 = arith.mulf %22, %24 : vector<2x256xf32>
      %cst_20 = arith.constant dense<0.000000e+00> : vector<2xf32>
      %26 = vector.multi_reduction <add>, %25, %cst_20 [1] : vector<2x256xf32> to vector<2xf32>
      %27 = vector.shape_cast %26 : vector<2xf32> to vector<2x1xf32>
      %c0_21 = arith.constant 0 : index
      %c0_22 = arith.constant 0 : index
      %28 = vector.load %arg5[%c0_21, %c0_22] : memref<1x1xf32, #tpu.memory_space<vmem>>, vector<1x1xf32>
      %29 = vector.broadcast %28 : vector<1x1xf32> to vector<2x1xf32>
      %30 = arith.addf %27, %29 : vector<2x1xf32>
      %31 = arith.negf %30 : vector<2x1xf32>
      %32 = math.exp %31 : vector<2x1xf32>
      %cst_23 = arith.constant 1.000000e+00 : f32
      %33 = vector.broadcast %cst_23 : f32 to vector<2x1xf32>
      %34 = arith.addf %33, %32 : vector<2x1xf32>
      %35 = arith.divf %33, %34 : vector<2x1xf32>
      %c0_24 = arith.constant 0 : index
      %c0_25 = arith.constant 0 : index
      %36 = vector.load %arg6[%c0_24, %c0_25] : memref<2x1xf32, #tpu.memory_space<vmem>>, vector<2x1xf32>
      tpu.vector_store %arg6[%c0_24, %c0_25], %35 {strides = array<i32>} : memref<2x1xf32, #tpu.memory_space<vmem>>, vector<2x1xf32>,
    } else {
    }
    return
  }
  func.func @transform_0(%arg0: i32) -> (i32, i32, i32) {
    %c0_i32 = arith.constant 0 : i32
    %c0_i32_0 = arith.constant 0 : i32
    %c0_i32_1 = arith.constant 0 : i32
    return %c0_i32, %c0_i32_0, %arg0 : i32, i32, i32
  }
  func.func @transform_1(%arg0: i32) -> (i32, i32) {
    %c0_i32 = arith.constant 0 : i32
    %c0_i32_0 = arith.constant 0 : i32
    return %arg0, %c0_i32 : i32, i32
  }
  func.func @transform_2(%arg0: i32) -> (i32, i32) {
    %c0_i32 = arith.constant 0 : i32
    %c0_i32_0 = arith.constant 0 : i32
    %c0_i32_1 = arith.constant 0 : i32
    return %c0_i32, %c0_i32_0 : i32, i32
  }
  func.func @transform_3(%arg0: i32) -> (i32, i32) {
    %c0_i32 = arith.constant 0 : i32
    %c0_i32_0 = arith.constant 0 : i32
    %c0_i32_1 = arith.constant 0 : i32
    return %c0_i32, %c0_i32_0 : i32, i32
  }
  func.func @transform_4(%arg0: i32) -> (i32, i32) {
    %c0_i32 = arith.constant 0 : i32
    %c0_i32_0 = arith.constant 0 : i32
    %c0_i32_1 = arith.constant 0 : i32
    return %c0_i32, %c0_i32_0 : i32, i32
  }
  func.func @transform_5(%arg0: i32) -> (i32, i32) {
    %c0_i32 = arith.constant 0 : i32
    %c0_i32_0 = arith.constant 0 : i32
    %c0_i32_1 = arith.constant 0 : i32
    return %c0_i32, %c0_i32_0 : i32, i32
  }
}

</mosaic_0001>

<bundles_post_ra>
// kernel: siamese_forward.3
= control target key start
LH: loop header
LB: loop body
LE: loop exit
PB: predicated region body
PF: predicated region fallthrough
CT: control target
= control target key end

     0   :  { %s2608_s12 = smov 0   ;;  %s2610_s13 = smov 0   ;;  %s3042_s0 = inlined_call_operand.vmem [shape: bf16[1024,27], index: 0, kind: input, shape index: {}]   ;;  %s3043_s1 = inlined_call_operand.vmem [shape: bf16[27,64], index: 1, kind: input, shape index: {}]   ;;  %s3044_s2 = inlined_call_operand.vmem [shape: f32[1,64], index: 2, kind: input, shape index: {}]   ;;  %s3045_s3 = inlined_call_operand.vmem [shape: bf16[4,8,8,64], index: 3, kind: output, shape index: {}]  }
   0x1   :  { %s2612_s14 = smov 0  }
   0x2 LB: > { %s25_s15 = sadd.s32 1, %s2580_s13  ;;  %p2224_p0 = scmp.ge.s32.totalorder %s2584_s14, 1  ;;  %s2584_s14 = sphi %s2612_s14, %s13_s14   ;;  %s2580_s13 = sphi %s2610_s13, %s3047_s13   ;;  %s2576_s12 = sphi %s2608_s12, %s3046_s12  }
   0x3   : > { %p27_p1 = scmp.ge.s32.totalorder %s25_s15, 4  ;;  %p156_p2 = scmp.lt.s32.totalorder %s2584_s14, 5 }
   0x5   : > { %s3049_s15 = smov (%p27_p1, %s25_s15), 0  ;;  %p157_p3 = pnand %p2224_p0, %p156_p2 }
   0x6   : > { %v2543_v0 = vld [vmem:[%s3043_s1] sm:$0xff] (!%p157_p3)   ;;  %vm387_vm0 = vcmask (!%p157_p3), 1044480   ;;  %v2544_v1 = vld [vmem:[%s3043_s1 + $0x8] sm:$0x3f] (!%p157_p3)   ;;  %vm388_vm1 = vcmask (!%p157_p3), 1045504   ;;  %s2225_s20 = sshll.u32 (!%p157_p3), %s2576_s12, 5  ;;  %v623_v24 = vlaneseq (!%p157_p3) }
   0x7   : > { %160 = sbr.rel (%p157_p3) target bundleno = 406 (0x196), region = 32  ;;  %2477 = vmatprep.subr.bf16.mxu0 (!%p157_p3), %v2543_v0  ;;  %2513 = vmatprep.subr.bf16.mxu1 (!%p157_p3), %v2543_v0  ;;  %v2586_v2 = vmov (!%p157_p3), 65535   ;;  %p187_p4 = scmp.lt.s32.totalorder (!%p157_p3), %s2225_s20, 127  ;;  %vm338_vm2 = vcmask (!%p157_p3), 220160   ;;  %v2587_v22 = vmov (!%p157_p3), 1983009808  }
   0x8   : > { %2478 = vmatpush3.bf16.msra.mxu0 (!%p157_p3), %v2543_v0  ;;  %2515 = vmatpush3.bf16.msra.mxu1 (!%p157_p3), %v2543_v0  ;;  %v389_v3 = vsel (!%p157_p3), %vm387_vm0, 4294967295, %v2586_v2  ;;  %v621_v23 = vunpack.c.l.s4 (!%p157_p3), %v2587_v22  ;;  %v624_v26 = vshrl.u32 (!%p157_p3), %v623_v24, 7  ;;  %v2675_v27 = vld [vmem:[%s3044_s2] ss:$0 sm:$0xff] (!%p157_p3)  ;;  %vm1996_vm3 = vcmask (!%p157_p3), 1041409   ;;  %p194_p5 = scmp.lt.s32.totalorder (!%p157_p3), %s2576_s12, 3 }
   0x9   : > { %v390_v4 = vsel (!%p157_p3), %vm388_vm1, %v389_v3, 0  ;;  %vm1999_vm4 = vcmask (!%p157_p3), 1042434   ;;  %vm2002_vm5 = vcmask (!%p157_p3), 1043459   ;;  %vm2005_vm6 = vcmask (!%p157_p3), 1044484  }
   0xa   : > { %v392_v5 = vand.u32 (!%p157_p3), %v2544_v1, %v390_v4  ;;  %v622_v25 = vunpack.c.0.s8 (!%p157_p3), %v621_v23  ;;  %vm2008_vm7 = vcmask (!%p157_p3), 1045509   ;;  %vm2011_vm8 = vcmask (!%p157_p3), 1046534  }
   0xb   : > { %vm2014_vm9 = vcmask (!%p157_p3), 1047559   ;;  %vm2130_vm10 = vcmask (!%p157_p3), 519168  }
   0xc   : > { %2479 = vmatprep.subr.bf16.mxu0 (!%p157_p3), %v392_v5  ;;  %2514 = vmatprep.subr.bf16.mxu1 (!%p157_p3), %v392_v5  ;;  %v2678_v30 = vsub.s32 (!%p157_p3), %v622_v25, %v624_v26 }
   0xd   : > { %2480 = vmatpush3.bf16.msra.mxu0 (!%p157_p3), %v392_v5  ;;  %2516 = vmatpush3.bf16.msra.mxu1 (!%p157_p3), %v392_v5 }
   0xe   : > { %s3051_s20 = smov (!%p187_p4, %s2225_s20), 127  ;;  %s3053_s12 = smov (!%p194_p5, %s2576_s12), 3 }
   0xf   : > { %s2226_s21 = sshll.u32 %s3051_s20, 2  ;;  %s2394_s27 = sshll.u32 %s3053_s12, 5 }
  0x10   : > { %s2638_s24 = scalar_lea.vmem %s3042_s0, %s2226_s21  ;;  %s2817_s30 = scalar_lea.vmem %s3045_s3, %s2394_s27 }
  0x11   : > { %v2545_v6 = vld [vmem:[%s2638_s24] sm:$0xff]   ;;  %v2547_v8 = vld [vmem:[%s2638_s24 + $0x8] sm:$0xff]   ;;  %v2549_v10 = vld [vmem:[%s2638_s24 + $0x10] sm:$0xff]  }
  0x12   : > { %v2546_v7 = vld [vmem:[%s2638_s24 + $0x40] sm:$0xff]   ;;  %2481 = vmatprep.mubr.msk.bf16.mxu0 %vm338_vm2, %v2545_v6  ;;  %v2548_v9 = vld [vmem:[%s2638_s24 + $0x48] sm:$0xff]   ;;  %v2550_v11 = vld [vmem:[%s2638_s24 + $0x50] sm:$0xff]  }
  0x13   : > { %2497 = vmatprep.mubr.msk.bf16.mxu1 %vm338_vm2, %v2546_v7  ;;  %2482 = vmatmul.mubr.msk.bf16.vlgmr.msra.gmra.mrb[0].mxu0 %vm338_vm2, %v2547_v8  ;;  %v2551_v12 = vld [vmem:[%s2638_s24 + $0x18] sm:$0xff]   ;;  %v2553_v14 = vld [vmem:[%s2638_s24 + $0x20] sm:$0xff]   ;;  %v2555_v16 = vld [vmem:[%s2638_s24 + $0x28] sm:$0xff]  }
  0x14   : > { %2498 = vmatmul.mubr.msk.bf16.vlgmr.msra.gmra.mrb[0].mxu1 %vm338_vm2, %v2548_v9  ;;  %2485 = vmatprep.mubr.msk.bf16.mxu0 %vm338_vm2, %v2549_v10  ;;  %v2552_v13 = vld [vmem:[%s2638_s24 + $0x58] sm:$0xff]   ;;  %v2554_v15 = vld [vmem:[%s2638_s24 + $0x60] sm:$0xff]   ;;  %v2556_v17 = vld [vmem:[%s2638_s24 + $0x68] sm:$0xff]  }
  0x15   : > { %2501 = vmatprep.mubr.msk.bf16.mxu1 %vm338_vm2, %v2550_v11  ;;  %v2557_v18 = vld [vmem:[%s2638_s24 + $0x30] sm:$0xff]   ;;  %v2559_v20 = vld [vmem:[%s2638_s24 + $0x38] sm:$0xff]  }
  0x16   : > { %v2558_v19 = vld [vmem:[%s2638_s24 + $0x70] sm:$0xff]   ;;  %v2560_v21 = vld [vmem:[%s2638_s24 + $0x78] sm:$0xff]  }
  0x1b   : > { %2486 = vmatmul.mubr.msk.bf16.gmra.mrb[4].mxu0 %vm338_vm2, %v2551_v12 }
  0x1c   : > { %2502 = vmatmul.mubr.msk.bf16.gmra.mrb[4].mxu1 %vm338_vm2, %v2552_v13  ;;  %2489 = vmatprep.mubr.msk.bf16.mxu0 %vm338_vm2, %v2553_v14 }
  0x1d   : > { %2505 = vmatprep.mubr.msk.bf16.mxu1 %vm338_vm2, %v2554_v15 }
  0x23   : > { %2490 = vmatmul.mubr.msk.bf16.gmra.mrb[8].mxu0 %vm338_vm2, %v2555_v16 }
  0x24   : > { %2506 = vmatmul.mubr.msk.bf16.gmra.mrb[8].mxu1 %vm338_vm2, %v2556_v17  ;;  %2493 = vmatprep.mubr.msk.bf16.mxu0 %vm338_vm2, %v2557_v18 }
  0x25   : > { %2509 = vmatprep.mubr.msk.bf16.mxu1 %vm338_vm2, %v2558_v19 }
  0x2b   : > { %2494 = vmatmul.mubr.msk.bf16.gmra.mrb[12].mxu0 %vm338_vm2, %v2559_v20 }
  0x2c   : > { %2510 = vmatmul.mubr.msk.bf16.gmra.mrb[12].mxu1 %vm338_vm2, %v2560_v21 }
  0xe6   : > { %v2483_v28 = vpop.f32.mrb[0].mxu0 }
  0xe7   : > { %v437_v29 = vadd.f32 %v2483_v28, %v2675_v27  ;;  %v2499_v31 = vpop.f32.mrb[0].mxu1  ;;  %v428_v32 = vpop.f32.mrb[1].mxu0 }
  0xe8   : > { %v501_v33 = vadd.f32 %v2499_v31, %v2675_v27  ;;  %v429_v34 = vadd.f32 %v2675_v27, %v428_v32  ;;  %v492_v35 = vpop.f32.mrb[1].mxu1  ;;  %v2484_v36 = vpop.f32.mrb[2].mxu0 }
  0xe9   : > { %v557_v37 = vmax.f32 %v437_v29, 0.0  ;;  %v493_v38 = vadd.f32 %v2675_v27, %v492_v35  ;;  %v440_v39 = vadd.f32 %v2484_v36, %v2675_v27  ;;  %v2500_v40 = vpop.f32.mrb[2].mxu1  ;;  %v431_v41 = vpop.f32.mrb[3].mxu0 }
  0xea   : > { %v573_v42 = vmax.f32 %v501_v33, 0.0  ;;  %v555_v43 = vmax.f32 %v429_v34, 0.0  ;;  %v2685_v44 = vadd.f32 %v2500_v40, %v2675_v27  ;;  %v2688_v45 = vadd.f32 %v2675_v27, %v431_v41  ;;  %v2690_v46 = vpop.f32.mrb[3].mxu1 }
  0xeb   : > { %v653_v47 = vcombine.high %v557_v37, %v557_v37  ;;  %v660_v48 = vrot.slane %v557_v37, %v2678_v30  ;;  %v571_v49 = vmax.f32 %v493_v38, 0.0  ;;  %v2693_v50 = vmax.f32 %v440_v39, 0.0 }
  0xec   : > { %v925_v51 = vcombine.high %v573_v42, %v573_v42  ;;  %v932_v52 = vrot.slane %v573_v42, %v2678_v30  ;;  %v619_v53 = vcombine.high %v555_v43, %v555_v43  ;;  %v626_v54 = vrot.slane %v555_v43, %v2678_v30 }
  0xed   : > { %v667_v55 = vrot.slane %v653_v47, %v2678_v30  ;;  %v668_v56 = vcombine.high %v660_v48, %v660_v48  ;;  %v891_v57 = vcombine.high %v571_v49, %v571_v49  ;;  %v898_v58 = vrot.slane %v571_v49, %v2678_v30 }
  0xee   : > { %v939_v59 = vrot.slane %v925_v51, %v2678_v30  ;;  %v940_v60 = vcombine.high %v932_v52, %v932_v52  ;;  %v633_v61 = vrot.slane %v619_v53, %v2678_v30  ;;  %v634_v62 = vcombine.high %v626_v54, %v626_v54  ;;  %v2701_v63 = vpop.f32.mrb[4].mxu0 }
  0xef   : > { %v669_v0 = vcombine.high %v667_v55, %v667_v55  ;;  %v1291_v1 = vmax.f32 %v626_v54, %v660_v48  ;;  %v905_v2 = vrot.slane %v891_v57, %v2678_v30  ;;  %v906_v3 = vcombine.high %v898_v58, %v898_v58  ;;  %v2704_v4 = vpop.f32.mrb[4].mxu1  ;;  %v2706_v5 = vpop.f32.mrb[5].mxu0 }
  0xf0   : > { %v941_v6 = vcombine.high %v939_v59, %v939_v59  ;;  %v635_v7 = vcombine.high %v633_v61, %v633_v61  ;;  %v1292_v8 = vmax.f32 %v634_v62, %v668_v56  ;;  %v1293_v9 = vmax.f32 %v633_v61, %v667_v55  ;;  %v2708_v10 = vpop.f32.mrb[5].mxu1  ;;  %v2710_v11 = vpop.f32.mrb[6].mxu0 }
  0xf1   : > { %v2264_v12 = vrot.slane %v1291_v1, 9  ;;  %v907_v13 = vcombine.high %v905_v2, %v905_v2  ;;  %v1323_v14 = vmax.f32 %v898_v58, %v932_v52  ;;  %v1324_v15 = vmax.f32 %v906_v3, %v940_v60  ;;  %v2712_v16 = vpop.f32.mrb[6].mxu1  ;;  %v2714_v17 = vpop.f32.mrb[7].mxu0 }
  0xf2   : > { %v1294_v18 = vmax.f32 %v635_v7, %v669_v0  ;;  %v2265_v19 = vrot.slane %v1292_v8, 9  ;;  %v2266_v20 = vrot.slane %v1293_v9, 9  ;;  %v1325_v21 = vmax.f32 %v905_v2, %v939_v59  ;;  %v2716_v22 = vpop.f32.mrb[7].mxu1 }
  0xf3   : > { %v1611_v23 = vmax.f32 %v1291_v1, %v2264_v12  ;;  %v1326_v24 = vmax.f32 %v907_v13, %v941_v6  ;;  %v2296_v25 = vrot.slane %v1323_v14, 9  ;;  %v2297_v26 = vrot.slane %v1324_v15, 9 }
  0xf4   : > { %v2267_v28 = vrot.slane %v1294_v18, 9  ;;  %v1612_v29 = vmax.f32 %v1292_v8, %v2265_v19  ;;  %v1613_v31 = vmax.f32 %v1293_v9, %v2266_v20  ;;  %v2298_v32 = vrot.slane %v1325_v21, 9 }
  0xf5   : > { %v2395_v33 = vpack.c.bf16 %v1611_v23, %v1611_v23  ;;  %v2299_v34 = vrot.slane %v1326_v24, 9  ;;  %v1643_v35 = vmax.f32 %v1323_v14, %v2296_v25  ;;  %v1644_v36 = vmax.f32 %v1324_v15, %v2297_v26 }
  0xf6   : > { %v1614_v37 = vmax.f32 %v1294_v18, %v2267_v28  ;;  %v2396_v38 = vpack.c.bf16 %v1612_v29, %v1612_v29  ;;  %v2397_v39 = vpack.c.bf16 %v1613_v31, %v1613_v31  ;;  %v1645_v40 = vmax.f32 %v1325_v21, %v2298_v32  ;;  %v2718_v41 = vpop.f32.mrb[8].mxu0 }
  0xf7   : > { %v1931_v42 = vunpack.c.l.b16 %v2395_v33  ;;  %v1646_v43 = vmax.f32 %v1326_v24, %v2299_v34  ;;  %v2427_v47 = vpack.c.bf16 %v1643_v35, %v1643_v35  ;;  %v2428_v48 = vpack.c.bf16 %v1644_v36, %v1644_v36  ;;  %v2720_v49 = vpop.f32.mrb[8].mxu1  ;;  %v2722_v51 = vpop.f32.mrb[9].mxu0 }
  0xf8   : > { %v2398_v52 = vpack.c.bf16 %v1614_v37, %v1614_v37  ;;  %v1932_v53 = vunpack.c.l.b16 %v2396_v38  ;;  %v1933_v54 = vunpack.c.l.b16 %v2397_v39  ;;  %v2429_v55 = vpack.c.bf16 %v1645_v40, %v1645_v40  ;;  %v2724_v56 = vpop.f32.mrb[9].mxu1  ;;  %v2726_v57 = vpop.f32.mrb[10].mxu0 }
  0xf9   : > { %v2430_v58 = vpack.c.bf16 %v1646_v43, %v1646_v43  ;;  %v1963_v59 = vunpack.c.l.b16 %v2427_v47  ;;  %v1964_v60 = vunpack.c.l.b16 %v2428_v48  ;;  %v670_v61 = vcombine.high %v2693_v50, %v2693_v50  ;;  %v2730_v62 = vpop.f32.mrb[10].mxu1  ;;  %v2732_v0 = vpop.f32.mrb[11].mxu0 }
  0xfa   : > { %v1934_v1 = vunpack.c.l.b16 %v2398_v52  ;;  %v1995_v2 = vrot.slane %v1932_v53, 7  ;;  %v1998_v3 = vrot.slane %v1933_v54, 6  ;;  %v1965_v6 = vunpack.c.l.b16 %v2429_v55  ;;  %v2734_v7 = vpop.f32.mrb[11].mxu1 }
  0xfb   : > { %v1966_v8 = vunpack.c.l.b16 %v2430_v58  ;;  %v2058_v9 = vrot.slane %v1964_v60, 7  ;;  %v677_v12 = vrot.slane %v2693_v50, %v2678_v30  ;;  %v684_v13 = vrot.slane %v670_v61, %v2678_v30 }
  0xfc   : > { %v1997_v14 = vsel %vm1996_vm3, %v1995_v2, %v1931_v42  ;;  %v2001_v15 = vrot.slane %v1934_v1, 5  ;;  %v2060_v18 = vrot.slane %v1965_v6, 6  ;;  %v574_v19 = vmax.f32 %v2685_v44, 0.0 }
  0xfd   : > { %v2000_v20 = vsel %vm1999_vm4, %v1998_v3, %v1997_v14  ;;  %v2059_v21 = vsel %vm1996_vm3, %v2058_v9, %v1963_v59  ;;  %v2062_v23 = vrot.slane %v1966_v8, 5  ;;  %v685_v24 = vcombine.high %v677_v12, %v677_v12 }
  0xfe   : > { %v2061_v25 = vsel %vm1999_vm4, %v2060_v18, %v2059_v21  ;;  %v686_v26 = vcombine.high %v684_v13, %v684_v13  ;;  %v942_v28 = vcombine.high %v574_v19, %v574_v19  ;;  %v949_v50 = vrot.slane %v574_v19, %v2678_v30  ;;  %v2745_v29 = vpop.f32.mrb[12].mxu0 }
  0xff   : > { %v556_v31 = vmax.f32 %v2688_v45, 0.0  ;;  %v2749_v32 = vsel %vm2002_vm5, %v2001_v15, %v2000_v20  ;;  %v496_v44 = vadd.f32 %v2675_v27, %v2690_v46  ;;  %v2754_v33 = vsel %vm2002_vm5, %v2062_v23, %v2061_v25  ;;  %v2756_v34 = vpop.f32.mrb[12].mxu1  ;;  %v2758_v35 = vpop.f32.mrb[13].mxu0 }
 0x100   : > { %v956_v36 = vrot.slane %v942_v28, %v2678_v30  ;;  %v957_v37 = vcombine.high %v949_v50, %v949_v50  ;;  %v453_v38 = vadd.f32 %v2701_v63, %v2675_v27  ;;  %v517_v45 = vadd.f32 %v2704_v4, %v2675_v27  ;;  %v2765_v39 = vpop.f32.mrb[13].mxu1  ;;  %v2767_v40 = vpop.f32.mrb[14].mxu0 }
 0x101   : > { %v636_v46 = vcombine.high %v556_v31, %v556_v31  ;;  %v643_v42 = vrot.slane %v556_v31, %v2678_v30  ;;  %v572_v43 = vmax.f32 %v496_v44, 0.0  ;;  %v2772_v47 = vadd.f32 %v2675_v27, %v2706_v5  ;;  %v2774_v48 = vpop.f32.mrb[14].mxu1  ;;  %v2776_v52 = vpop.f32.mrb[15].mxu0 }
 0x102   : > { %v958_v63 = vcombine.high %v956_v36, %v956_v36  ;;  %v561_v53 = vmax.f32 %v453_v38, 0.0  ;;  %v2778_v54 = vmax.f32 %v517_v45, 0.0  ;;  %v2782_v4 = vadd.f32 %v2675_v27, %v2708_v10  ;;  %v2784_v55 = vpop.f32.mrb[15].mxu1 }
 0x103   : > { %v650_v58 = vrot.slane %v636_v46, %v2678_v30  ;;  %v651_v59 = vcombine.high %v643_v42, %v643_v42  ;;  %v1295_v60 = vmax.f32 %v643_v42, %v677_v12  ;;  %v908_v5 = vcombine.high %v572_v43, %v572_v43 }
 0x104   : > { %v915_v61 = vrot.slane %v572_v43, %v2678_v30  ;;  %v721_v1 = vcombine.high %v561_v53, %v561_v53  ;;  %v2789_v2 = vrot.slane %v561_v53, %v2678_v30  ;;  %v993_v3 = vcombine.high %v2778_v54, %v2778_v54 }
 0x105   : > { %v652_v10 = vcombine.high %v650_v58, %v650_v58  ;;  %v1296_v6 = vmax.f32 %v651_v59, %v685_v24  ;;  %v1297_v8 = vmax.f32 %v650_v58, %v684_v13  ;;  %v2268_v9 = vrot.slane %v1295_v60, 9 }
 0x106   : > { %v922_v14 = vrot.slane %v908_v5, %v2678_v30  ;;  %v923_v12 = vcombine.high %v915_v61, %v915_v61  ;;  %v1327_v15 = vmax.f32 %v915_v61, %v949_v50  ;;  %v2795_v18 = vrot.slane %v721_v1, %v2678_v30 }
 0x107   : > { %v1298_v19 = vmax.f32 %v652_v10, %v686_v26  ;;  %v2269_v20 = vrot.slane %v1296_v6, 9  ;;  %v2270_v21 = vrot.slane %v1297_v8, 9  ;;  %v1615_v23 = vmax.f32 %v1295_v60, %v2268_v9 }
 0x108   : > { %v924_v25 = vcombine.high %v922_v14, %v922_v14  ;;  %v1328_v28 = vmax.f32 %v923_v12, %v957_v37  ;;  %v1329_v13 = vmax.f32 %v922_v14, %v956_v36  ;;  %v2300_v24 = vrot.slane %v1327_v15, 9 }
 0x109   : > { %v2271_v31 = vrot.slane %v1298_v19, 9  ;;  %v1616_v44 = vmax.f32 %v1296_v6, %v2269_v20  ;;  %v1617_v38 = vmax.f32 %v1297_v8, %v2270_v21  ;;  %v2399_v50 = vpack.c.bf16 %v1615_v23, %v1615_v23 }
 0x10a   : > { %v1330_v45 = vmax.f32 %v924_v25, %v958_v63  ;;  %v2301_v46 = vrot.slane %v1328_v28, 9  ;;  %v2302_v42 = vrot.slane %v1329_v13, 9  ;;  %v1647_v26 = vmax.f32 %v1327_v15, %v2300_v24 }
 0x10b   : > { %v1618_v43 = vmax.f32 %v1298_v19, %v2271_v31  ;;  %v2400_v53 = vpack.c.bf16 %v1616_v44, %v1616_v44  ;;  %v2401_v58 = vpack.c.bf16 %v1617_v38, %v1617_v38  ;;  %v1935_v59 = vunpack.c.l.b16 %v2399_v50 }
 0x10c   : > { %v2303_v37 = vrot.slane %v1330_v45, 9  ;;  %v1648_v36 = vmax.f32 %v1328_v28, %v2301_v46  ;;  %v1649_v60 = vmax.f32 %v1329_v13, %v2302_v42  ;;  %v2431_v5 = vpack.c.bf16 %v1647_v26, %v1647_v26 }
 0x10d   : > { %v2402_v61 = vpack.c.bf16 %v1618_v43, %v1618_v43  ;;  %v1936_v1 = vunpack.c.l.b16 %v2400_v53  ;;  %v1937_v10 = vunpack.c.l.b16 %v2401_v58  ;;  %v2004_v63 = vrot.slane %v1935_v59, 4 }
 0x10e   : > { %v1650_v6 = vmax.f32 %v1330_v45, %v2303_v37  ;;  %v2432_v8 = vpack.c.bf16 %v1648_v36, %v1648_v36  ;;  %v2433_v9 = vpack.c.bf16 %v1649_v60, %v1649_v60  ;;  %v1967_v14 = vunpack.c.l.b16 %v2431_v5 }
 0x10f   : > { %v1938_v12 = vunpack.c.l.b16 %v2402_v61  ;;  %v2006_v15 = vsel %vm2005_vm6, %v2004_v63, %v2749_v32  ;;  %v2007_v19 = vrot.slane %v1936_v1, 3  ;;  %v2010_v20 = vrot.slane %v1937_v10, 2 }
 0x110   : > { %v2434_v21 = vpack.c.bf16 %v1650_v6, %v1650_v6  ;;  %v1968_v23 = vunpack.c.l.b16 %v2432_v8  ;;  %v1969_v25 = vunpack.c.l.b16 %v2433_v9  ;;  %v2064_v28 = vrot.slane %v1967_v14, 4 }
 0x111   : > { %v2009_v13 = vsel %vm2008_vm7, %v2007_v19, %v2006_v15  ;;  %v2013_v24 = vrot.slane %v1938_v12, 1  ;;  %v736_v31 = vcombine.high %v2789_v2, %v2789_v2  ;;  %v737_v44 = vcombine.high %v2795_v18, %v2795_v18 }
 0x112   : > { %v2012_v38 = vsel %vm2011_vm8, %v2010_v20, %v2009_v13  ;;  %v1970_v50 = vunpack.c.l.b16 %v2434_v21  ;;  %v2065_v32 = vsel %vm2005_vm6, %v2064_v28, %v2754_v33  ;;  %v2066_v45 = vrot.slane %v1968_v23, 3 }
 0x113   : > { %v2015_v46 = vsel %vm2014_vm9, %v2013_v24, %v2012_v38  ;;  %v2068_v42 = vrot.slane %v1969_v25, 2  ;;  %v1000_v26 = vrot.slane %v2778_v54, %v2678_v30  ;;  %v1007_v43 = vrot.slane %v993_v3, %v2678_v30 }
 0x114   : > { %v2114_v53 = vpack.c.b16 %v2015_v46, %v2015_v46  ;;  %v2067_v33 = vsel %vm2008_vm7, %v2066_v45, %v2065_v32  ;;  %v2070_v58 = vrot.slane %v1970_v50, 1  ;;  %v559_v59 = vmax.f32 %v2772_v47, 0.0 }
 0x115   : > { %v2069_v37 = vsel %vm2011_vm8, %v2068_v42, %v2067_v33  ;;  %v1008_v36 = vcombine.high %v1000_v26, %v1000_v26  ;;  %v1009_v60 = vcombine.high %v1007_v43, %v1007_v43  ;;  %v575_v5 = vmax.f32 %v2782_v4, 0.0 }
 0x116   : > { %2131 = vst.msk [vmem:[%s2817_s30] sm:$0xf] %vm2130_vm10, %v2114_v53  ;;  %v2071_v61 = vsel %vm2014_vm9, %v2070_v58, %v2069_v37  ;;  %v687_v1 = vcombine.high %v559_v59, %v559_v59  ;;  %v694_v54 = vrot.slane %v559_v59, %v2678_v30  ;;  %v456_v3 = vadd.f32 %v2710_v11, %v2675_v27 }
 0x117   : > { %v2118_v10 = vpack.c.b16 %v2071_v61, %v2071_v61  ;;  %v959_v63 = vcombine.high %v575_v5, %v575_v5  ;;  %v966_v47 = vrot.slane %v575_v5, %v2678_v30  ;;  %v520_v6 = vadd.f32 %v2712_v16, %v2675_v27 }
 0x118   : > { %v701_v8 = vrot.slane %v687_v1, %v2678_v30  ;;  %v702_v4 = vcombine.high %v694_v54, %v694_v54  ;;  %v1299_v9 = vmax.f32 %v694_v54, %v2789_v2  ;;  %v562_v14 = vmax.f32 %v456_v3, 0.0 }
 0x119   : > { %2135 = vst.msk [vmem:[%s2817_s30 + $0x10] sm:$0xf] %vm2130_vm10, %v2118_v10  ;;  %v973_v12 = vrot.slane %v959_v63, %v2678_v30  ;;  %v974_v15 = vcombine.high %v966_v47, %v966_v47  ;;  %v1331_v19 = vmax.f32 %v966_v47, %v1000_v26  ;;  %v578_v11 = vmax.f32 %v520_v6, 0.0 }
 0x11a   : > { %v703_v20 = vcombine.high %v701_v8, %v701_v8  ;;  %v1300_v21 = vmax.f32 %v702_v4, %v736_v31  ;;  %v1301_v23 = vmax.f32 %v701_v8, %v2795_v18  ;;  %v2272_v25 = vrot.slane %v1299_v9, 9 }
 0x11b   : > { %v975_v28 = vcombine.high %v973_v12, %v973_v12  ;;  %v1332_v16 = vmax.f32 %v974_v15, %v1008_v36  ;;  %v1333_v13 = vmax.f32 %v973_v12, %v1007_v43  ;;  %v2304_v24 = vrot.slane %v1331_v19, 9 }
 0x11c   : > { %v1302_v38 = vmax.f32 %v703_v20, %v737_v44  ;;  %v2273_v50 = vrot.slane %v1300_v21, 9  ;;  %v2274_v2 = vrot.slane %v1301_v23, 9  ;;  %v1619_v32 = vmax.f32 %v1299_v9, %v2272_v25 }
 0x11d   : > { %v1334_v45 = vmax.f32 %v975_v28, %v1009_v60  ;;  %v2305_v46 = vrot.slane %v1332_v16, 9  ;;  %v2306_v42 = vrot.slane %v1333_v13, 9  ;;  %v1651_v53 = vmax.f32 %v1331_v19, %v2304_v24 }
 0x11e   : > { %v2275_v33 = vrot.slane %v1302_v38, 9  ;;  %v1620_v26 = vmax.f32 %v1300_v21, %v2273_v50  ;;  %v1621_v58 = vmax.f32 %v1301_v23, %v2274_v2  ;;  %v2403_v59 = vpack.c.bf16 %v1619_v32, %v1619_v32 }
 0x11f   : > { %v2307_v31 = vrot.slane %v1334_v45, 9  ;;  %v1652_v37 = vmax.f32 %v1332_v16, %v2305_v46  ;;  %v1653_v18 = vmax.f32 %v1333_v13, %v2306_v42  ;;  %v2435_v5 = vpack.c.bf16 %v1651_v53, %v1651_v53 }
 0x120   : > { %v1622_v61 = vmax.f32 %v1302_v38, %v2275_v33  ;;  %v2404_v36 = vpack.c.bf16 %v1620_v26, %v1620_v26  ;;  %v2405_v43 = vpack.c.bf16 %v1621_v58, %v1621_v58  ;;  %v1939_v1 = vunpack.c.l.b16 %v2403_v59 }
 0x121   : > { %v1654_v44 = vmax.f32 %v1334_v45, %v2307_v31  ;;  %v2436_v54 = vpack.c.bf16 %v1652_v37, %v1652_v37  ;;  %v2437_v3 = vpack.c.bf16 %v1653_v18, %v1653_v18  ;;  %v1971_v10 = vunpack.c.l.b16 %v2435_v5 }
 0x122   : > { %v2406_v60 = vpack.c.bf16 %v1622_v61, %v1622_v61  ;;  %v1940_v63 = vunpack.c.l.b16 %v2404_v36  ;;  %v1941_v47 = vunpack.c.l.b16 %v2405_v43  ;;  %v738_v6 = vcombine.high %v562_v14, %v562_v14 }
 0x123   : > { %v2438_v8 = vpack.c.bf16 %v1654_v44, %v1654_v44  ;;  %v1972_v4 = vunpack.c.l.b16 %v2436_v54  ;;  %v1973_v9 = vunpack.c.l.b16 %v2437_v3  ;;  %v745_v12 = vrot.slane %v562_v14, %v2678_v30 }
 0x124   : > { %v1942_v15 = vunpack.c.l.b16 %v2406_v60  ;;  %v2016_v19 = vrot.slane %v1940_v63, 7  ;;  %v2018_v20 = vrot.slane %v1941_v47, 6  ;;  %v752_v21 = vrot.slane %v738_v6, %v2678_v30 }
 0x125   : > { %v1974_v23 = vunpack.c.l.b16 %v2438_v8  ;;  %v2072_v25 = vrot.slane %v1972_v4, 7  ;;  %v2074_v28 = vrot.slane %v1973_v9, 6  ;;  %v753_v16 = vcombine.high %v745_v12, %v745_v12 }
 0x126   : > { %v2017_v13 = vsel %vm1996_vm3, %v2016_v19, %v1939_v1  ;;  %v2020_v24 = vrot.slane %v1942_v15, 5  ;;  %v754_v38 = vcombine.high %v752_v21, %v752_v21  ;;  %v1010_v50 = vcombine.high %v578_v11, %v578_v11 }
 0x127   : > { %v2019_v2 = vsel %vm1999_vm4, %v2018_v20, %v2017_v13  ;;  %v2073_v32 = vsel %vm1996_vm3, %v2072_v25, %v1971_v10  ;;  %v2076_v45 = vrot.slane %v1974_v23, 5  ;;  %v1017_v14 = vrot.slane %v578_v11, %v2678_v30 }
 0x128   : > { %v2075_v46 = vsel %vm1999_vm4, %v2074_v28, %v2073_v32  ;;  %v1024_v42 = vrot.slane %v1010_v50, %v2678_v30  ;;  %v448_v53 = vadd.f32 %v2675_v27, %v2714_v17  ;;  %v2856_v33 = vsel %vm2002_vm5, %v2020_v24, %v2019_v2 }
 0x129   : > { %v1025_v26 = vcombine.high %v1017_v14, %v1017_v14  ;;  %v512_v58 = vadd.f32 %v2675_v27, %v2716_v22  ;;  %v2861_v59 = vsel %vm2002_vm5, %v2076_v45, %v2075_v46  ;;  %v469_v11 = vadd.f32 %v2718_v41, %v2675_v27 }
 0x12a   : > { %v1026_v31 = vcombine.high %v1024_v42, %v1024_v42  ;;  %v560_v37 = vmax.f32 %v448_v53, 0.0  ;;  %v533_v18 = vadd.f32 %v2720_v49, %v2675_v27  ;;  %v461_v17 = vadd.f32 %v2675_v27, %v2722_v51 }
 0x12b   : > { %v576_v5 = vmax.f32 %v512_v58, 0.0  ;;  %v565_v61 = vmax.f32 %v469_v11, 0.0  ;;  %v2871_v36 = vadd.f32 %v2675_v27, %v2724_v56  ;;  %v2875_v22 = vadd.f32 %v2726_v57, %v2675_v27 }
 0x12c   : > { %v704_v43 = vcombine.high %v560_v37, %v560_v37  ;;  %v711_v41 = vrot.slane %v560_v37, %v2678_v30  ;;  %v2878_v1 = vmax.f32 %v533_v18, 0.0  ;;  %v2880_v44 = vmax.f32 %v461_v17, 0.0 }
 0x12d   : > { %v976_v49 = vcombine.high %v576_v5, %v576_v5  ;;  %v983_v51 = vrot.slane %v576_v5, %v2678_v30  ;;  %v789_v54 = vcombine.high %v565_v61, %v565_v61  ;;  %v2884_v3 = vrot.slane %v565_v61, %v2678_v30 }
 0x12e   : > { %v718_v56 = vrot.slane %v704_v43, %v2678_v30  ;;  %v719_v10 = vcombine.high %v711_v41, %v711_v41  ;;  %v1303_v60 = vmax.f32 %v711_v41, %v745_v12  ;;  %v1061_v57 = vcombine.high %v2878_v1, %v2878_v1 }
 0x12f   : > { %v990_v63 = vrot.slane %v976_v49, %v2678_v30  ;;  %v991_v47 = vcombine.high %v983_v51, %v983_v51  ;;  %v1335_v6 = vmax.f32 %v983_v51, %v1017_v14  ;;  %v2891_v8 = vrot.slane %v789_v54, %v2678_v30 }
 0x130   : > { %v720_v4 = vcombine.high %v718_v56, %v718_v56  ;;  %v1304_v9 = vmax.f32 %v719_v10, %v753_v16  ;;  %v1305_v15 = vmax.f32 %v718_v56, %v752_v21  ;;  %v2276_v19 = vrot.slane %v1303_v60, 9 }
 0x131   : > { %v992_v20 = vcombine.high %v990_v63, %v990_v63  ;;  %v1336_v23 = vmax.f32 %v991_v47, %v1025_v26  ;;  %v1337_v25 = vmax.f32 %v990_v63, %v1024_v42  ;;  %v2308_v28 = vrot.slane %v1335_v6, 9 }
 0x132   : > { %v1306_v13 = vmax.f32 %v720_v4, %v754_v38  ;;  %v2277_v12 = vrot.slane %v1304_v9, 9  ;;  %v2278_v24 = vrot.slane %v1305_v15, 9  ;;  %v1623_v50 = vmax.f32 %v1303_v60, %v2276_v19 }
 0x133   : > { %v1338_v2 = vmax.f32 %v992_v20, %v1026_v31  ;;  %v2309_v32 = vrot.slane %v1336_v23, 9  ;;  %v2310_v45 = vrot.slane %v1337_v25, 9  ;;  %v1655_v46 = vmax.f32 %v1335_v6, %v2308_v28 }
 0x134   : > { %v2279_v14 = vrot.slane %v1306_v13, 9  ;;  %v1624_v53 = vmax.f32 %v1304_v9, %v2277_v12  ;;  %v1625_v58 = vmax.f32 %v1305_v15, %v2278_v24  ;;  %v2407_v11 = vpack.c.bf16 %v1623_v50, %v1623_v50 }
 0x135   : > { %v2311_v37 = vrot.slane %v1338_v2, 9  ;;  %v1656_v16 = vmax.f32 %v1336_v23, %v2309_v32  ;;  %v1657_v21 = vmax.f32 %v1337_v25, %v2310_v45  ;;  %v2439_v18 = vpack.c.bf16 %v1655_v46, %v1655_v46 }
 0x136   : > { %v1626_v17 = vmax.f32 %v1306_v13, %v2279_v14  ;;  %v2408_v26 = vpack.c.bf16 %v1624_v53, %v1624_v53  ;;  %v2409_v42 = vpack.c.bf16 %v1625_v58, %v1625_v58  ;;  %v1943_v5 = vunpack.c.l.b16 %v2407_v11 }
 0x137   : > { %v1658_v38 = vmax.f32 %v1338_v2, %v2311_v37  ;;  %v2440_v61 = vpack.c.bf16 %v1656_v16, %v1656_v16  ;;  %v2441_v43 = vpack.c.bf16 %v1657_v21, %v1657_v21  ;;  %v1975_v41 = vunpack.c.l.b16 %v2439_v18 }
 0x138   : > { %v2410_v31 = vpack.c.bf16 %v1626_v17, %v1626_v17  ;;  %v1944_v49 = vunpack.c.l.b16 %v2408_v26  ;;  %v1945_v51 = vunpack.c.l.b16 %v2409_v42  ;;  %v2022_v54 = vrot.slane %v1943_v5, 4 }
 0x139   : > { %v2442_v56 = vpack.c.bf16 %v1658_v38, %v1658_v38  ;;  %v1976_v10 = vunpack.c.l.b16 %v2440_v61  ;;  %v1977_v60 = vunpack.c.l.b16 %v2441_v43  ;;  %v2078_v63 = vrot.slane %v1975_v41, 4 }
 0x13a   : > { %v1946_v47 = vunpack.c.l.b16 %v2410_v31  ;;  %v2023_v6 = vsel %vm2005_vm6, %v2022_v54, %v2856_v33  ;;  %v2024_v4 = vrot.slane %v1944_v49, 3  ;;  %v2026_v9 = vrot.slane %v1945_v51, 2 }
 0x13b   : > { %v1978_v15 = vunpack.c.l.b16 %v2442_v56  ;;  %v2079_v19 = vsel %vm2005_vm6, %v2078_v63, %v2861_v59  ;;  %v2080_v20 = vrot.slane %v1976_v10, 3  ;;  %v2082_v23 = vrot.slane %v1977_v60, 2 }
 0x13c   : > { %v2025_v25 = vsel %vm2008_vm7, %v2024_v4, %v2023_v6  ;;  %v2028_v28 = vrot.slane %v1946_v47, 1  ;;  %v804_v13 = vcombine.high %v2884_v3, %v2884_v3  ;;  %v805_v12 = vcombine.high %v2891_v8, %v2891_v8 }
 0x13d   : > { %v2027_v24 = vsel %vm2011_vm8, %v2026_v9, %v2025_v25  ;;  %v2081_v33 = vsel %vm2008_vm7, %v2080_v20, %v2079_v19  ;;  %v2084_v50 = vrot.slane %v1978_v15, 1  ;;  %v1068_v59 = vrot.slane %v2878_v1, %v2678_v30 }
 0x13e   : > { %v2029_v2 = vsel %vm2014_vm9, %v2028_v28, %v2027_v24  ;;  %v2083_v32 = vsel %vm2011_vm8, %v2082_v23, %v2081_v33  ;;  %v1075_v45 = vrot.slane %v1061_v57, %v2678_v30  ;;  %v755_v46 = vcombine.high %v2880_v44, %v2880_v44 }
 0x13f   : > { %v2115_v14 = vpack.c.b16 %v2029_v2, %v2029_v2  ;;  %v2085_v53 = vsel %vm2014_vm9, %v2084_v50, %v2083_v32  ;;  %v1076_v58 = vcombine.high %v1068_v59, %v1068_v59  ;;  %v762_v11 = vrot.slane %v2880_v44, %v2678_v30 }
 0x140   : > { %v2119_v37 = vpack.c.b16 %v2085_v53, %v2085_v53  ;;  %v1077_v16 = vcombine.high %v1075_v45, %v1075_v45  ;;  %v769_v21 = vrot.slane %v755_v46, %v2678_v30  ;;  %v579_v18 = vmax.f32 %v2871_v36, 0.0 }
 0x141   : > { %2132 = vst.msk [vmem:[%s2817_s30 + $0x4] sm:$0xf] %vm2130_vm10, %v2115_v14  ;;  %v770_v1 = vcombine.high %v762_v11, %v762_v11  ;;  %v1307_v57 = vmax.f32 %v762_v11, %v2884_v3  ;;  %v566_v17 = vmax.f32 %v2875_v22, 0.0  ;;  %v536_v26 = vadd.f32 %v2730_v62, %v2675_v27 }
 0x142   : > { %2136 = vst.msk [vmem:[%s2817_s30 + $0x14] sm:$0xf] %vm2130_vm10, %v2119_v37  ;;  %v771_v42 = vcombine.high %v769_v21, %v769_v21  ;;  %v1309_v44 = vmax.f32 %v769_v21, %v2891_v8  ;;  %v1027_v5 = vcombine.high %v579_v18, %v579_v18  ;;  %v1034_v38 = vrot.slane %v579_v18, %v2678_v30 }
 0x143   : > { %v1308_v61 = vmax.f32 %v770_v1, %v804_v13  ;;  %v2280_v36 = vrot.slane %v1307_v57, 9  ;;  %v806_v43 = vcombine.high %v566_v17, %v566_v17  ;;  %v2930_v41 = vrot.slane %v566_v17, %v2678_v30 }
 0x144   : > { %v1310_v3 = vmax.f32 %v771_v42, %v805_v12  ;;  %v2282_v31 = vrot.slane %v1309_v44, 9  ;;  %v1041_v22 = vrot.slane %v1027_v5, %v2678_v30  ;;  %v1042_v49 = vcombine.high %v1034_v38, %v1034_v38 }
 0x145   : > { %v2281_v62 = vrot.slane %v1308_v61, 9  ;;  %v1627_v51 = vmax.f32 %v1307_v57, %v2280_v36  ;;  %v1339_v54 = vmax.f32 %v1034_v38, %v1068_v59  ;;  %v2934_v56 = vrot.slane %v806_v43, %v2678_v30 }
 0x146   : > { %v2283_v8 = vrot.slane %v1310_v3, 9  ;;  %v1629_v10 = vmax.f32 %v1309_v44, %v2282_v31  ;;  %v1043_v60 = vcombine.high %v1041_v22, %v1041_v22  ;;  %v1340_v63 = vmax.f32 %v1042_v49, %v1076_v58 }
 0x147   : > { %v1628_v47 = vmax.f32 %v1308_v61, %v2281_v62  ;;  %v2411_v6 = vpack.c.bf16 %v1627_v51, %v1627_v51  ;;  %v1341_v4 = vmax.f32 %v1041_v22, %v1075_v45  ;;  %v2312_v9 = vrot.slane %v1339_v54, 9 }
 0x148   : > { %v1630_v15 = vmax.f32 %v1310_v3, %v2283_v8  ;;  %v2413_v19 = vpack.c.bf16 %v1629_v10, %v1629_v10  ;;  %v1342_v20 = vmax.f32 %v1043_v60, %v1077_v16  ;;  %v2313_v23 = vrot.slane %v1340_v63, 9 }
 0x149   : > { %v2412_v25 = vpack.c.bf16 %v1628_v47, %v1628_v47  ;;  %v1947_v28 = vunpack.c.l.b16 %v2411_v6  ;;  %v2314_v13 = vrot.slane %v1341_v4, 9  ;;  %v1659_v12 = vmax.f32 %v1339_v54, %v2312_v9 }
 0x14a   : > { %v2414_v24 = vpack.c.bf16 %v1630_v15, %v1630_v15  ;;  %v1949_v33 = vunpack.c.l.b16 %v2413_v19  ;;  %v2315_v50 = vrot.slane %v1342_v20, 9  ;;  %v1660_v59 = vmax.f32 %v1340_v63, %v2313_v23 }
 0x14b   : > { %v1948_v2 = vunpack.c.l.b16 %v2412_v25  ;;  %v1661_v32 = vmax.f32 %v1341_v4, %v2314_v13  ;;  %v2443_v46 = vpack.c.bf16 %v1659_v12, %v1659_v12  ;;  %v821_v14 = vcombine.high %v2930_v41, %v2930_v41 }
 0x14c   : > { %v1950_v45 = vunpack.c.l.b16 %v2414_v24  ;;  %v2032_v53 = vrot.slane %v1949_v33, 6  ;;  %v1662_v58 = vmax.f32 %v1342_v20, %v2315_v50  ;;  %v2444_v11 = vpack.c.bf16 %v1660_v59, %v1660_v59 }
 0x14d   : > { %v2030_v37 = vrot.slane %v1948_v2, 7  ;;  %v2445_v16 = vpack.c.bf16 %v1661_v32, %v1661_v32  ;;  %v1979_v21 = vunpack.c.l.b16 %v2443_v46  ;;  %v822_v18 = vcombine.high %v2934_v56, %v2934_v56 }
 0x14e   : > { %v2034_v1 = vrot.slane %v1950_v45, 5  ;;  %v2446_v57 = vpack.c.bf16 %v1662_v58, %v1662_v58  ;;  %v1980_v17 = vunpack.c.l.b16 %v2444_v11  ;;  %v582_v42 = vmax.f32 %v536_v26, 0.0 }
 0x14f   : > { %v2031_v44 = vsel %vm1996_vm3, %v2030_v37, %v1947_v28  ;;  %v1981_v5 = vunpack.c.l.b16 %v2445_v16  ;;  %v464_v38 = vadd.f32 %v2675_v27, %v2732_v0  ;;  %v528_v61 = vadd.f32 %v2675_v27, %v2734_v7 }
 0x150   : > { %v2033_v36 = vsel %vm1999_vm4, %v2032_v53, %v2031_v44  ;;  %v1982_v43 = vunpack.c.l.b16 %v2446_v57  ;;  %v2086_v3 = vrot.slane %v1980_v17, 7  ;;  %v1078_v31 = vcombine.high %v582_v42, %v582_v42 }
 0x151   : > { %v2088_v22 = vrot.slane %v1981_v5, 6  ;;  %v1085_v49 = vrot.slane %v582_v42, %v2678_v30  ;;  %v564_v62 = vmax.f32 %v464_v38, 0.0  ;;  %v2948_v26 = vsel %vm2002_vm5, %v2034_v1, %v2033_v36 }
 0x152   : > { %v2087_v51 = vsel %vm1996_vm3, %v2086_v3, %v1979_v21  ;;  %v2090_v54 = vrot.slane %v1982_v43, 5  ;;  %v1092_v0 = vrot.slane %v1078_v31, %v2678_v30  ;;  %v580_v8 = vmax.f32 %v528_v61, 0.0 }
 0x153   : > { %v2089_v7 = vsel %vm1999_vm4, %v2088_v22, %v2087_v51  ;;  %v1093_v10 = vcombine.high %v1085_v49, %v1085_v49  ;;  %v772_v60 = vcombine.high %v564_v62, %v564_v62  ;;  %v779_v63 = vrot.slane %v564_v62, %v2678_v30 }
 0x154   : > { %v1094_v47 = vcombine.high %v1092_v0, %v1092_v0  ;;  %v1044_v6 = vcombine.high %v580_v8, %v580_v8  ;;  %v1051_v4 = vrot.slane %v580_v8, %v2678_v30  ;;  %v2091_v9 = vsel %vm2002_vm5, %v2090_v54, %v2089_v7 }
 0x155   : > { %v786_v15 = vrot.slane %v772_v60, %v2678_v30  ;;  %v787_v19 = vcombine.high %v779_v63, %v779_v63  ;;  %v1311_v20 = vmax.f32 %v779_v63, %v2930_v41  ;;  %v485_v23 = vadd.f32 %v2745_v29, %v2675_v27 }
 0x156   : > { %v1058_v25 = vrot.slane %v1044_v6, %v2678_v30  ;;  %v1059_v28 = vcombine.high %v1051_v4, %v1051_v4  ;;  %v1343_v13 = vmax.f32 %v1051_v4, %v1085_v49  ;;  %v549_v12 = vadd.f32 %v2756_v34, %v2675_v27 }
 0x157   : > { %v788_v24 = vcombine.high %v786_v15, %v786_v15  ;;  %v1312_v33 = vmax.f32 %v787_v19, %v821_v14  ;;  %v1313_v50 = vmax.f32 %v786_v15, %v2934_v56  ;;  %v2284_v59 = vrot.slane %v1311_v20, 9 }
 0x158   : > { %v1060_v2 = vcombine.high %v1058_v25, %v1058_v25  ;;  %v1344_v32 = vmax.f32 %v1059_v28, %v1093_v10  ;;  %v1345_v46 = vmax.f32 %v1058_v25, %v1092_v0  ;;  %v2316_v45 = vrot.slane %v1343_v13, 9 }
 0x159   : > { %v1314_v41 = vmax.f32 %v788_v24, %v822_v18  ;;  %v2285_v53 = vrot.slane %v1312_v33, 9  ;;  %v2286_v58 = vrot.slane %v1313_v50, 9  ;;  %v1631_v29 = vmax.f32 %v1311_v20, %v2284_v59 }
 0x15a   : > { %v1346_v11 = vmax.f32 %v1060_v2, %v1094_v47  ;;  %v2317_v37 = vrot.slane %v1344_v32, 9  ;;  %v2318_v16 = vrot.slane %v1345_v46, 9  ;;  %v1663_v21 = vmax.f32 %v1343_v13, %v2316_v45 }
 0x15b   : > { %v2287_v1 = vrot.slane %v1314_v41, 9  ;;  %v1632_v57 = vmax.f32 %v1312_v33, %v2285_v53  ;;  %v1633_v27 = vmax.f32 %v1313_v50, %v2286_v58  ;;  %v2415_v34 = vpack.c.bf16 %v1631_v29, %v1631_v29 }
 0x15c   : > { %v2319_v14 = vrot.slane %v1346_v11, 9  ;;  %v1664_v17 = vmax.f32 %v1344_v32, %v2317_v37  ;;  %v1665_v56 = vmax.f32 %v1345_v46, %v2318_v16  ;;  %v2447_v42 = vpack.c.bf16 %v1663_v21, %v1663_v21 }
 0x15d   : > { %v1634_v44 = vmax.f32 %v1314_v41, %v2287_v1  ;;  %v2416_v5 = vpack.c.bf16 %v1632_v57, %v1632_v57  ;;  %v2417_v38 = vpack.c.bf16 %v1633_v27, %v1633_v27  ;;  %v1951_v61 = vunpack.c.l.b16 %v2415_v34 }
 0x15e   : > { %v1666_v18 = vmax.f32 %v1346_v11, %v2319_v14  ;;  %v2448_v36 = vpack.c.bf16 %v1664_v17, %v1664_v17  ;;  %v2449_v43 = vpack.c.bf16 %v1665_v56, %v1665_v56  ;;  %v1983_v3 = vunpack.c.l.b16 %v2447_v42 }
 0x15f   : > { %v2418_v31 = vpack.c.bf16 %v1634_v44, %v1634_v44  ;;  %v1952_v22 = vunpack.c.l.b16 %v2416_v5  ;;  %v1953_v49 = vunpack.c.l.b16 %v2417_v38  ;;  %v2036_v62 = vrot.slane %v1951_v61, 4 }
 0x160   : > { %v2450_v51 = vpack.c.bf16 %v1666_v18, %v1666_v18  ;;  %v1984_v54 = vunpack.c.l.b16 %v2448_v36  ;;  %v1985_v0 = vunpack.c.l.b16 %v2449_v43  ;;  %v2092_v8 = vrot.slane %v1983_v3, 4 }
 0x161   : > { %v1954_v7 = vunpack.c.l.b16 %v2418_v31  ;;  %v2037_v10 = vsel %vm2005_vm6, %v2036_v62, %v2948_v26  ;;  %v2038_v60 = vrot.slane %v1952_v22, 3  ;;  %v2040_v63 = vrot.slane %v1953_v49, 2  ;;  %v2973_v26 = vld [vmem:[%s3044_s2] ss:$0 sm:$0xff] }
 0x162   : > { %v1986_v47 = vunpack.c.l.b16 %v2450_v51  ;;  %v2093_v6 = vsel %vm2005_vm6, %v2092_v8, %v2091_v9  ;;  %v2094_v4 = vrot.slane %v1984_v54, 3  ;;  %v2096_v15 = vrot.slane %v1985_v0, 2 }
 0x163   : > { %v2039_v19 = vsel %vm2008_vm7, %v2038_v60, %v2037_v10  ;;  %v2042_v20 = vrot.slane %v1954_v7, 1  ;;  %v569_v25 = vmax.f32 %v485_v23, 0.0  ;;  %v585_v28 = vmax.f32 %v549_v12, 0.0 }
 0x164   : > { %v2041_v13 = vsel %vm2011_vm8, %v2040_v63, %v2039_v19  ;;  %v2095_v24 = vsel %vm2008_vm7, %v2094_v4, %v2093_v6  ;;  %v2098_v33 = vrot.slane %v1986_v47, 1  ;;  %v477_v9 = vadd.f32 %v2973_v26, %v2758_v35 }
 0x165   : > { %v2043_v50 = vsel %vm2014_vm9, %v2042_v20, %v2041_v13  ;;  %v2097_v23 = vsel %vm2011_vm8, %v2096_v15, %v2095_v24  ;;  %v857_v12 = vcombine.high %v569_v25, %v569_v25  ;;  %v864_v59 = vrot.slane %v569_v25, %v2678_v30 }
 0x166   : > { %v2116_v2 = vpack.c.b16 %v2043_v50, %v2043_v50  ;;  %v2099_v32 = vsel %vm2014_vm9, %v2098_v33, %v2097_v23  ;;  %v1129_v46 = vcombine.high %v585_v28, %v585_v28  ;;  %v1136_v45 = vrot.slane %v585_v28, %v2678_v30 }
 0x167   : > { %v2120_v41 = vpack.c.b16 %v2099_v32, %v2099_v32  ;;  %v871_v53 = vrot.slane %v857_v12, %v2678_v30  ;;  %v567_v58 = vmax.f32 %v477_v9, 0.0  ;;  %v541_v29 = vadd.f32 %v2973_v26, %v2765_v39 }
 0x168   : > { %2133 = vst.msk [vmem:[%s2817_s30 + $0x8] sm:$0xf] %vm2130_vm10, %v2116_v2  ;;  %v1143_v35 = vrot.slane %v1129_v46, %v2678_v30  ;;  %v488_v11 = vadd.f32 %v2973_v26, %v2767_v40  ;;  %v872_v37 = vcombine.high %v864_v59, %v864_v59  ;;  %v552_v1 = vadd.f32 %v2973_v26, %v2774_v48 }
 0x169   : > { %2137 = vst.msk [vmem:[%s2817_s30 + $0x18] sm:$0xf] %vm2130_vm10, %v2120_v41  ;;  %v823_v16 = vcombine.high %v567_v58, %v567_v58  ;;  %v830_v21 = vrot.slane %v567_v58, %v2678_v30  ;;  %v873_v57 = vcombine.high %v871_v53, %v871_v53  ;;  %v1144_v27 = vcombine.high %v1136_v45, %v1136_v45 }
 0x16a   : > { %v583_v34 = vmax.f32 %v541_v29, 0.0  ;;  %v570_v14 = vmax.f32 %v488_v11, 0.0  ;;  %v1145_v17 = vcombine.high %v1143_v35, %v1143_v35  ;;  %v2997_v5 = vmax.f32 %v552_v1, 0.0 }
 0x16b   : > { %v837_v56 = vrot.slane %v823_v16, %v2678_v30  ;;  %v838_v39 = vcombine.high %v830_v21, %v830_v21  ;;  %v1315_v42 = vmax.f32 %v830_v21, %v864_v59  ;;  %v480_v38 = vadd.f32 %v2973_v26, %v2776_v52 }
 0x16c   : > { %v1095_v44 = vcombine.high %v583_v34, %v583_v34  ;;  %v1102_v40 = vrot.slane %v583_v34, %v2678_v30  ;;  %v874_v22 = vcombine.high %v570_v14, %v570_v14  ;;  %v881_v13 = vrot.slane %v570_v14, %v2678_v30 }
 0x16d   : > { %v839_v61 = vcombine.high %v837_v56, %v837_v56  ;;  %v1316_v18 = vmax.f32 %v838_v39, %v872_v37  ;;  %v1317_v48 = vmax.f32 %v837_v56, %v871_v53  ;;  %v2288_v36 = vrot.slane %v1315_v42, 9 }
 0x16e   : > { %v1109_v43 = vrot.slane %v1095_v44, %v2678_v30  ;;  %v1110_v3 = vcombine.high %v1102_v40, %v1102_v40  ;;  %v1347_v31 = vmax.f32 %v1102_v40, %v1136_v45  ;;  %v888_v2 = vrot.slane %v874_v22, %v2678_v30 }
 0x16f   : > { %v1318_v49 = vmax.f32 %v839_v61, %v873_v57  ;;  %v2289_v62 = vrot.slane %v1316_v18, 9  ;;  %v2290_v51 = vrot.slane %v1317_v48, 9  ;;  %v1635_v54 = vmax.f32 %v1315_v42, %v2288_v36 }
 0x170   : > { %v1111_v0 = vcombine.high %v1109_v43, %v1109_v43  ;;  %v1348_v8 = vmax.f32 %v1110_v3, %v1144_v27  ;;  %v1349_v7 = vmax.f32 %v1109_v43, %v1143_v35  ;;  %v2320_v10 = vrot.slane %v1347_v31, 9 }
 0x171   : > { %v2291_v60 = vrot.slane %v1318_v49, 9  ;;  %v1636_v63 = vmax.f32 %v1316_v18, %v2289_v62  ;;  %v1637_v52 = vmax.f32 %v1317_v48, %v2290_v51  ;;  %v2419_v47 = vpack.c.bf16 %v1635_v54, %v1635_v54 }
 0x172   : > { %v1350_v6 = vmax.f32 %v1111_v0, %v1145_v17  ;;  %v2321_v4 = vrot.slane %v1348_v8, 9  ;;  %v2322_v15 = vrot.slane %v1349_v7, 9  ;;  %v1667_v19 = vmax.f32 %v1347_v31, %v2320_v10 }
 0x173   : > { %v1638_v20 = vmax.f32 %v1318_v49, %v2291_v60  ;;  %v2420_v25 = vpack.c.bf16 %v1636_v63, %v1636_v63  ;;  %v2421_v28 = vpack.c.bf16 %v1637_v52, %v1637_v52  ;;  %v1955_v32 = vunpack.c.l.b16 %v2419_v47 }
 0x174   : > { %v2323_v24 = vrot.slane %v1350_v6, 9  ;;  %v1668_v33 = vmax.f32 %v1348_v8, %v2321_v4  ;;  %v1669_v9 = vmax.f32 %v1349_v7, %v2322_v15  ;;  %v2451_v50 = vpack.c.bf16 %v1667_v19, %v1667_v19 }
 0x175   : > { %v2422_v23 = vpack.c.bf16 %v1638_v20, %v1638_v20  ;;  %v1956_v12 = vunpack.c.l.b16 %v2420_v25  ;;  %v1957_v59 = vunpack.c.l.b16 %v2421_v28  ;;  %v889_v29 = vcombine.high %v881_v13, %v881_v13 }
 0x176   : > { %v1670_v46 = vmax.f32 %v1350_v6, %v2323_v24  ;;  %v2452_v45 = vpack.c.bf16 %v1668_v33, %v1668_v33  ;;  %v2453_v41 = vpack.c.bf16 %v1669_v9, %v1669_v9  ;;  %v1987_v37 = vunpack.c.l.b16 %v2451_v50 }
 0x177   : > { %v1958_v53 = vunpack.c.l.b16 %v2422_v23  ;;  %v2044_v58 = vrot.slane %v1956_v12, 7  ;;  %v2046_v35 = vrot.slane %v1957_v59, 6  ;;  %v1146_v27 = vcombine.high %v2997_v5, %v2997_v5 }
 0x178   : > { %v2454_v11 = vpack.c.bf16 %v1670_v46, %v1670_v46  ;;  %v1988_v16 = vunpack.c.l.b16 %v2452_v45  ;;  %v1989_v21 = vunpack.c.l.b16 %v2453_v41  ;;  %v568_v34 = vmax.f32 %v480_v38, 0.0 }
 0x179   : > { %v2045_v1 = vsel %vm1996_vm3, %v2044_v58, %v1955_v32  ;;  %v2048_v57 = vrot.slane %v1958_v53, 5  ;;  %v890_v42 = vcombine.high %v888_v2, %v888_v2  ;;  %v1153_v44 = vrot.slane %v2997_v5, %v2678_v30 }
 0x17a   : > { %v2047_v14 = vsel %vm1999_vm4, %v2046_v35, %v2045_v1  ;;  %v1990_v17 = vunpack.c.l.b16 %v2454_v11  ;;  %v2100_v56 = vrot.slane %v1988_v16, 7  ;;  %v2102_v39 = vrot.slane %v1989_v21, 6 }
 0x17b   : > { %v840_v40 = vcombine.high %v568_v34, %v568_v34  ;;  %v847_v61 = vrot.slane %v568_v34, %v2678_v30  ;;  %v2049_v36 = vsel %vm2002_vm5, %v2048_v57, %v2047_v14  ;;  %v544_v38 = vadd.f32 %v2973_v26, %v2784_v55 }
 0x17c   : > { %v2101_v18 = vsel %vm1996_vm3, %v2100_v56, %v1987_v37  ;;  %v2104_v48 = vrot.slane %v1990_v17, 5  ;;  %v1160_v3 = vrot.slane %v1146_v27, %v2678_v30  ;;  %v1161_v8 = vcombine.high %v1153_v44, %v1153_v44 }
 0x17d   : > { %v2103_v43 = vsel %vm1999_vm4, %v2102_v39, %v2101_v18  ;;  %v854_v31 = vrot.slane %v840_v40, %v2678_v30  ;;  %v855_v22 = vcombine.high %v847_v61, %v847_v61  ;;  %v1319_v49 = vmax.f32 %v847_v61, %v881_v13 }
 0x17e   : > { %v584_v5 = vmax.f32 %v544_v38, 0.0  ;;  %v2105_v62 = vsel %vm2002_vm5, %v2104_v48, %v2103_v43  ;;  %v1162_v55 = vcombine.high %v1160_v3, %v1160_v3 }
 0x17f   : > { %v856_v51 = vcombine.high %v854_v31, %v854_v31  ;;  %v1320_v54 = vmax.f32 %v855_v22, %v889_v29  ;;  %v1321_v0 = vmax.f32 %v854_v31, %v888_v2  ;;  %v2292_v7 = vrot.slane %v1319_v49, 9 }
 0x180   : > { %v1112_v10 = vcombine.high %v584_v5, %v584_v5  ;;  %v1119_v60 = vrot.slane %v584_v5, %v2678_v30 }
 0x181   : > { %v1322_v26 = vmax.f32 %v856_v51, %v890_v42  ;;  %v2293_v63 = vrot.slane %v1320_v54, 9  ;;  %v2294_v52 = vrot.slane %v1321_v0, 9  ;;  %v1639_v47 = vmax.f32 %v1319_v49, %v2292_v7 }
 0x182   : > { %v1126_v6 = vrot.slane %v1112_v10, %v2678_v30  ;;  %v1127_v4 = vcombine.high %v1119_v60, %v1119_v60  ;;  %v1351_v15 = vmax.f32 %v1119_v60, %v1153_v44 }
 0x183   : > { %v2295_v19 = vrot.slane %v1322_v26, 9  ;;  %v1640_v20 = vmax.f32 %v1320_v54, %v2293_v63  ;;  %v1641_v25 = vmax.f32 %v1321_v0, %v2294_v52  ;;  %v2423_v28 = vpack.c.bf16 %v1639_v47, %v1639_v47 }
 0x184   : > { %v1128_v13 = vcombine.high %v1126_v6, %v1126_v6  ;;  %v1352_v24 = vmax.f32 %v1127_v4, %v1161_v8  ;;  %v1353_v33 = vmax.f32 %v1126_v6, %v1160_v3  ;;  %v2324_v12 = vrot.slane %v1351_v15, 9 }
 0x185   : > { %v1642_v9 = vmax.f32 %v1322_v26, %v2295_v19  ;;  %v2424_v50 = vpack.c.bf16 %v1640_v20, %v1640_v20  ;;  %v2425_v23 = vpack.c.bf16 %v1641_v25, %v1641_v25  ;;  %v1959_v59 = vunpack.c.l.b16 %v2423_v28 }
 0x186   : > { %v1354_v2 = vmax.f32 %v1128_v13, %v1162_v55  ;;  %v2325_v32 = vrot.slane %v1352_v24, 9  ;;  %v2326_v46 = vrot.slane %v1353_v33, 9  ;;  %v1671_v53 = vmax.f32 %v1351_v15, %v2324_v12 }
 0x187   : > { %v2426_v45 = vpack.c.bf16 %v1642_v9, %v1642_v9  ;;  %v1960_v41 = vunpack.c.l.b16 %v2424_v50  ;;  %v1961_v30 = vunpack.c.l.b16 %v2425_v23  ;;  %v2050_v58 = vrot.slane %v1959_v59, 4 }
 0x188   : > { %v2327_v35 = vrot.slane %v1354_v2, 9  ;;  %v1672_v29 = vmax.f32 %v1352_v24, %v2325_v32  ;;  %v1673_v11 = vmax.f32 %v1353_v33, %v2326_v46  ;;  %v2455_v1 = vpack.c.bf16 %v1671_v53, %v1671_v53 }
 0x189   : > { %v1962_v37 = vunpack.c.l.b16 %v2426_v45  ;;  %v2052_v16 = vrot.slane %v1960_v41, 3  ;;  %v2054_v21 = vrot.slane %v1961_v30, 2  ;;  %v2051_v57 = vsel %vm2005_vm6, %v2050_v58, %v2049_v36 }
 0x18a   : > { %v1674_v27 = vmax.f32 %v1354_v2, %v2327_v35  ;;  %v2456_v34 = vpack.c.bf16 %v1672_v29, %v1672_v29  ;;  %v2457_v14 = vpack.c.bf16 %v1673_v11, %v1673_v11  ;;  %v1991_v39 = vunpack.c.l.b16 %v2455_v1 }
 0x18b   : > { %v2053_v17 = vsel %vm2008_vm7, %v2052_v16, %v2051_v57  ;;  %v2056_v56 = vrot.slane %v1962_v37, 1 }
 0x18c   : > { %v2055_v42 = vsel %vm2011_vm8, %v2054_v21, %v2053_v17  ;;  %v2458_v44 = vpack.c.bf16 %v1674_v27, %v1674_v27  ;;  %v1992_v40 = vunpack.c.l.b16 %v2456_v34  ;;  %v1993_v61 = vunpack.c.l.b16 %v2457_v14 }
 0x18d   : > { %v2057_v18 = vsel %vm2014_vm9, %v2056_v56, %v2055_v42  ;;  %v2106_v48 = vrot.slane %v1991_v39, 4 }
 0x18e   : > { %v2117_v38 = vpack.c.b16 %v2057_v18, %v2057_v18  ;;  %v1994_v43 = vunpack.c.l.b16 %v2458_v44  ;;  %v2108_v36 = vrot.slane %v1992_v40, 3  ;;  %v2110_v31 = vrot.slane %v1993_v61, 2 }
 0x18f   : > { %v2107_v3 = vsel %vm2005_vm6, %v2106_v48, %v2105_v62 }
 0x190   : > { %2134 = vst.msk [vmem:[%s2817_s30 + $0xc] sm:$0xf] %vm2130_vm10, %v2117_v38  ;;  %v2109_v22 = vsel %vm2008_vm7, %v2108_v36, %v2107_v3  ;;  %v2112_v49 = vrot.slane %v1994_v43, 1 }
 0x191   : > { %v2111_v5 = vsel %vm2011_vm8, %v2110_v31, %v2109_v22 }
 0x192   : > { %v2113_v51 = vsel %vm2014_vm9, %v2112_v49, %v2111_v5 }
 0x193   : > { %v2121_v54 = vpack.c.b16 %v2113_v51, %v2113_v51 }
 0x195   : > { %2138 = vst.msk [vmem:[%s2817_s30 + $0x1c] sm:$0xf] %vm2130_vm10, %v2121_v54 }
 0x196 PF: > { %s13_s14 = sadd.s32 1, %s2584_s14   ;;  %s3046_s12 = smov %s2580_s13 }
 0x197   : > { %p10_p6 = scmp.ge.s32.totalorder %s13_s14, 6   ;;  %s3047_s13 = smov %s3049_s15 }
 0x199   :  { %12 = sbr.rel (!%p10_p6) target bundleno = 2 (0x2), region = 62 }

// kernel: siamese_forward.4
= control target key start
LH: loop header
LB: loop body
LE: loop exit
PB: predicated region body
PF: predicated region fallthrough
CT: control target
= control target key end

     0   :  { %s3282_s12 = smov 0   ;;  %s3922_s0 = inlined_call_operand.vmem [shape: bf16[4,10,10,64], index: 0, kind: input, shape index: {}]   ;;  %s3923_s1 = inlined_call_operand.vmem [shape: bf16[9,64,128], index: 1, kind: input, shape index: {}]   ;;  %s3924_s2 = inlined_call_operand.vmem [shape: f32[1,128], index: 2, kind: input, shape index: {}]   ;;  %s3925_s3 = inlined_call_operand.vmem [shape: bf16[4,4,4,128], index: 3, kind: output, shape index: {}]  }
   0x1 LB: > { %s2615_s13 = sadd.s32 4294967295, %s3259_s12   ;;  %p2619_p0 = scmp.ge.s32.totalorder %s3259_s12, 1  ;;  %s3259_s12 = sphi %s3282_s12, %s13_s12  }
   0x2   : > { %p137_p1 = scmp.lt.s32.totalorder %s3259_s12, 5 }
   0x4   : > { %p138_p2 = pnand %p2619_p0, %p137_p1 }
   0x5   : > { %v3205_v0 = vld [vmem:[%s3923_s1 + $0x20] sm:$0xff] (!%p138_p2)   ;;  %p161_p3 = scmp.lt.s32.totalorder (!%p138_p2), %s2615_s13, 3  ;;  %v3207_v2 = vld [vmem:[%s3923_s1 + $0x28] sm:$0xff] (!%p138_p2)   ;;  %v3209_v4 = vld [vmem:[%s3923_s1 + $0x30] sm:$0xff] (!%p138_p2)   ;;  %vm196_vm0 = vsmask.f32 (!%p138_p2), 3328 }
   0x6   : > { %141 = sbr.rel (%p138_p2) target bundleno = 386 (0x182), region = 32  ;;  %v3206_v1 = vld [vmem:[%s3923_s1 + $0x80] sm:$0xff] (!%p138_p2)   ;;  %2979 = vmatprep.subr.bf16.mxu1 (!%p138_p2), %v3205_v0  ;;  %v3208_v3 = vld [vmem:[%s3923_s1 + $0x88] sm:$0xff] (!%p138_p2)   ;;  %v3210_v5 = vld [vmem:[%s3923_s1 + $0x90] sm:$0xff] (!%p138_p2)   ;;  %vm197_vm1 = vsmask.f32 (!%p138_p2), 7440 }
   0x7   : > { %3043 = vmatprep.subr.bf16.mxu0 (!%p138_p2), %v3206_v1  ;;  %2980 = vmatpush3.bf16.msra.mxu1 (!%p138_p2), %v3205_v0  ;;  %v3211_v6 = vld [vmem:[%s3923_s1 + $0x38] sm:$0xff] (!%p138_p2)   ;;  %v3343_v22 = vld [vmem:[%s3923_s1] sm:$0xff] (!%p138_p2)   ;;  %vm3360_vm2 = vmor (!%p138_p2), %vm196_vm0, %vm197_vm1  ;;  %vm356_vm3 = vcmask (!%p138_p2), 523264   ;;  %vm579_vm4 = vcmask (!%p138_p2), 1042432   ;;  %vm580_vm5 = vcmask (!%p138_p2), 1046532   ;;  %vm2494_vm7 = vcmask (!%p138_p2), 1041409  }
   0x8   : > { %3044 = vmatpush3.bf16.msra.mxu0 (!%p138_p2), %v3206_v1  ;;  %2981 = vmatprep.subr.bf16.mxu1 (!%p138_p2), %v3207_v2  ;;  %v3212_v10 = vld [vmem:[%s3923_s1 + $0x98] sm:$0xff] (!%p138_p2)   ;;  %v3348_v23 = vld [vmem:[%s3923_s1 + $0xa0] sm:$0xff] (!%p138_p2)   ;;  %vm3521_vm6 = vmor (!%p138_p2), %vm579_vm4, %vm580_vm5  ;;  %vm2497_vm8 = vcmask (!%p138_p2), 1042434   ;;  %vm2500_vm9 = vcmask (!%p138_p2), 1043459  }
   0x9   : > { %3045 = vmatprep.subr.bf16.mxu0 (!%p138_p2), %v3208_v3 }
   0xb   : > { %2982 = vmatpush3.bf16.msra.mxu1 (!%p138_p2), %v3207_v2 }
   0xc   : > { %3046 = vmatpush3.bf16.msra.mxu0 (!%p138_p2), %v3208_v3  ;;  %2983 = vmatprep.subr.bf16.mxu1 (!%p138_p2), %v3209_v4 }
   0xd   : > { %s3931_s13 = smov (!%p161_p3, %s2615_s13), 3  ;;  %3047 = vmatprep.subr.bf16.mxu0 %v3210_v5 }
   0xe   : > { %s3195_s24 = smul.u32 80, %s3931_s13  ;;  %s2906_s18 = sshll.u32 %s3931_s13, 3 }
   0xf   : > { %2984 = vmatpush3.bf16.msra.mxu1 %v3209_v4  ;;  %s3873_s20 = scalar_lea.vmem %s3925_s3, %s2906_s18 }
  0x10   : > { %s3314_s29 = scalar_lea.vmem %s3922_s0, %s3195_s24  ;;  %3048 = vmatpush3.bf16.msra.mxu0 %v3210_v5  ;;  %2985 = vmatprep.subr.bf16.mxu1 %v3211_v6 }
  0x11   : > { %v3320_v7 = vld [vmem:[%s3314_s29] sm:$0xf]  ;;  %v3323_v8 = vld [vmem:[%s3314_s29 + $0x8] sm:$0xf]  ;;  %v3326_v9 = vld [vmem:[%s3314_s29 + $0x4] sm:$0x1]  ;;  %3049 = vmatprep.subr.bf16.mxu0 %v3212_v10 }
  0x12   : > { %v3332_v11 = vld [vmem:[%s3314_s29 + $0xc] sm:$0x1]  ;;  %v200_v12 = vshrl.u32 %v3320_v7, 16  ;;  %v203_v13 = vshll.u32 %v3320_v7, 16  ;;  %v209_v14 = vshll.u32 %v3326_v9, 16  ;;  %v214_v15 = vshrl.u32 %v3323_v8, 16 }
  0x13   : > { %v217_v16 = vshll.u32 %v3323_v8, 16  ;;  %v223_v17 = vshll.u32 %v3332_v11, 16  ;;  %v2711_v26 = vld [vmem:[%s3314_s29 + $0x8] sm:$0xf]  ;;  %v3352_v27 = vld [vmem:[%s3314_s29 + $0xc] sm:$0x1]  ;;  %2986 = vmatpush3.bf16.msra.mxu1 %v3211_v6 }
  0x14   : > { %v202_v18 = vrot.slane %v200_v12, 4  ;;  %v205_v19 = vrot.slane %v203_v13, 5  ;;  %v211_v20 = vrot.slane %v209_v14, 5  ;;  %v216_v21 = vrot.slane %v214_v15, 4  ;;  %v2713_v29 = vld [vmem:[%s3314_s29 + $0x10] sm:$0xf]  ;;  %3050 = vmatpush3.bf16.msra.mxu0 %v3212_v10  ;;  %2995 = vmatprep.subr.bf16.mxu1 %v3343_v22 }
  0x15   : > { %v219_v24 = vrot.slane %v217_v16, 5  ;;  %v225_v25 = vrot.slane %v223_v17, 5  ;;  %v3356_v30 = vld [vmem:[%s3314_s29 + $0x14] sm:$0x1]  ;;  %v908_v31 = vshrl.u32 %v2711_v26, 16  ;;  %v911_v32 = vshll.u32 %v2711_v26, 16  ;;  %3059 = vmatprep.subr.bf16.mxu0 %v3348_v23 }
  0x16   : > { %v206_v28 = vor.u32 %v205_v19, %v202_v18  ;;  %v917_v35 = vshll.u32 %v3352_v27, 16  ;;  %v922_v36 = vshrl.u32 %v2713_v29, 16  ;;  %v925_v37 = vshll.u32 %v2713_v29, 16  ;;  %v3369_v45 = vld [vmem:[%s3314_s29 + $0x10] sm:$0xf] }
  0x17   : > { %v220_v34 = vor.u32 %v219_v24, %v216_v21  ;;  %v910_v39 = vrot.slane %v908_v31, 4  ;;  %v913_v40 = vrot.slane %v911_v32, 5  ;;  %v931_v41 = vshll.u32 %v3356_v30, 16  ;;  %v3374_v49 = vld [vmem:[%s3314_s29 + $0x18] sm:$0xf] }
  0x18   : > { %v207_v38 = vrot.slane %v206_v28, 4  ;;  %v924_v43 = vrot.slane %v922_v36, 4  ;;  %v927_v44 = vrot.slane %v925_v37, 5  ;;  %v919_v48 = vrot.slane %v917_v35, 5  ;;  %v3377_v50 = vld [vmem:[%s3314_s29 + $0x14] sm:$0x1] }
  0x19   : > { %v221_v42 = vrot.slane %v220_v34, 4  ;;  %v914_v47 = vor.u32 %v913_v40, %v910_v39  ;;  %v933_v53 = vrot.slane %v931_v41, 5  ;;  %v3382_v54 = vld [vmem:[%s3314_s29 + $0x1c] sm:$0x1]  ;;  %v228_v55 = vshrl.u32 %v3369_v45, 16  ;;  %v3215_v39 = vld [vmem:[%s3923_s1 + $0x8] sm:$0xff]  }
  0x1a   : > { %v212_v46 = vsel %vm3360_vm2, %v207_v38, %v211_v20  ;;  %v928_v52 = vor.u32 %v927_v44, %v924_v43  ;;  %v231_v58 = vshll.u32 %v3369_v45, 16  ;;  %v237_v59 = vshll.u32 %v3377_v50, 16  ;;  %v2715_v0 = vld [vmem:[%s3314_s29 + $0x18] sm:$0xf]  ;;  %v3395_v4 = vld [vmem:[%s3314_s29 + $0x1c] sm:$0x1] }
  0x1b   : > { %v226_v51 = vsel %vm3360_vm2, %v221_v42, %v225_v25  ;;  %v915_v57 = vrot.slane %v914_v47, 4  ;;  %v230_v61 = vrot.slane %v228_v55, 4  ;;  %v242_v62 = vshrl.u32 %v3374_v49, 16  ;;  %v2717_v5 = vld [vmem:[%s3314_s29 + $0x20] sm:$0xf] }
  0x1c   : > { %v2631_v56 = vcombine.low %v212_v46, %v226_v51  ;;  %v929_v60 = vrot.slane %v928_v52, 4  ;;  %v245_v63 = vshll.u32 %v3374_v49, 16  ;;  %v233_v2 = vrot.slane %v231_v58, 5  ;;  %v3401_v13 = vld [vmem:[%s3314_s29 + $0x24] sm:$0x1] }
  0x1d   : > { %v920_v1 = vsel %vm3360_vm2, %v915_v57, %v919_v48  ;;  %v251_v3 = vshll.u32 %v3382_v54, 16  ;;  %v244_v10 = vrot.slane %v242_v62, 4  ;;  %v239_v16 = vrot.slane %v237_v59, 5  ;;  %v3408_v35 = vld [vmem:[%s3314_s29 + $0x20] sm:$0xf] }
  0x1e   : > { %2987 = vmatprep.mubr.msk.bf16.mxu1 %vm356_vm3, %v2631_v56  ;;  %v934_v6 = vsel %vm3360_vm2, %v929_v60, %v933_v53  ;;  %v247_v12 = vrot.slane %v245_v63, 5  ;;  %v234_v15 = vor.u32 %v233_v2, %v230_v61  ;;  %v936_v19 = vshrl.u32 %v2715_v0, 16  ;;  %v3416_v40 = vld [vmem:[%s3314_s29 + $0x28] sm:$0xf]  ;;  %v3419_v41 = vld [vmem:[%s3314_s29 + $0x24] sm:$0x1] }
  0x1f   : > { %v2735_v14 = vcombine.low %v920_v1, %v934_v6  ;;  %v253_v17 = vrot.slane %v251_v3, 5  ;;  %v939_v20 = vshll.u32 %v2715_v0, 16  ;;  %v945_v21 = vshll.u32 %v3395_v4, 16  ;;  %v3424_v47 = vld [vmem:[%s3314_s29 + $0x2c] sm:$0x1] }
  0x20   : > { %v248_v18 = vor.u32 %v247_v12, %v244_v10  ;;  %v235_v24 = vrot.slane %v234_v15, 4  ;;  %v950_v25 = vshrl.u32 %v2717_v5, 16  ;;  %v953_v26 = vshll.u32 %v2717_v5, 16  ;;  %v2719_v55 = vld [vmem:[%s3314_s29 + $0x28] sm:$0xf]  ;;  %v3217_v10 = vld [vmem:[%s3923_s1 + $0x10] sm:$0xff]  }
  0x21   : > { %3051 = vmatprep.mubr.msk.bf16.mxu0 %vm356_vm3, %v2735_v14  ;;  %v959_v28 = vshll.u32 %v3401_v13, 16  ;;  %v1175_v29 = vrot.slane %v3352_v27, 5  ;;  %v938_v32 = vrot.slane %v936_v19, 4  ;;  %v941_v34 = vrot.slane %v939_v20, 5  ;;  %v3433_v60 = vld [vmem:[%s3314_s29 + $0x2c] sm:$0x1] }
  0x22   : > { %v249_v31 = vrot.slane %v248_v18, 4  ;;  %v240_v36 = vsel %vm3360_vm2, %v235_v24, %v239_v16  ;;  %v952_v37 = vrot.slane %v950_v25, 4  ;;  %v955_v38 = vrot.slane %v953_v26, 5  ;;  %v2721_v1 = vld [vmem:[%s3314_s29 + $0x30] sm:$0xf]  ;;  %v3216_v18 = vld [vmem:[%s3923_s1 + $0xa8] sm:$0xff]  }
  0x23   : > { %v942_v43 = vor.u32 %v941_v34, %v938_v32  ;;  %v947_v44 = vrot.slane %v945_v21, 5  ;;  %v961_v46 = vrot.slane %v959_v28, 5  ;;  %v256_v52 = vshrl.u32 %v3408_v35, 16  ;;  %v3445_v12 = vld [vmem:[%s3314_s29 + $0x34] sm:$0x1] }
  0x24   : > { %v254_v42 = vsel %vm3360_vm2, %v249_v31, %v253_v17  ;;  %v956_v51 = vor.u32 %v955_v38, %v952_v37  ;;  %v259_v53 = vshll.u32 %v3408_v35, 16  ;;  %v265_v57 = vshll.u32 %v3419_v41, 16  ;;  %v3454_v24 = vld [vmem:[%s3314_s29 + $0x30] sm:$0xf] }
  0x25   : > { %v2632_v48 = vcombine.low %v240_v36, %v254_v42  ;;  %v943_v56 = vrot.slane %v942_v43, 4  ;;  %v270_v58 = vshrl.u32 %v3416_v40, 16  ;;  %v273_v59 = vshll.u32 %v3416_v40, 16  ;;  %v3218_v38 = vld [vmem:[%s3923_s1 + $0xb0] sm:$0xff]  }
  0x26   : > { %v957_v61 = vrot.slane %v956_v51, 4  ;;  %v258_v62 = vrot.slane %v256_v52, 4  ;;  %v261_v63 = vrot.slane %v259_v53, 5  ;;  %v279_v0 = vshll.u32 %v3424_v47, 16  ;;  %v3462_v42 = vld [vmem:[%s3314_s29 + $0x34] sm:$0x1] }
  0x27   : > { %2988 = vmatmul.mubr.msk.bf16.vlgmr.msra.gmra.mrb[0].mxu1 %vm356_vm3, %v2632_v48  ;;  %v948_v2 = vsel %vm3360_vm2, %v943_v56, %v947_v44  ;;  %v267_v3 = vrot.slane %v265_v57, 5  ;;  %v272_v5 = vrot.slane %v270_v58, 4  ;;  %v275_v6 = vrot.slane %v273_v59, 5  ;;  %v3219_v51 = vld [vmem:[%s3923_s1 + $0x18] sm:$0xff]  }
  0x28   : > { %2996 = vmatpush3.bf16.msra.mxu1 %v3343_v22  ;;  %v962_v14 = vsel %vm3360_vm2, %v957_v61, %v961_v46  ;;  %v262_v15 = vor.u32 %v261_v63, %v258_v62  ;;  %v281_v16 = vrot.slane %v279_v0, 5  ;;  %v964_v22 = vshrl.u32 %v2719_v55, 16  ;;  %v3468_v46 = vld [vmem:[%s3314_s29 + $0x38] sm:$0xf]  ;;  %v3483_v63 = vld [vmem:[%s3314_s29 + $0x3c] sm:$0x1] }
  0x29   : > { %2997 = vmatprep.subr.bf16.mxu1 %v3215_v39  ;;  %v2736_v17 = vcombine.low %v948_v2, %v962_v14  ;;  %v276_v19 = vor.u32 %v275_v6, %v272_v5  ;;  %v967_v20 = vshll.u32 %v2719_v55, 16  ;;  %v973_v21 = vshll.u32 %v3433_v60, 16  ;;  %v3477_v55 = vld [vmem:[%s3314_s29 + $0x3c] sm:$0x1]  ;;  %v2723_v57 = vld [vmem:[%s3314_s29 + $0x38] sm:$0xf] }
  0x2a   : > { %v263_v25 = vrot.slane %v262_v15, 4  ;;  %v966_v26 = vrot.slane %v964_v22, 4  ;;  %v978_v28 = vshrl.u32 %v2721_v1, 16  ;;  %v981_v31 = vshll.u32 %v2721_v1, 16  ;;  %v3488_v0 = vld [vmem:[%s3923_s1 + $0x40] sm:$0xff]   ;;  %v3220_v15 = vld [vmem:[%s3923_s1 + $0xb8] sm:$0xff]  }
  0x2b   : > { %3052 = vmatmul.mubr.msk.bf16.vlgmr.msra.gmra.mrb[0].mxu0 %vm356_vm3, %v2736_v17  ;;  %v277_v32 = vrot.slane %v276_v19, 4  ;;  %v969_v34 = vrot.slane %v967_v20, 5  ;;  %v975_v36 = vrot.slane %v973_v21, 5  ;;  %v987_v37 = vshll.u32 %v3445_v12, 16  ;;  %v2725_v6 = vld [vmem:[%s3314_s29 + $0x40] sm:$0xf] }
  0x2c   : > { %2998 = vmatpush3.bf16.msra.mxu1 %v3215_v39  ;;  %3060 = vmatpush3.bf16.msra.mxu0 %v3348_v23  ;;  %v268_v39 = vsel %vm3360_vm2, %v263_v25, %v267_v3  ;;  %v980_v43 = vrot.slane %v978_v28, 4  ;;  %v983_v44 = vrot.slane %v981_v31, 5  ;;  %v284_v48 = vshrl.u32 %v3454_v24, 16  ;;  %v3494_v14 = vld [vmem:[%s3314_s29 + $0x44] sm:$0x1] }
  0x2d   : > { %2999 = vmatprep.subr.bf16.mxu1 %v3217_v10  ;;  %3061 = vmatprep.subr.bf16.mxu0 %v3216_v18  ;;  %v282_v52 = vsel %vm3360_vm2, %v277_v32, %v281_v16  ;;  %v970_v23 = vor.u32 %v969_v34, %v966_v26  ;;  %v989_v53 = vrot.slane %v987_v37, 5  ;;  %v287_v56 = vshll.u32 %v3454_v24, 16 }
  0x2e   : > { %v2633_v58 = vcombine.low %v268_v39, %v282_v52  ;;  %v984_v59 = vor.u32 %v983_v44, %v980_v43  ;;  %v286_v61 = vrot.slane %v284_v48, 4  ;;  %v293_v62 = vshll.u32 %v3462_v42, 16  ;;  %v2747_v43 = vld [vmem:[%s3314_s29 + $0x8] sm:$0xe] }
  0x2f   : > { %v971_v1 = vrot.slane %v970_v23, 4  ;;  %v289_v2 = vrot.slane %v287_v56, 5  ;;  %v298_v3 = vshrl.u32 %v3468_v46, 16  ;;  %v301_v5 = vshll.u32 %v3468_v46, 16 }
  0x30   : > { %3000 = vmatpush3.bf16.msra.mxu1 %v3217_v10  ;;  %3062 = vmatpush3.bf16.msra.mxu0 %v3216_v18  ;;  %v985_v16 = vrot.slane %v984_v59, 4  ;;  %v295_v22 = vrot.slane %v293_v62, 5  ;;  %v307_v17 = vshll.u32 %v3477_v55, 16  ;;  %v992_v19 = vshrl.u32 %v2723_v57, 16 }
  0x31   : > { %2991 = vmatprep.mubr.msk.bf16.mxu1 %vm356_vm3, %v2633_v58  ;;  %v976_v20 = vsel %vm3360_vm2, %v971_v1, %v975_v36  ;;  %3063 = vmatprep.subr.bf16.mxu0 %v3218_v38  ;;  %v290_v10 = vor.u32 %v289_v2, %v286_v61  ;;  %v300_v21 = vrot.slane %v298_v3, 4  ;;  %v303_v25 = vrot.slane %v301_v5, 5  ;;  %v2748_v36 = vld [vmem:[%s3314_s29 + $0x10] sm:$0xe]  ;;  %v3517_v58 = vld [vmem:[%s3923_s1 + $0xc0] sm:$0xff]  }
  0x32   : > { %3001 = vmatprep.subr.bf16.mxu1 %v3219_v51  ;;  %v990_v18 = vsel %vm3360_vm2, %v985_v16, %v989_v53  ;;  %v309_v26 = vrot.slane %v307_v17, 5  ;;  %v994_v28 = vrot.slane %v992_v19, 4  ;;  %v995_v31 = vshll.u32 %v2723_v57, 16  ;;  %v2749_v1 = vld [vmem:[%s3314_s29 + $0x18] sm:$0xe] }
  0x33   : > { %v2737_v32 = vcombine.low %v976_v20, %v990_v18  ;;  %v291_v34 = vrot.slane %v290_v10, 4  ;;  %v304_v37 = vor.u32 %v303_v25, %v300_v21  ;;  %v1001_v39 = vshll.u32 %v3483_v63, 16  ;;  %v2752_v25 = vld [vmem:[%s3314_s29 + $0x30] sm:$0xe] }
  0x34   : > { %3002 = vmatpush3.bf16.msra.mxu1 %v3219_v51  ;;  %v997_v44 = vrot.slane %v995_v31, 5  ;;  %v1006_v48 = vshrl.u32 %v2725_v6, 16  ;;  %v1009_v52 = vshll.u32 %v2725_v6, 16  ;;  %v1015_v23 = vshll.u32 %v3494_v14, 16  ;;  %3064 = vmatpush3.bf16.msra.mxu0 %v3218_v38  ;;  %v2750_v6 = vld [vmem:[%s3314_s29 + $0x20] sm:$0xe] }
  0x35   : > { %3011 = vmatprep.subr.bf16.mxu1 %v3488_v0  ;;  %v1179_v53 = vrot.slane %v3356_v30, 5  ;;  %3055 = vmatprep.mubr.msk.bf16.mxu0 %vm356_vm3, %v2737_v32  ;;  %v296_v56 = vsel %vm3360_vm2, %v291_v34, %v295_v22  ;;  %v305_v51 = vrot.slane %v304_v37, 4  ;;  %v2755_v57 = vrot.slane %v2747_v43, 9  ;;  %v2753_v43 = vld [vmem:[%s3314_s29 + $0x38] sm:$0xe] }
  0x36   : > { %3065 = vmatprep.subr.bf16.mxu0 %v3220_v15  ;;  %v998_v59 = vor.u32 %v997_v44, %v994_v28  ;;  %v1003_v38 = vrot.slane %v1001_v39, 5  ;;  %v1008_v61 = vrot.slane %v1006_v48, 4  ;;  %v1011_v62 = vrot.slane %v1009_v52, 5  ;;  %v555_v48 = vld [vmem:[%s3314_s29] sm:$0xe] }
  0x37   : > { %v310_v2 = vsel %vm3360_vm2, %v305_v51, %v309_v26  ;;  %v2643_v3 = vcombine.low %v3320_v7, %v3323_v8  ;;  %v2756_v5 = vrot.slane %v2748_v36, 9  ;;  %v1017_v19 = vrot.slane %v1015_v23, 5  ;;  %v2754_v36 = vld [vmem:[%s3314_s29 + $0x40] sm:$0xe]  ;;  %v556_v52 = vld [vmem:[%s3314_s29 + $0x8] sm:$0xe] }
  0x38   : > { %v2634_v16 = vcombine.low %v296_v56, %v310_v2  ;;  %v999_v22 = vrot.slane %v998_v59, 4  ;;  %v1012_v17 = vor.u32 %v1011_v62, %v1008_v61  ;;  %3066 = vmatpush3.bf16.msra.mxu0 %v3220_v15  ;;  %v584_v20 = vrot.slane %v3326_v9, 5  ;;  %v3228_v56 = vld [vmem:[%s3923_s1 + $0x50] sm:$0xff]  }
  0x39   : > { %v1183_v10 = vrot.slane %v3395_v4, 5  ;;  %v1176_v21 = vsel %vm3521_vm6, %v2755_v57, %v1175_v29  ;;  %v1180_v7 = vsel %vm3521_vm6, %v2756_v5, %v1179_v53  ;;  %3075 = vmatprep.subr.bf16.mxu0 %v3517_v58  ;;  %v1187_v8 = vrot.slane %v3401_v13, 5  ;;  %v2751_v4 = vld [vmem:[%s3314_s29 + $0x28] sm:$0xe] }
  0x3a   : > { %2992 = vmatmul.mubr.msk.bf16.gmra.mrb[4].mxu1 %vm356_vm3, %v2634_v16  ;;  %v1004_v15 = vsel %vm3360_vm2, %v999_v22, %v1003_v38  ;;  %v1013_v9 = vrot.slane %v1012_v17, 4  ;;  %v2757_v27 = vrot.slane %v2749_v1, 9  ;;  %v2758_v29 = vrot.slane %v2750_v6, 9  ;;  %v557_v38 = vld [vmem:[%s3314_s29 + $0x10] sm:$0xe] }
  0x3b   : > { %3003 = vmatprep.mubr.msk.bf16.mxu1 %vm356_vm3, %v2643_v3  ;;  %v588_v18 = vrot.slane %v3332_v11, 5  ;;  %v2771_v26 = vcombine.low %v1176_v21, %v1180_v7  ;;  %v1191_v28 = vrot.slane %v3433_v60, 5  ;;  %v2759_v32 = vrot.slane %v2751_v4, 9  ;;  %v3225_v11 = vld [vmem:[%s3923_s1 + $0x48] sm:$0xff]   ;;  %v558_v1 = vld [vmem:[%s3314_s29 + $0x18] sm:$0xe] }
  0x3c   : > { %v1018_v13 = vsel %vm3360_vm2, %v1013_v9, %v1017_v19  ;;  %v2760_v34 = vrot.slane %v2752_v25, 9  ;;  %v1195_v37 = vrot.slane %v3445_v12, 5  ;;  %v2644_v39 = vcombine.low %v3369_v45, %v3374_v49  ;;  %v3231_v3 = vld [vmem:[%s3923_s1 + $0x58] sm:$0xff]   ;;  %v559_v17 = vld [vmem:[%s3314_s29 + $0x20] sm:$0xe] }
  0x3d   : > { %v2738_v31 = vcombine.low %v1004_v15, %v1018_v13  ;;  %v1184_v44 = vsel %vm3521_vm6, %v2757_v27, %v1183_v10  ;;  %v1188_v60 = vsel %vm3521_vm6, %v2758_v29, %v1187_v8  ;;  %v2645_v12 = vcombine.low %v3408_v35, %v3416_v40  ;;  %v560_v19 = vld [vmem:[%s3314_s29 + $0x28] sm:$0xe]  ;;  %v3232_v10 = vld [vmem:[%s3923_s1 + $0xd8] sm:$0xff]   ;;  %v3233_v21 = vld [vmem:[%s3923_s1 + $0x60] sm:$0xff]  }
  0x3e   : > { %v2655_v45 = vrot.slane %v555_v48, 9  ;;  %v2656_v49 = vrot.slane %v556_v52, 9  ;;  %v592_v23 = vrot.slane %v3377_v50, 5  ;;  %v2772_v53 = vcombine.low %v1184_v44, %v1188_v60  ;;  %v561_v15 = vld [vmem:[%s3314_s29 + $0x30] sm:$0xe]  ;;  %v3238_v52 = vld [vmem:[%s3923_s1 + $0xe8] sm:$0xff]  }
  0x3f   : > { %3056 = vmatmul.mubr.msk.bf16.gmra.mrb[4].mxu0 %vm356_vm3, %v2738_v31  ;;  %v1192_v35 = vsel %vm3521_vm6, %v2759_v32, %v1191_v28  ;;  %v1196_v40 = vsel %vm3521_vm6, %v2760_v34, %v1195_v37  ;;  %v2761_v51 = vrot.slane %v2753_v43, 9  ;;  %v1199_v50 = vrot.slane %v3483_v63, 5  ;;  %v3226_v63 = vld [vmem:[%s3923_s1 + $0xc8] sm:$0xff]   ;;  %v562_v27 = vld [vmem:[%s3314_s29 + $0x38] sm:$0xe] }
  0x40   : > { %3067 = vmatprep.mubr.msk.bf16.mxu0 %vm356_vm3, %v2771_v26  ;;  %v2762_v57 = vrot.slane %v2754_v36, 9  ;;  %v1203_v59 = vrot.slane %v3494_v14, 5  ;;  %v585_v61 = vsel %vm3521_vm6, %v2655_v45, %v584_v20  ;;  %v589_v62 = vsel %vm3521_vm6, %v2656_v49, %v588_v18  ;;  %v3229_v20 = vld [vmem:[%s3923_s1 + $0xd0] sm:$0xff]   ;;  %v3235_v26 = vld [vmem:[%s3923_s1 + $0xe0] sm:$0xff]  }
  0x41   : > { %v2773_v2 = vcombine.low %v1192_v35, %v1196_v40  ;;  %v2646_v14 = vcombine.low %v3454_v24, %v3468_v46  ;;  %v600_v5 = vrot.slane %v3419_v41, 5  ;;  %v604_v6 = vrot.slane %v3424_v47, 5  ;;  %v3234_v29 = vld [vmem:[%s3314_s29 + $0x10] ss:$8 sps:$4 sm:$0xff]   ;;  %v3641_v37 = vld [vmem:[%s3314_s29 + $0x14] sm:$0x1] }
  0x42   : > { %3004 = vmatmul.mubr.msk.bf16.vlgmr.msra.gmra.mrb[0].mxu1 %vm356_vm3, %v2644_v39  ;;  %v2657_v16 = vrot.slane %v557_v38, 9  ;;  %v2658_v22 = vrot.slane %v558_v1, 9  ;;  %v1200_v24 = vsel %vm3521_vm6, %v2761_v51, %v1199_v50  ;;  %v1204_v41 = vsel %vm3521_vm6, %v2762_v57, %v1203_v59  ;;  %v2811_v34 = vld [vmem:[%s3314_s29 + $0x10] sm:$0xf]  ;;  %v2813_v39 = vld [vmem:[%s3314_s29 + $0x18] sm:$0xf] }
  0x43   : > { %3012 = vmatpush3.bf16.msra.mxu1 %v3488_v0  ;;  %3007 = vmatprep.mubr.msk.bf16.mxu1 %vm356_vm3, %v2645_v12  ;;  %v596_v0 = vrot.slane %v3382_v54, 5  ;;  %v2671_v54 = vcombine.low %v585_v61, %v589_v62  ;;  %v2659_v46 = vrot.slane %v559_v17, 9  ;;  %v2660_v47 = vrot.slane %v560_v19, 9  ;;  %v3239_v45 = vld [vmem:[%s3923_s1 + $0x70] sm:$0xff]   ;;  %v2815_v61 = vld [vmem:[%s3314_s29 + $0x20] sm:$0xf] }
  0x44   : > { %3013 = vmatprep.subr.bf16.mxu1 %v3225_v11  ;;  %v593_v7 = vsel %vm3521_vm6, %v2657_v16, %v592_v23  ;;  %v608_v18 = vrot.slane %v3462_v42, 5  ;;  %v612_v13 = vrot.slane %v3477_v55, 5  ;;  %v2661_v31 = vrot.slane %v561_v15, 9  ;;  %v3237_v42 = vld [vmem:[%s3923_s1 + $0x68] sm:$0xff]   ;;  %v3240_v35 = vld [vmem:[%s3314_s29 + $0x30] ss:$8 sps:$4 sm:$0xff]  }
  0x45   : > { %v597_v8 = vsel %vm3521_vm6, %v2658_v22, %v596_v0  ;;  %v601_v9 = vsel %vm3521_vm6, %v2659_v46, %v600_v5  ;;  %v605_v4 = vsel %vm3521_vm6, %v2660_v47, %v604_v6  ;;  %v2662_v32 = vrot.slane %v562_v27, 9  ;;  %v3236_v55 = vld [vmem:[%s3314_s29 + $0x20] ss:$8 sps:$4 sm:$0xff]   ;;  %v3243_v1 = vld [vmem:[%s3923_s1 + $0x78] sm:$0xff]   ;;  %v2819_v27 = vld [vmem:[%s3314_s29 + $0x30] sm:$0xf] }
  0x46   : > { %v2672_v25 = vcombine.low %v593_v7, %v597_v8  ;;  %v2673_v28 = vcombine.low %v601_v9, %v605_v4  ;;  %v1499_v43 = vshrl.u32 %v2811_v34, 16  ;;  %v1502_v36 = vshll.u32 %v2811_v34, 16  ;;  %v3245_v50 = vld [vmem:[%s3314_s29 + $0x8] ss:$8 sps:$4 sm:$0xff]   ;;  %v3244_v7 = vld [vmem:[%s3923_s1 + $0xf8] sm:$0xff]   ;;  %v3696_v8 = vld [vmem:[%s3923_s1 + $0x100] sm:$0xff]  }
  0x47   : > { %3068 = vmatmul.mubr.msk.bf16.vlgmr.msra.gmra.mrb[0].mxu0 %vm356_vm3, %v2772_v53  ;;  %3014 = vmatpush3.bf16.msra.mxu1 %v3225_v11  ;;  %v3647_v11 = vld [vmem:[%s3314_s29 + $0x1c] sm:$0x1]  ;;  %v1508_v44 = vshll.u32 %v3641_v37, 16  ;;  %v1513_v60 = vshrl.u32 %v2813_v39, 16  ;;  %v1516_v12 = vshll.u32 %v2813_v39, 16  ;;  %v609_v49 = vsel %vm3521_vm6, %v2661_v31, %v608_v18 }
  0x48   : > { %3076 = vmatpush3.bf16.msra.mxu0 %v3517_v58  ;;  %3015 = vmatprep.subr.bf16.mxu1 %v3228_v56  ;;  %v2774_v58 = vcombine.low %v1200_v24, %v1204_v41  ;;  %v1522_v48 = vshll.u32 %v3647_v11, 16  ;;  %v613_v23 = vsel %vm3521_vm6, %v2662_v32, %v612_v13  ;;  %v1501_v53 = vrot.slane %v1499_v43, 4  ;;  %v3241_v24 = vld [vmem:[%s3923_s1 + $0xf0] sm:$0xff]   ;;  %v3247_v18 = vld [vmem:[%s3314_s29 + $0x18] ss:$8 sps:$4 sm:$0xff]  }
  0x49   : > { %3077 = vmatprep.subr.bf16.mxu0 %v3226_v63  ;;  %3071 = vmatprep.mubr.msk.bf16.mxu0 %vm356_vm3, %v2773_v2  ;;  %v1515_v40 = vrot.slane %v1513_v60, 4  ;;  %v1518_v51 = vrot.slane %v1516_v12, 5  ;;  %v1510_v59 = vrot.slane %v1508_v44, 5  ;;  %v2674_v62 = vcombine.low %v609_v49, %v613_v23  ;;  %v2817_v2 = vld [vmem:[%s3314_s29 + $0x28] sm:$0xf] }
  0x4a   : > { %3008 = vmatmul.mubr.msk.bf16.gmra.mrb[4].mxu1 %vm356_vm3, %v2646_v14  ;;  %v1524_v38 = vrot.slane %v1522_v48, 5  ;;  %v3674_v14 = vld [vmem:[%s3314_s29 + $0x2c] sm:$0x1]  ;;  %v1527_v5 = vshrl.u32 %v2815_v61, 16  ;;  %v1530_v6 = vshll.u32 %v2815_v61, 16  ;;  %v1541_v22 = vshrl.u32 %v2817_v2, 16 }
  0x4b   : > { %3016 = vmatpush3.bf16.msra.mxu1 %v3228_v56  ;;  %3019 = vmatprep.mubr.msk.bf16.mxu1 %vm356_vm3, %v2671_v54  ;;  %v1504_v56 = vrot.slane %v1502_v36, 5  ;;  %v1519_v0 = vor.u32 %v1518_v51, %v1515_v40  ;;  %v1544_v17 = vshll.u32 %v2817_v2, 16  ;;  %v1550_v19 = vshll.u32 %v3674_v14, 16  ;;  %v3249_v34 = vld [vmem:[%s3314_s29 + $0x28] ss:$8 sps:$4 sm:$0xff]  }
  0x4c   : > { %3078 = vmatpush3.bf16.msra.mxu0 %v3226_v63  ;;  %3017 = vmatprep.subr.bf16.mxu1 %v3231_v3  ;;  %v3670_v63 = vld [vmem:[%s3314_s29 + $0x24] sm:$0x1]  ;;  %v1529_v46 = vrot.slane %v1527_v5, 4  ;;  %v1532_v47 = vrot.slane %v1530_v6, 5  ;;  %v1555_v31 = vshrl.u32 %v2819_v27, 16  ;;  %v1558_v32 = vshll.u32 %v2819_v27, 16 }
  0x4d   : > { %3079 = vmatprep.subr.bf16.mxu0 %v3229_v20  ;;  %v1505_v57 = vor.u32 %v1504_v56, %v1501_v53  ;;  %v1536_v54 = vshll.u32 %v3670_v63, 16  ;;  %v1520_v16 = vrot.slane %v1519_v0, 4  ;;  %v1552_v4 = vrot.slane %v1550_v19, 5  ;;  %v3719_v53 = vld [vmem:[%s3923_s1 + $0x108] sm:$0xff]  }
  0x4e   : > { %v1533_v15 = vor.u32 %v1532_v47, %v1529_v46  ;;  %v1557_v44 = vrot.slane %v1555_v31, 4  ;;  %v1560_v60 = vrot.slane %v1558_v32, 5  ;;  %v1766_v40 = vrot.slane %v3641_v37, 5  ;;  %v2852_v31 = vld [vmem:[%s3314_s29 + $0x38] sm:$0xe] }
  0x4f   : > { %3072 = vmatmul.mubr.msk.bf16.gmra.mrb[4].mxu0 %vm356_vm3, %v2774_v58  ;;  %3018 = vmatpush3.bf16.msra.mxu1 %v3231_v3  ;;  %v1506_v3 = vrot.slane %v1505_v57, 4  ;;  %v1525_v58 = vsel %vm3360_vm2, %v1520_v16, %v1524_v38  ;;  %v1538_v9 = vrot.slane %v1536_v54, 5  ;;  %v2823_v57 = vld [vmem:[%s3314_s29 + $0x40] sm:$0xf]  ;;  %v2825_v38 = vld [vmem:[%s3314_s29 + $0x48] sm:$0xf] }
  0x50   : > { %3080 = vmatpush3.bf16.msra.mxu0 %v3229_v20  ;;  %3027 = vmatprep.subr.bf16.mxu1 %v3233_v21  ;;  %v3242_v20 = vld [vmem:[%s3314_s29 + $0x40] ss:$8 sps:$4 sm:$0xff]   ;;  %v1561_v56 = vor.u32 %v1560_v60, %v1557_v44  ;;  %v1586_v0 = vshll.u32 %v2823_v57, 16  ;;  %v1600_v5 = vshll.u32 %v2825_v38, 16 }
  0x51   : > { %3081 = vmatprep.subr.bf16.mxu0 %v3232_v10  ;;  %3083 = vmatprep.mubr.msk.bf16.mxu0 %vm356_vm3, %v3234_v29  ;;  %v1511_v41 = vsel %vm3360_vm2, %v1506_v3, %v1510_v59  ;;  %v3700_v29 = vld [vmem:[%s3314_s29 + $0x34] sm:$0x1]  ;;  %v3725_v59 = vld [vmem:[%s3314_s29 + $0x44] sm:$0x1]  ;;  %v1597_v3 = vshrl.u32 %v2825_v38, 16 }
  0x52   : > { %3020 = vmatmul.mubr.msk.bf16.vlgmr.msra.gmra.mrb[0].mxu1 %vm356_vm3, %v2672_v25  ;;  %v2835_v25 = vcombine.low %v1511_v41, %v1525_v58  ;;  %v1562_v61 = vrot.slane %v1561_v56, 4  ;;  %v1592_v2 = vshll.u32 %v3725_v59, 16  ;;  %v3251_v16 = vld [vmem:[%s3314_s29 + $0x38] ss:$8 sps:$4 sm:$0xff]   ;;  %v3250_v41 = vld [vmem:[%s3923_s1 + $0x110] sm:$0xff]   ;;  %v1602_v47 = vrot.slane %v1600_v5, 5 }
  0x53   : > { %3028 = vmatpush3.bf16.msra.mxu1 %v3233_v21  ;;  %3023 = vmatprep.mubr.msk.bf16.mxu1 %vm356_vm3, %v2673_v28  ;;  %v1546_v21 = vrot.slane %v1544_v17, 5  ;;  %v3705_v28 = vld [vmem:[%s3314_s29 + $0x3c] sm:$0x1]  ;;  %v1588_v17 = vrot.slane %v1586_v0, 5  ;;  %v1599_v46 = vrot.slane %v1597_v3, 4 }
  0x54   : > { %3082 = vmatpush3.bf16.msra.mxu0 %v3232_v10  ;;  %3029 = vmatprep.subr.bf16.mxu1 %v3237_v42  ;;  %v1543_v10 = vrot.slane %v1541_v22, 4  ;;  %v1578_v12 = vshll.u32 %v3705_v28, 16  ;;  %v1594_v19 = vrot.slane %v1592_v2, 5  ;;  %v2847_v58 = vld [vmem:[%s3314_s29 + $0x10] sm:$0xe] }
  0x55   : > { %3091 = vmatprep.subr.bf16.mxu0 %v3235_v26  ;;  %v1603_v27 = vor.u32 %v1602_v47, %v1599_v46  ;;  %v2850_v44 = vld [vmem:[%s3314_s29 + $0x28] sm:$0xe]  ;;  %v2853_v60 = vld [vmem:[%s3314_s29 + $0x40] sm:$0xe] }
  0x56   : > { %v1547_v13 = vor.u32 %v1546_v21, %v1543_v10  ;;  %v2858_v56 = vrot.slane %v2850_v44, 9 }
  0x57   : > { %3084 = vmatmul.mubr.msk.bf16.vlgmr.msra.gmra.mrb[0].mxu0 %vm356_vm3, %v3236_v55  ;;  %3030 = vmatpush3.bf16.msra.mxu1 %v3237_v42  ;;  %v1534_v42 = vrot.slane %v1533_v15, 4  ;;  %v1564_v55 = vshll.u32 %v3700_v29, 16 }
  0x58   : > { %3092 = vmatpush3.bf16.msra.mxu0 %v3235_v26  ;;  %3031 = vmatprep.subr.bf16.mxu1 %v3239_v45  ;;  %v2821_v26 = vld [vmem:[%s3314_s29 + $0x38] sm:$0xf]  ;;  %v1548_v36 = vrot.slane %v1547_v13, 4 }
  0x59   : > { %3093 = vmatprep.subr.bf16.mxu0 %v3238_v52  ;;  %3087 = vmatprep.mubr.msk.bf16.mxu0 %vm356_vm3, %v3240_v35  ;;  %v1569_v39 = vshrl.u32 %v2821_v26, 16  ;;  %v1572_v43 = vshll.u32 %v2821_v26, 16  ;;  %v1539_v48 = vsel %vm3360_vm2, %v1534_v42, %v1538_v9  ;;  %v1580_v35 = vrot.slane %v1578_v12, 5  ;;  %v2848_v9 = vld [vmem:[%s3314_s29 + $0x18] sm:$0xe] }
  0x5a   : > { %3024 = vmatmul.mubr.msk.bf16.gmra.mrb[4].mxu1 %vm356_vm3, %v2674_v62  ;;  %v1553_v23 = vsel %vm3360_vm2, %v1548_v36, %v1552_v4  ;;  %v3730_v62 = vld [vmem:[%s3314_s29 + $0x4c] sm:$0x1]  ;;  %v2851_v4 = vld [vmem:[%s3314_s29 + $0x30] sm:$0xe]  ;;  %v2856_v13 = vrot.slane %v2848_v9, 9  ;;  %v1770_v26 = vrot.slane %v3647_v11, 5 }
  0x5b   : > { %3032 = vmatpush3.bf16.msra.mxu1 %v3239_v45  ;;  %3035 = vmatprep.mubr.msk.bf16.mxu1 %vm356_vm3, %v3245_v50  ;;  %v1571_v45 = vrot.slane %v1569_v39, 4  ;;  %v1574_v49 = vrot.slane %v1572_v43, 5  ;;  %v2836_v51 = vcombine.low %v1539_v48, %v1553_v23  ;;  %v1606_v6 = vshll.u32 %v3730_v62, 16  ;;  %v2849_v39 = vld [vmem:[%s3314_s29 + $0x20] sm:$0xe] }
  0x5c   : > { %3094 = vmatpush3.bf16.msra.mxu0 %v3238_v52  ;;  %3033 = vmatprep.subr.bf16.mxu1 %v3243_v1  ;;  %v1566_v52 = vrot.slane %v1564_v55, 5  ;;  %v1794_v15 = vrot.slane %v3730_v62, 5  ;;  %v2859_v42 = vrot.slane %v2851_v4, 9  ;;  %v2860_v55 = vrot.slane %v2852_v31, 9 }
  0x5d   : > { %3095 = vmatprep.subr.bf16.mxu0 %v3241_v24  ;;  %v1575_v50 = vor.u32 %v1574_v49, %v1571_v45  ;;  %v1604_v43 = vrot.slane %v1603_v27, 4  ;;  %v1771_v36 = vsel %vm3521_vm6, %v2856_v13, %v1770_v26  ;;  %v2854_v45 = vld [vmem:[%s3314_s29 + $0x48] sm:$0xe]  ;;  %v1774_v23 = vrot.slane %v3670_v63, 5 }
  0x5e   : > { %v1567_v54 = vsel %vm3360_vm2, %v1562_v61, %v1566_v52  ;;  %v2857_v52 = vrot.slane %v2849_v39, 9 }
  0x5f   : > { %3088 = vmatmul.mubr.msk.bf16.gmra.mrb[4].mxu0 %vm356_vm3, %v3242_v20  ;;  %3034 = vmatpush3.bf16.msra.mxu1 %v3243_v1  ;;  %v1583_v1 = vshrl.u32 %v2823_v57, 16  ;;  %v1576_v37 = vrot.slane %v1575_v50, 4  ;;  %v1608_v20 = vrot.slane %v1606_v6, 5  ;;  %v2861_v50 = vrot.slane %v2853_v60, 9 }
  0x60   : > { %3096 = vmatpush3.bf16.msra.mxu0 %v3241_v24  ;;  %3099 = vmatprep.mubr.msk.bf16.mxu0 %vm356_vm3, %v2835_v25  ;;  %v3252_v25 = vld [vmem:[%s3923_s1 + $0x118] sm:$0xff]   ;;  %v2862_v57 = vrot.slane %v2854_v45, 9  ;;  %v3261_v6 = vmov 1983009808  }
  0x61   : > { %3097 = vmatprep.subr.bf16.mxu0 %v3244_v7  ;;  %3123 = vmatprep.subr.bf16.mxu1 %v3696_v8  ;;  %v1585_v22 = vrot.slane %v1583_v1, 4  ;;  %v1581_v24 = vsel %vm3360_vm2, %v1576_v37, %v1580_v35  ;;  %v1609_v49 = vsel %vm3360_vm2, %v1604_v43, %v1608_v20  ;;  %v1959_v30 = vunpack.c.l.s4 %v3261_v6 }
  0x62   : > { %3036 = vmatmul.mubr.msk.bf16.vlgmr.msra.gmra.mrb[0].mxu1 %vm356_vm3, %v3247_v18  ;;  %v2837_v10 = vcombine.low %v1567_v54, %v1581_v24  ;;  %v2855_v18 = vrot.slane %v2847_v58, 9  ;;  %v1795_v63 = vsel %vm3521_vm6, %v2862_v57, %v1794_v15  ;;  %v1961_v54 = vlaneseq  ;;  %v3801_v58 = vld [vmem:[%s3924_s2] ss:$0 sm:$0xff] }
  0x63   : > { %3127 = vmatpush3.bf16.msra.mxu1 %v3696_v8  ;;  %3039 = vmatprep.mubr.msk.bf16.mxu1 %vm356_vm3, %v3249_v34  ;;  %v1589_v21 = vor.u32 %v1588_v17, %v1585_v22  ;;  %v1782_v34 = vrot.slane %v3700_v29, 5 }
  0x64   : > { %3098 = vmatpush3.bf16.msra.mxu0 %v3244_v7  ;;  %3124 = vmatprep.subr.bf16.mxu1 %v3719_v53  ;;  %v1790_v7 = vrot.slane %v3725_v59, 5  ;;  %v1767_v11 = vsel %vm3521_vm6, %v2855_v18, %v1766_v40  ;;  %v1962_v46 = vshrl.u32 %v1961_v54, 7 }
  0x65   : > { %3107 = vmatprep.subr.bf16.mxu0 %v3696_v8  ;;  %v1590_v32 = vrot.slane %v1589_v21, 4  ;;  %v2871_v12 = vcombine.low %v1767_v11, %v1771_v36  ;;  %v1783_v48 = vsel %vm3521_vm6, %v2859_v42, %v1782_v34 }
  0x66   : > { %v1791_v33 = vsel %vm3521_vm6, %v2861_v50, %v1790_v7 }
  0x67   : > { %3100 = vmatmul.mubr.msk.bf16.vlgmr.msra.gmra.mrb[0].mxu0 %vm356_vm3, %v2836_v51  ;;  %3128 = vmatpush3.bf16.msra.mxu1 %v3719_v53  ;;  %v1595_v29 = vsel %vm3360_vm2, %v1590_v32, %v1594_v19  ;;  %v1778_v51 = vrot.slane %v3674_v14, 5  ;;  %v1775_v14 = vsel %vm3521_vm6, %v2857_v52, %v1774_v23  ;;  %v2874_v59 = vcombine.low %v1791_v33, %v1795_v63 }
  0x68   : > { %3108 = vmatpush3.bf16.msra.mxu0 %v3696_v8  ;;  %3103 = vmatprep.mubr.msk.bf16.mxu0 %vm356_vm3, %v2837_v10  ;;  %v1786_v8 = vrot.slane %v3705_v28, 5  ;;  %v2838_v35 = vcombine.low %v1595_v29, %v1609_v49 }
  0x69   : > { %3109 = vmatprep.subr.bf16.mxu0 %v3719_v53  ;;  %3125 = vmatprep.subr.bf16.mxu1 %v3250_v41 }
  0x6a   : > { %3040 = vmatmul.mubr.msk.bf16.gmra.mrb[4].mxu1 %vm356_vm3, %v3251_v16  ;;  %v1787_v28 = vsel %vm3521_vm6, %v2860_v55, %v1786_v8 }
  0x6b   : > { %3129 = vmatpush3.bf16.msra.mxu1 %v3250_v41  ;;  %v2873_v40 = vcombine.low %v1783_v48, %v1787_v28 }
  0x6c   : > { %3110 = vmatpush3.bf16.msra.mxu0 %v3719_v53  ;;  %3126 = vmatprep.subr.bf16.mxu1 %v3252_v25  ;;  %v1779_v53 = vsel %vm3521_vm6, %v2858_v56, %v1778_v51 }
  0x6d   : > { %3111 = vmatprep.subr.bf16.mxu0 %v3250_v41  ;;  %3119 = vmatprep.mubr.msk.bf16.mxu1 %vm356_vm3, %v2873_v40  ;;  %v2872_v38 = vcombine.low %v1775_v14, %v1779_v53 }
  0x6f   : > { %3104 = vmatmul.mubr.msk.bf16.gmra.mrb[4].mxu0 %vm356_vm3, %v2838_v35  ;;  %3130 = vmatpush3.bf16.msra.mxu1 %v3252_v25 }
  0x70   : > { %3112 = vmatpush3.bf16.msra.mxu0 %v3250_v41  ;;  %3115 = vmatprep.mubr.msk.bf16.mxu0 %vm356_vm3, %v2871_v12  ;;  %v1960_v41 = vunpack.c.0.s8 %v1959_v30 }
  0x71   : > { %3113 = vmatprep.subr.bf16.mxu0 %v3252_v25 }
  0x72   : > { %3120 = vmatmul.mubr.msk.bf16.vlgmr.msra.gmra.mrb[8].mxu1 %vm356_vm3, %v2874_v59  ;;  %v3803_v27 = vsub.s32 %v1960_v41, %v1962_v46 }
  0x74   : > { %3114 = vmatpush3.bf16.msra.mxu0 %v3252_v25 }
  0x77   : > { %3116 = vmatmul.mubr.msk.bf16.vlgmr.msra.gmra.mrb[0].mxu0 %vm356_vm3, %v2872_v38 }
 0x135   : > { %v3037_v61 = vpop.f32.mrb[0].mxu1 }
 0x136   : > { %v852_v62 = vpop.f32.mrb[1].mxu1 }
 0x137   : > { %v3038_v1 = vpop.f32.mrb[2].mxu1 }
 0x138   : > { %v3796_v0 = vpop.f32.mrb[3].mxu1 }
 0x13d   : > { %v3041_v2 = vpop.f32.mrb[4].mxu1 }
 0x13e   : > { %v868_v37 = vpop.f32.mrb[5].mxu1 }
 0x13f   : > { %v3042_v3 = vpop.f32.mrb[6].mxu1 }
 0x140   : > { %v871_v5 = vpop.f32.mrb[7].mxu1 }
 0x142   : > { %v3105_v16 = vpop.f32.mrb[4].mxu0 }
 0x143   : > { %v3135_v22 = vadd.f32 %v3105_v16, %v3041_v2  ;;  %v1717_v17 = vpop.f32.mrb[5].mxu0 }
 0x144   : > { %v3137_v19 = vadd.f32 %v1717_v17, %v868_v37  ;;  %v3106_v24 = vpop.f32.mrb[6].mxu0 }
 0x145   : > { %v3139_v47 = vadd.f32 %v3106_v24, %v3042_v3  ;;  %v1720_v20 = vpop.f32.mrb[7].mxu0  ;;  %v3121_v10 = vpop.f32.mrb[8].mxu1 }
 0x146   : > { %v3141_v21 = vadd.f32 %v1720_v20, %v871_v5  ;;  %v3136_v7 = vadd.f32 %v3135_v22, %v3121_v10  ;;  %v1903_v15 = vpop.f32.mrb[9].mxu1 }
 0x147   : > { %v3138_v9 = vadd.f32 %v3137_v19, %v1903_v15  ;;  %v3122_v4 = vpop.f32.mrb[10].mxu1 }
 0x148   : > { %v1939_v25 = vadd.f32 %v3136_v7, %v3801_v58  ;;  %v3140_v18 = vadd.f32 %v3139_v47, %v3122_v4  ;;  %v1906_v13 = vpop.f32.mrb[11].mxu1 }
 0x149   : > { %v1937_v26 = vadd.f32 %v3138_v9, %v3801_v58  ;;  %v3142_v31 = vadd.f32 %v3141_v21, %v1906_v13 }
 0x14a   : > { %v3117_v32 = vpop.f32.mrb[0].mxu0  ;;  %v1947_v42 = vmax.f32 %v1939_v25, 0.0  ;;  %v1940_v34 = vadd.f32 %v3140_v18, %v3801_v58 }
 0x14b   : > { %v3131_v55 = vadd.f32 %v3117_v32, %v3037_v61  ;;  %v1887_v39 = vpop.f32.mrb[1].mxu0  ;;  %v1945_v43 = vmax.f32 %v1937_v26, 0.0  ;;  %v3818_v56 = vadd.f32 %v3142_v31, %v3801_v58 }
 0x14c   : > { %v2059_v11 = vcombine.high %v1947_v42, %v1947_v42  ;;  %v2066_v36 = vrot.slane %v1947_v42, %v3803_v27  ;;  %v3132_v8 = vadd.f32 %v1887_v39, %v852_v62  ;;  %v3118_v44 = vpop.f32.mrb[2].mxu0  ;;  %v1948_v60 = vmax.f32 %v1940_v34, 0.0 }
 0x14d   : > { %v1935_v29 = vadd.f32 %v3131_v55, %v3801_v58  ;;  %v2025_v12 = vcombine.high %v1945_v43, %v1945_v43  ;;  %v3811_v48 = vrot.slane %v1945_v43, %v3803_v27  ;;  %v3133_v52 = vadd.f32 %v3118_v44, %v3038_v1  ;;  %v3813_v45 = vpop.f32.mrb[3].mxu0 }
 0x14e   : > { %v2073_v49 = vrot.slane %v2059_v11, %v3803_v27  ;;  %v1933_v28 = vadd.f32 %v3132_v8, %v3801_v58  ;;  %v2076_v23 = vcombine.high %v1948_v60, %v1948_v60  ;;  %v2074_v40 = vcombine.high %v2066_v36, %v2066_v36 }
 0x14f   : > { %v1943_v35 = vmax.f32 %v1935_v29, 0.0  ;;  %v3821_v51 = vrot.slane %v2025_v12, %v3803_v27  ;;  %v1936_v50 = vadd.f32 %v3133_v52, %v3801_v58  ;;  %v2040_v33 = vcombine.high %v3811_v48, %v3811_v48 }
 0x150   : > { %v1941_v57 = vmax.f32 %v1933_v28, 0.0  ;;  %v2083_v63 = vrot.slane %v1948_v60, %v3803_v27  ;;  %v2090_v14 = vrot.slane %v2076_v23, %v3803_v27  ;;  %v2075_v38 = vcombine.high %v2073_v49, %v2073_v49 }
 0x151   : > { %v1991_v53 = vcombine.high %v1943_v35, %v1943_v35  ;;  %v1998_v59 = vrot.slane %v1943_v35, %v3803_v27  ;;  %v1944_v61 = vmax.f32 %v1936_v50, 0.0  ;;  %v2041_v5 = vcombine.high %v3821_v51, %v3821_v51 }
 0x152   : > { %v1957_v62 = vcombine.high %v1941_v57, %v1941_v57  ;;  %v3830_v1 = vrot.slane %v1941_v57, %v3803_v27  ;;  %v2091_v2 = vcombine.high %v2083_v63, %v2083_v63  ;;  %v2092_v37 = vcombine.high %v2090_v14, %v2090_v14 }
 0x153   : > { %v2005_v3 = vrot.slane %v1991_v53, %v3803_v27  ;;  %v2008_v6 = vcombine.high %v1944_v61, %v1944_v61  ;;  %v2015_v30 = vrot.slane %v1944_v61, %v3803_v27  ;;  %v2006_v54 = vcombine.high %v1998_v59, %v1998_v59 }
 0x154   : > { %v3837_v16 = vrot.slane %v1957_v62, %v3803_v27  ;;  %v2137_v22 = vmax.f32 %v2066_v36, %v2083_v63  ;;  %v2138_v17 = vmax.f32 %v2074_v40, %v2091_v2  ;;  %v1972_v19 = vcombine.high %v3830_v1, %v3830_v1 }
 0x155   : > { %v2022_v24 = vrot.slane %v2008_v6, %v3803_v27  ;;  %v2023_v41 = vcombine.high %v2015_v30, %v2015_v30  ;;  %v2129_v46 = vmax.f32 %v1998_v59, %v2015_v30  ;;  %v2007_v47 = vcombine.high %v2005_v3, %v2005_v3 }
 0x156   : > { %v2139_v20 = vmax.f32 %v2073_v49, %v2090_v14  ;;  %v2140_v10 = vmax.f32 %v2075_v38, %v2092_v37  ;;  %v2896_v21 = vrot.slane %v2137_v22, 9  ;;  %v2897_v25 = vrot.slane %v2138_v17, 9 }
 0x157   : > { %v2024_v7 = vcombine.high %v2022_v24, %v2022_v24  ;;  %v2130_v15 = vmax.f32 %v2006_v54, %v2023_v41  ;;  %v2131_v9 = vmax.f32 %v2005_v3, %v2022_v24  ;;  %v2888_v4 = vrot.slane %v2129_v46, 9 }
 0x158   : > { %v2898_v18 = vrot.slane %v2139_v20, 9  ;;  %v2899_v13 = vrot.slane %v2140_v10, 9  ;;  %v2217_v26 = vmax.f32 %v2137_v22, %v2896_v21  ;;  %v2218_v55 = vmax.f32 %v2138_v17, %v2897_v25 }
 0x159   : > { %v2132_v31 = vmax.f32 %v2007_v47, %v2024_v7  ;;  %v2889_v32 = vrot.slane %v2130_v15, 9  ;;  %v2890_v42 = vrot.slane %v2131_v9, 9  ;;  %v2209_v34 = vmax.f32 %v2129_v46, %v2888_v4 }
 0x15a   : > { %v2219_v39 = vmax.f32 %v2139_v20, %v2898_v18  ;;  %v2220_v43 = vmax.f32 %v2140_v10, %v2899_v13  ;;  %v2233_v11 = vpack.c.bf16 %v2217_v26, %v2217_v26  ;;  %v2234_v29 = vpack.c.bf16 %v2218_v55, %v2218_v55 }
 0x15b   : > { %v2891_v36 = vrot.slane %v2132_v31, 9  ;;  %v2210_v8 = vmax.f32 %v2130_v15, %v2889_v32  ;;  %v2211_v44 = vmax.f32 %v2131_v9, %v2890_v42  ;;  %v2225_v60 = vpack.c.bf16 %v2209_v34, %v2209_v34 }
 0x15c   : > { %v2235_v12 = vpack.c.bf16 %v2219_v39, %v2219_v39  ;;  %v2236_v52 = vpack.c.bf16 %v2220_v43, %v2220_v43  ;;  %v2343_v49 = vrot.slane %v2233_v11, %v3803_v27  ;;  %v2350_v50 = vrot.slane %v2234_v29, %v3803_v27 }
 0x15d   : > { %v2212_v28 = vmax.f32 %v2132_v31, %v2891_v36  ;;  %v2226_v23 = vpack.c.bf16 %v2210_v8, %v2210_v8  ;;  %v2227_v35 = vpack.c.bf16 %v2211_v44, %v2211_v44  ;;  %v2287_v40 = vrot.slane %v2225_v60, %v3803_v27 }
 0x15e   : > { %v2357_v57 = vrot.slane %v2235_v12, %v3803_v27  ;;  %v2364_v63 = vrot.slane %v2236_v52, %v3803_v27  ;;  %v2455_v14 = vrot.slane %v2343_v49, %v3803_v27  ;;  %v2462_v62 = vrot.slane %v2350_v50, %v3803_v27 }
 0x15f   : > { %v2228_v53 = vpack.c.bf16 %v2212_v28, %v2212_v28  ;;  %v2294_v59 = vrot.slane %v2226_v23, %v3803_v27  ;;  %v2301_v38 = vrot.slane %v2227_v35, %v3803_v27  ;;  %v2399_v61 = vrot.slane %v2287_v40, %v3803_v27 }
 0x160   : > { %v2469_v2 = vrot.slane %v2357_v57, %v3803_v27  ;;  %v2476_v37 = vrot.slane %v2364_v63, %v3803_v27  ;;  %v2489_v3 = vunpack.c.l.b16 %v2455_v14  ;;  %v2490_v17 = vunpack.c.l.b16 %v2462_v62 }
 0x161   : > { %v2308_v6 = vrot.slane %v2228_v53, %v3803_v27  ;;  %v2406_v30 = vrot.slane %v2294_v59, %v3803_v27  ;;  %v2413_v54 = vrot.slane %v2301_v38, %v3803_v27  ;;  %v2481_v22 = vunpack.c.l.b16 %v2399_v61 }
 0x162   : > { %v2491_v24 = vunpack.c.l.b16 %v2469_v2  ;;  %v2492_v41 = vunpack.c.l.b16 %v2476_v37  ;;  %v3134_v46 = vadd.f32 %v3813_v45, %v3796_v0  ;;  %v1946_v21 = vmax.f32 %v3818_v56, 0.0 }
 0x163   : > { %v2420_v47 = vrot.slane %v2308_v6, %v3803_v27  ;;  %v2482_v20 = vunpack.c.l.b16 %v2406_v30  ;;  %v2483_v10 = vunpack.c.l.b16 %v2413_v54  ;;  %v2514_v7 = vrot.slane %v2490_v17, 7 }
 0x164   : > { %v2516_v15 = vrot.slane %v2491_v24, 6  ;;  %v2518_v9 = vrot.slane %v2492_v41, 5  ;;  %v1934_v4 = vadd.f32 %v3134_v46, %v3801_v58  ;;  %v2042_v26 = vcombine.high %v1946_v21, %v1946_v21 }
 0x165   : > { %v2484_v25 = vunpack.c.l.b16 %v2420_v47  ;;  %v2502_v18 = vrot.slane %v2482_v20, 7  ;;  %v2504_v13 = vrot.slane %v2483_v10, 6  ;;  %v1973_v31 = vcombine.high %v3837_v16, %v3837_v16 }
 0x166   : > { %v2515_v0 = vsel %vm2494_vm7, %v2514_v7, %v2489_v3  ;;  %v1942_v45 = vmax.f32 %v1934_v4, 0.0  ;;  %v2049_v32 = vrot.slane %v1946_v21, %v3803_v27  ;;  %v2056_v58 = vrot.slane %v2042_v26, %v3803_v27 }
 0x167   : > { %v2503_v56 = vsel %vm2494_vm7, %v2502_v18, %v2481_v22  ;;  %v2506_v42 = vrot.slane %v2484_v25, 5  ;;  %v2517_v34 = vsel %vm2497_vm8, %v2516_v15, %v2515_v0 }
 0x168   : > { %v2505_v55 = vsel %vm2497_vm8, %v2504_v13, %v2503_v56  ;;  %v2519_v39 = vsel %vm2500_vm9, %v2518_v9, %v2517_v34  ;;  %v1974_v43 = vcombine.high %v1942_v45, %v1942_v45  ;;  %v1981_v11 = vrot.slane %v1942_v45, %v3803_v27 }
 0x169   : > { %v2507_v36 = vsel %vm2500_vm9, %v2506_v42, %v2505_v55  ;;  %v2523_v8 = vpack.c.b16 %v2519_v39, %v2519_v39  ;;  %v2057_v44 = vcombine.high %v2049_v32, %v2049_v32  ;;  %v2058_v60 = vcombine.high %v2056_v58, %v2056_v58 }
 0x16a   : > { %v2521_v29 = vpack.c.b16 %v2507_v36, %v2507_v36  ;;  %v1988_v12 = vrot.slane %v1974_v43, %v3803_v27  ;;  %v1989_v52 = vcombine.high %v1981_v11, %v1981_v11  ;;  %v2125_v49 = vmax.f32 %v3830_v1, %v1981_v11 }
 0x16b   : > { %2903 = vst.sshfl [vmem:[%s3873_s20 + $0x6] sm:$0x3 pattern:$0x76325410] %v2523_v8  ;;  %v2133_v28 = vmax.f32 %v3811_v48, %v2049_v32  ;;  %v2134_v23 = vmax.f32 %v2040_v33, %v2057_v44  ;;  %v2135_v35 = vmax.f32 %v3821_v51, %v2056_v58  ;;  %v2136_v40 = vmax.f32 %v2041_v5, %v2058_v60 }
 0x16c   : > { %2901 = vst.sshfl [vmem:[%s3873_s20 + $0x2] sm:$0x3 pattern:$0x76325410] %v2521_v29  ;;  %v1990_v50 = vcombine.high %v1988_v12, %v1988_v12  ;;  %v2126_v57 = vmax.f32 %v1972_v19, %v1989_v52  ;;  %v2127_v63 = vmax.f32 %v3837_v16, %v1988_v12  ;;  %v2884_v14 = vrot.slane %v2125_v49, 9 }
 0x16d   : > { %v2892_v53 = vrot.slane %v2133_v28, 9  ;;  %v2893_v59 = vrot.slane %v2134_v23, 9  ;;  %v2894_v38 = vrot.slane %v2135_v35, 9  ;;  %v2895_v48 = vrot.slane %v2136_v40, 9 }
 0x16e   : > { %v2128_v33 = vmax.f32 %v1973_v31, %v1990_v50  ;;  %v2885_v61 = vrot.slane %v2126_v57, 9  ;;  %v2886_v62 = vrot.slane %v2127_v63, 9  ;;  %v2205_v2 = vmax.f32 %v2125_v49, %v2884_v14 }
 0x16f   : > { %v2213_v37 = vmax.f32 %v2133_v28, %v2892_v53  ;;  %v2214_v51 = vmax.f32 %v2134_v23, %v2893_v59  ;;  %v2215_v5 = vmax.f32 %v2135_v35, %v2894_v38  ;;  %v2216_v3 = vmax.f32 %v2136_v40, %v2895_v48 }
 0x170   : > { %v2887_v6 = vrot.slane %v2128_v33, 9  ;;  %v2206_v30 = vmax.f32 %v2126_v57, %v2885_v61  ;;  %v2207_v54 = vmax.f32 %v2127_v63, %v2886_v62  ;;  %v2221_v1 = vpack.c.bf16 %v2205_v2, %v2205_v2 }
 0x171   : > { %v2229_v19 = vpack.c.bf16 %v2213_v37, %v2213_v37  ;;  %v2230_v22 = vpack.c.bf16 %v2214_v51, %v2214_v51  ;;  %v2231_v16 = vpack.c.bf16 %v2215_v5, %v2215_v5  ;;  %v2232_v17 = vpack.c.bf16 %v2216_v3, %v2216_v3 }
 0x172   : > { %v2208_v24 = vmax.f32 %v2128_v33, %v2887_v6  ;;  %v2222_v41 = vpack.c.bf16 %v2206_v30, %v2206_v30  ;;  %v2223_v46 = vpack.c.bf16 %v2207_v54, %v2207_v54  ;;  %v2259_v47 = vrot.slane %v2221_v1, %v3803_v27 }
 0x173   : > { %v2315_v20 = vrot.slane %v2229_v19, %v3803_v27  ;;  %v2322_v10 = vrot.slane %v2230_v22, %v3803_v27  ;;  %v2329_v21 = vrot.slane %v2231_v16, %v3803_v27  ;;  %v2336_v7 = vrot.slane %v2232_v17, %v3803_v27 }
 0x174   : > { %v2224_v15 = vpack.c.bf16 %v2208_v24, %v2208_v24  ;;  %v2266_v9 = vrot.slane %v2222_v41, %v3803_v27  ;;  %v2273_v4 = vrot.slane %v2223_v46, %v3803_v27  ;;  %v2371_v0 = vrot.slane %v2259_v47, %v3803_v27 }
 0x175   : > { %v2427_v25 = vrot.slane %v2315_v20, %v3803_v27  ;;  %v2434_v18 = vrot.slane %v2322_v10, %v3803_v27  ;;  %v2441_v13 = vrot.slane %v2329_v21, %v3803_v27  ;;  %v2448_v26 = vrot.slane %v2336_v7, %v3803_v27 }
 0x176   : > { %v2280_v31 = vrot.slane %v2224_v15, %v3803_v27  ;;  %v2378_v45 = vrot.slane %v2266_v9, %v3803_v27  ;;  %v2385_v32 = vrot.slane %v2273_v4, %v3803_v27  ;;  %v2477_v44 = vunpack.c.l.b16 %v2371_v0 }
 0x177   : > { %v2486_v56 = vunpack.c.l.b16 %v2434_v18  ;;  %v2487_v42 = vunpack.c.l.b16 %v2441_v13  ;;  %v2488_v34 = vunpack.c.l.b16 %v2448_v26  ;;  %v2485_v43 = vunpack.c.l.b16 %v2427_v25 }
 0x178   : > { %v2392_v58 = vrot.slane %v2280_v31, %v3803_v27  ;;  %v2478_v55 = vunpack.c.l.b16 %v2378_v45  ;;  %v2479_v39 = vunpack.c.l.b16 %v2385_v32 }
 0x179   : > { %v2508_v11 = vrot.slane %v2486_v56, 7  ;;  %v2510_v36 = vrot.slane %v2487_v42, 6  ;;  %v2512_v8 = vrot.slane %v2488_v34, 5 }
 0x17a   : > { %v2480_v60 = vunpack.c.l.b16 %v2392_v58  ;;  %v2493_v29 = vrot.slane %v2478_v55, 7  ;;  %v2496_v12 = vrot.slane %v2479_v39, 6 }
 0x17b   : > { %v2509_v52 = vsel %vm2494_vm7, %v2508_v11, %v2485_v43 }
 0x17c   : > { %v2495_v49 = vsel %vm2494_vm7, %v2493_v29, %v2477_v44  ;;  %v2499_v28 = vrot.slane %v2480_v60, 5  ;;  %v2511_v23 = vsel %vm2497_vm8, %v2510_v36, %v2509_v52 }
 0x17d   : > { %v2498_v27 = vsel %vm2497_vm8, %v2496_v12, %v2495_v49  ;;  %v2513_v35 = vsel %vm2500_vm9, %v2512_v8, %v2511_v23 }
 0x17e   : > { %v2501_v40 = vsel %vm2500_vm9, %v2499_v28, %v2498_v27  ;;  %v2522_v50 = vpack.c.b16 %v2513_v35, %v2513_v35 }
 0x17f   : > { %v2520_v57 = vpack.c.b16 %v2501_v40, %v2501_v40 }
 0x180   : > { %2902 = vst.sshfl [vmem:[%s3873_s20 + $0x4] sm:$0x3 pattern:$0x76325410] %v2522_v50 }
 0x181   : > { %2900 = vst.sshfl [vmem:[%s3873_s20] sm:$0x3 pattern:$0x76325410] %v2520_v57 }
 0x182 PF: > { %s13_s12 = sadd.s32 1, %s3259_s12  }
 0x183   : > { %p10_p4 = scmp.ge.s32.totalorder %s13_s12, 6  }
 0x185   :  { %12 = sbr.rel (!%p10_p4) target bundleno = 1 (0x1), region = 72 }

// kernel: siamese_forward.5
= control target key start
LH: loop header
LB: loop body
LE: loop exit
PB: predicated region body
PF: predicated region fallthrough
CT: control target
= control target key end

     0   :  { %v2789_v41 = vmov 1966171168   ;;  %v299_v43 = vlaneseq  ;;  %vm2086_vm0 = vcmask 1041408   ;;  %vm2106_vm1 = vcmask 1024   ;;  %s3664_s1 = inlined_call_operand.vmem [shape: bf16[2048,256], index: 1, kind: input, shape index: {}]   ;;  %s3665_s0 = inlined_call_operand.vmem [shape: bf16[2,2,2048], index: 0, kind: input, shape index: {}]   ;;  %s3666_s4 = inlined_call_operand.<no memory space> [shape: f32[1,1], index: 4, kind: input, shape index: {}]   ;;  %s3667_s2 = inlined_call_operand.vmem [shape: f32[1,256], index: 2, kind: input, shape index: {}]   ;;  %s3668_s3 = inlined_call_operand.vmem [shape: f32[1,256], index: 3, kind: input, shape index: {}]   ;;  %s3669_s5 = inlined_call_operand.vmem [shape: f32[2,1], index: 5, kind: output, shape index: {}]  }
   0x1   :  { %v2401_v0 = vld [vmem:[%s3664_s1 + $0x4] ss:$8 sps:$4 sm:$0xff]   ;;  %v2405_v2 = vld [vmem:[%s3664_s1] ss:$8 sps:$4 sm:$0xff]   ;;  %v2407_v4 = vld [vmem:[%s3664_s1 + $0x14] ss:$8 sps:$4 sm:$0xff]   ;;  %v297_v42 = vunpack.c.l.s4 %v2789_v41 }
   0x2   :  { %v2403_v1 = vld [vmem:[%s3664_s1 + $0x404] ss:$8 sps:$4 sm:$0xff]   ;;  %1689 = vmatprep.subr.bf16.mxu1 %v2401_v0  ;;  %v2406_v3 = vld [vmem:[%s3664_s1 + $0x400] ss:$8 sps:$4 sm:$0xff]   ;;  %v2409_v5 = vld [vmem:[%s3664_s1 + $0x414] ss:$8 sps:$4 sm:$0xff]  }
   0x3   :  { %1853 = vmatprep.subr.bf16.mxu0 %v2403_v1  ;;  %1690 = vmatpush1.bf16.msra.mxu1 %v2405_v2  ;;  %v2411_v6 = vld [vmem:[%s3664_s1 + $0x10] ss:$8 sps:$4 sm:$0xff]   ;;  %v2413_v8 = vld [vmem:[%s3664_s1 + $0x24] ss:$8 sps:$4 sm:$0xff]   ;;  %v2417_v10 = vld [vmem:[%s3664_s1 + $0x20] ss:$8 sps:$4 sm:$0xff]   ;;  %v298_v48 = vunpack.c.0.s8 %v297_v42 }
   0x4   :  { %1854 = vmatpush1.bf16.msra.mxu0 %v2406_v3  ;;  %1691 = vmatprep.subr.bf16.mxu1 %v2407_v4  ;;  %v2412_v7 = vld [vmem:[%s3664_s1 + $0x410] ss:$8 sps:$4 sm:$0xff]   ;;  %v2415_v9 = vld [vmem:[%s3664_s1 + $0x424] ss:$8 sps:$4 sm:$0xff]   ;;  %v2418_v11 = vld [vmem:[%s3664_s1 + $0x420] ss:$8 sps:$4 sm:$0xff]  }
   0x5   :  { %1855 = vmatprep.subr.bf16.mxu0 %v2409_v5  ;;  %v2419_v12 = vld [vmem:[%s3664_s1 + $0x34] ss:$8 sps:$4 sm:$0xff]   ;;  %v2423_v14 = vld [vmem:[%s3664_s1 + $0x30] ss:$8 sps:$4 sm:$0xff]   ;;  %v2425_v16 = vld [vmem:[%s3664_s1 + $0x44] ss:$8 sps:$4 sm:$0xff]  }
   0x6   :  { %v2421_v13 = vld [vmem:[%s3664_s1 + $0x434] ss:$8 sps:$4 sm:$0xff]   ;;  %v2424_v15 = vld [vmem:[%s3664_s1 + $0x430] ss:$8 sps:$4 sm:$0xff]   ;;  %v2427_v17 = vld [vmem:[%s3664_s1 + $0x444] ss:$8 sps:$4 sm:$0xff]  }
   0x7   :  { %1692 = vmatpush1.bf16.msra.mxu1 %v2411_v6  ;;  %v2429_v18 = vld [vmem:[%s3664_s1 + $0x40] ss:$8 sps:$4 sm:$0xff]   ;;  %v2431_v20 = vld [vmem:[%s3664_s1 + $0x54] ss:$8 sps:$4 sm:$0xff]   ;;  %v2435_v22 = vld [vmem:[%s3664_s1 + $0x50] ss:$8 sps:$4 sm:$0xff]  }
   0x8   :  { %1856 = vmatpush1.bf16.msra.mxu0 %v2412_v7  ;;  %1693 = vmatprep.subr.bf16.mxu1 %v2413_v8  ;;  %v2430_v19 = vld [vmem:[%s3664_s1 + $0x440] ss:$8 sps:$4 sm:$0xff]   ;;  %v2433_v21 = vld [vmem:[%s3664_s1 + $0x454] ss:$8 sps:$4 sm:$0xff]   ;;  %v2436_v23 = vld [vmem:[%s3664_s1 + $0x450] ss:$8 sps:$4 sm:$0xff]  }
   0x9   :  { %1857 = vmatprep.subr.bf16.mxu0 %v2415_v9  ;;  %v2437_v24 = vld [vmem:[%s3664_s1 + $0x64] ss:$8 sps:$4 sm:$0xff]   ;;  %v2441_v26 = vld [vmem:[%s3664_s1 + $0x60] ss:$8 sps:$4 sm:$0xff]   ;;  %v2443_v28 = vld [vmem:[%s3664_s1 + $0x74] ss:$8 sps:$4 sm:$0xff]  }
   0xa   :  { %v2439_v25 = vld [vmem:[%s3664_s1 + $0x464] ss:$8 sps:$4 sm:$0xff]   ;;  %v2442_v27 = vld [vmem:[%s3664_s1 + $0x460] ss:$8 sps:$4 sm:$0xff]   ;;  %v2445_v29 = vld [vmem:[%s3664_s1 + $0x474] ss:$8 sps:$4 sm:$0xff]  }
   0xb   :  { %1694 = vmatpush1.bf16.msra.mxu1 %v2417_v10  ;;  %v2447_v30 = vld [vmem:[%s3664_s1 + $0x70] ss:$8 sps:$4 sm:$0xff]   ;;  %v2449_v32 = vld [vmem:[%s3664_s1 + $0x84] ss:$8 sps:$4 sm:$0xff]   ;;  %v2453_v34 = vld [vmem:[%s3664_s1 + $0x80] ss:$8 sps:$4 sm:$0xff]  }
   0xc   :  { %1858 = vmatpush1.bf16.msra.mxu0 %v2418_v11  ;;  %1695 = vmatprep.subr.bf16.mxu1 %v2419_v12  ;;  %v2448_v31 = vld [vmem:[%s3664_s1 + $0x470] ss:$8 sps:$4 sm:$0xff]   ;;  %v2451_v33 = vld [vmem:[%s3664_s1 + $0x484] ss:$8 sps:$4 sm:$0xff]   ;;  %v2454_v35 = vld [vmem:[%s3664_s1 + $0x480] ss:$8 sps:$4 sm:$0xff]  }
   0xd   :  { %1859 = vmatprep.subr.bf16.mxu0 %v2421_v13  ;;  %v2455_v36 = vld [vmem:[%s3664_s1 + $0x94] ss:$8 sps:$4 sm:$0xff]   ;;  %v2459_v38 = vld [vmem:[%s3664_s1 + $0x90] ss:$8 sps:$4 sm:$0xff]   ;;  %v2461_v40 = vld [vmem:[%s3664_s1 + $0xa4] ss:$8 sps:$4 sm:$0xff]  }
   0xe   :  { %v2457_v37 = vld [vmem:[%s3664_s1 + $0x494] ss:$8 sps:$4 sm:$0xff]   ;;  %v2460_v39 = vld [vmem:[%s3664_s1 + $0x490] ss:$8 sps:$4 sm:$0xff]   ;;  %v2463_v44 = vld [vmem:[%s3664_s1 + $0x4a4] ss:$8 sps:$4 sm:$0xff]  }
   0xf   :  { %1696 = vmatpush1.bf16.msra.mxu1 %v2423_v14  ;;  %v2465_v45 = vld [vmem:[%s3664_s1 + $0xa0] ss:$8 sps:$4 sm:$0xff]   ;;  %v2467_v47 = vld [vmem:[%s3664_s1 + $0xb4] ss:$8 sps:$4 sm:$0xff]   ;;  %v2957_v49 = vshrl.u32 %v299_v43, 7 }
  0x10   :  { %1860 = vmatpush1.bf16.msra.mxu0 %v2424_v15  ;;  %1697 = vmatprep.subr.bf16.mxu1 %v2425_v16  ;;  %v2466_v46 = vld [vmem:[%s3664_s1 + $0x4a0] ss:$8 sps:$4 sm:$0xff]   ;;  %v2469_v50 = vld [vmem:[%s3664_s1 + $0x4b4] ss:$8 sps:$4 sm:$0xff]   ;;  %v2471_v51 = vld [vmem:[%s3664_s1 + $0xb0] ss:$8 sps:$4 sm:$0xff]  }
  0x11   :  { %1861 = vmatprep.subr.bf16.mxu0 %v2427_v17  ;;  %v2472_v52 = vld [vmem:[%s3664_s1 + $0x4b0] ss:$8 sps:$4 sm:$0xff]   ;;  %v27_v53 = vld [vmem:[%s3665_s0] sm:$0xff]  ;;  %v2981_v58 = vsub.s32 %v298_v48, %v2957_v49  ;;  %v28_v59 = vld [vmem:[%s3665_s0 + $0x8] sm:$0xff] }
  0x12   :  { %v2112_v54 = vld [vmem:[%s3665_s0 + $0x10] sm:$0xff]  ;;  %v2473_v55 = vld [vmem:[%s3664_s1 + $0xc4] ss:$8 sps:$4 sm:$0xff]   ;;  %v2113_v60 = vld [vmem:[%s3665_s0 + $0x18] sm:$0xff] }
  0x13   :  { %1698 = vmatpush1.bf16.msra.mxu1 %v2429_v18  ;;  %v2475_v56 = vld [vmem:[%s3664_s1 + $0x4c4] ss:$8 sps:$4 sm:$0xff]   ;;  %v32_v57 = vsub.bf16 %v27_v53, %v2112_v54  ;;  %v33_v62 = vsub.bf16 %v28_v59, %v2113_v60  ;;  %v2477_v63 = vld [vmem:[%s3664_s1 + $0xc0] ss:$8 sps:$4 sm:$0xff]   ;;  %v2479_v3 = vld [vmem:[%s3664_s1 + $0xd4] ss:$8 sps:$4 sm:$0xff]  }
  0x14   :  { %1862 = vmatpush1.bf16.msra.mxu0 %v2430_v19  ;;  %1699 = vmatprep.subr.bf16.mxu1 %v2431_v20  ;;  %v2478_v0 = vld [vmem:[%s3664_s1 + $0x4c0] ss:$8 sps:$4 sm:$0xff]   ;;  %v2481_v4 = vld [vmem:[%s3664_s1 + $0x4d4] ss:$8 sps:$4 sm:$0xff]   ;;  %v2483_v7 = vld [vmem:[%s3664_s1 + $0xd0] ss:$8 sps:$4 sm:$0xff]  }
  0x15   :  { %1863 = vmatprep.subr.bf16.mxu0 %v2433_v21  ;;  %v34_v61 = vand.u32 2147450879, %v32_v57  ;;  %v35_v2 = vand.u32 2147450879, %v33_v62  ;;  %v2484_v8 = vld [vmem:[%s3664_s1 + $0x4d0] ss:$8 sps:$4 sm:$0xff]  }
  0x16   :  { %v2485_v11 = vld [vmem:[%s3664_s1 + $0xe4] ss:$8 sps:$4 sm:$0xff]   ;;  %v2489_v14 = vld [vmem:[%s3664_s1 + $0xe0] ss:$8 sps:$4 sm:$0xff]   ;;  %v2491_v16 = vld [vmem:[%s3664_s1 + $0xf4] ss:$8 sps:$4 sm:$0xff]  }
  0x17   :  { %1700 = vmatpush1.bf16.msra.mxu1 %v2435_v22  ;;  %v302_v1 = vrot.slane %v34_v61, %v2981_v58  ;;  %v351_v6 = vrot.slane %v35_v2, %v2981_v58  ;;  %v2487_v12 = vld [vmem:[%s3664_s1 + $0x4e4] ss:$8 sps:$4 sm:$0xff]   ;;  %v2490_v15 = vld [vmem:[%s3664_s1 + $0x4e0] ss:$8 sps:$4 sm:$0xff]   ;;  %v2493_v17 = vld [vmem:[%s3664_s1 + $0x4f4] ss:$8 sps:$4 sm:$0xff]   ;;  %v295_v18 = vcombine.high %v34_v61, %v34_v61  ;;  %v344_v19 = vcombine.high %v35_v2, %v35_v2 }
  0x18   :  { %1864 = vmatpush1.bf16.msra.mxu0 %v2436_v23  ;;  %1701 = vmatprep.subr.bf16.mxu1 %v2437_v24  ;;  %v2495_v20 = vld [vmem:[%s3664_s1 + $0xf0] ss:$8 sps:$4 sm:$0xff]   ;;  %v2499_v22 = vld [vmem:[%s3664_s1 + $0x104] ss:$8 sps:$4 sm:$0xff]   ;;  %v2521_v53 = vld [vmem:[%s3664_s1 + $0x140] ss:$8 sps:$4 sm:$0xff]  }
  0x19   :  { %1865 = vmatprep.subr.bf16.mxu0 %v2439_v25  ;;  %v310_v5 = vcombine.high %v302_v1, %v302_v1  ;;  %v359_v10 = vcombine.high %v351_v6, %v351_v6  ;;  %v2496_v21 = vld [vmem:[%s3664_s1 + $0x4f0] ss:$8 sps:$4 sm:$0xff]   ;;  %v2502_v23 = vld [vmem:[%s3664_s1 + $0x504] ss:$8 sps:$4 sm:$0xff]   ;;  %v309_v24 = vrot.slane %v295_v18, %v2981_v58  ;;  %v358_v25 = vrot.slane %v344_v19, %v2981_v58  ;;  %v2524_v54 = vld [vmem:[%s3664_s1 + $0x540] ss:$8 sps:$4 sm:$0xff]  }
  0x1a   :  { %v2506_v41 = vld [vmem:[%s3664_s1 + $0x510] ss:$8 sps:$4 sm:$0xff]   ;;  %v2511_v42 = vld [vmem:[%s3664_s1 + $0x124] ss:$8 sps:$4 sm:$0xff]   ;;  %v2533_v61 = vld [vmem:[%s3664_s1 + $0x160] ss:$8 sps:$4 sm:$0xff]  }
  0x1b   :  { %1702 = vmatpush1.bf16.msra.mxu1 %v2441_v26  ;;  %v332_v9 = vrot.slane %v310_v5, %v2981_v58  ;;  %v381_v13 = vrot.slane %v359_v10, %v2981_v58  ;;  %v2497_v26 = vld [vmem:[%s3664_s1 + $0x100] ss:$8 sps:$4 sm:$0xff]   ;;  %v2514_v43 = vld [vmem:[%s3664_s1 + $0x524] ss:$8 sps:$4 sm:$0xff]   ;;  %v2515_v48 = vld [vmem:[%s3664_s1 + $0x130] ss:$8 sps:$4 sm:$0xff]  }
  0x1c   :  { %1866 = vmatpush1.bf16.msra.mxu0 %v2442_v27  ;;  %1703 = vmatprep.subr.bf16.mxu1 %v2443_v28  ;;  %v3047_v27 = vrot.slane %v302_v1, %v2981_v58  ;;  %v3050_v28 = vrot.slane %v351_v6, %v2981_v58  ;;  %v2527_v57 = vld [vmem:[%s3664_s1 + $0x150] ss:$8 sps:$4 sm:$0xff]   ;;  %v2535_v59 = vld [vmem:[%s3664_s1 + $0x164] ss:$8 sps:$4 sm:$0xff]   ;;  %v2536_v62 = vld [vmem:[%s3664_s1 + $0x560] ss:$8 sps:$4 sm:$0xff]  }
  0x1d   :  { %1867 = vmatprep.subr.bf16.mxu0 %v2445_v29  ;;  %1721 = vmatprep.mubr.bf16.mxu1 %v332_v9  ;;  %v311_v29 = vcombine.high %v309_v24, %v309_v24  ;;  %v2538_v60 = vld [vmem:[%s3664_s1 + $0x564] ss:$8 sps:$4 sm:$0xff]   ;;  %v2539_v1 = vld [vmem:[%s3664_s1 + $0x170] ss:$8 sps:$4 sm:$0xff]   ;;  %v2545_v5 = vld [vmem:[%s3664_s1 + $0x180] ss:$8 sps:$4 sm:$0xff]  }
  0x1e   :  { %1885 = vmatprep.mubr.bf16.mxu0 %v381_v13  ;;  %v2542_v2 = vld [vmem:[%s3664_s1 + $0x570] ss:$8 sps:$4 sm:$0xff]   ;;  %v2548_v6 = vld [vmem:[%s3664_s1 + $0x580] ss:$8 sps:$4 sm:$0xff]   ;;  %v2571_v19 = vld [vmem:[%s3664_s1 + $0x1c4] ss:$8 sps:$4 sm:$0xff]  }
  0x1f   :  { %1704 = vmatpush1.bf16.msra.mxu1 %v2447_v30  ;;  %v360_v30 = vcombine.high %v358_v25, %v358_v25  ;;  %v2554_v10 = vld [vmem:[%s3664_s1 + $0x590] ss:$8 sps:$4 sm:$0xff]  }
  0x20   :  { %1868 = vmatpush1.bf16.msra.mxu0 %v2448_v31  ;;  %1705 = vmatprep.subr.bf16.mxu1 %v2449_v32  ;;  %v2500_v31 = vld [vmem:[%s3664_s1 + $0x500] ss:$8 sps:$4 sm:$0xff]   ;;  %v2505_v32 = vld [vmem:[%s3664_s1 + $0x114] ss:$8 sps:$4 sm:$0xff]   ;;  %v2566_v18 = vld [vmem:[%s3664_s1 + $0x5b0] ss:$8 sps:$4 sm:$0xff]  }
  0x21   :  { %1869 = vmatprep.subr.bf16.mxu0 %v2451_v33  ;;  %v2508_v33 = vld [vmem:[%s3664_s1 + $0x514] ss:$8 sps:$4 sm:$0xff]  }
  0x23   :  { %1706 = vmatpush1.bf16.msra.mxu1 %v2453_v34  ;;  %v3062_v34 = vrot.slane %v311_v29, %v2981_v58  ;;  %v2583_v29 = vld [vmem:[%s3664_s1 + $0x1e4] ss:$8 sps:$4 sm:$0xff]  }
  0x24   :  { %1870 = vmatpush1.bf16.msra.mxu0 %v2454_v35  ;;  %1707 = vmatprep.subr.bf16.mxu1 %v2455_v36  ;;  %v3065_v35 = vrot.slane %v360_v30, %v2981_v58  ;;  %v3068_v36 = vrot.slane %v309_v24, %v2981_v58  ;;  %v2580_v24 = vld [vmem:[%s3664_s1 + $0x5d4] ss:$8 sps:$4 sm:$0xff]   ;;  %v2586_v30 = vld [vmem:[%s3664_s1 + $0x5e4] ss:$8 sps:$4 sm:$0xff]  }
  0x25   :  { %1871 = vmatprep.subr.bf16.mxu0 %v2457_v37  ;;  %v342_v37 = vcombine.high %v332_v9, %v332_v9  ;;  %v2551_v9 = vld [vmem:[%s3664_s1 + $0x190] ss:$8 sps:$4 sm:$0xff]  }
  0x27   :  { %1708 = vmatpush1.bf16.msra.mxu1 %v2459_v38  ;;  %v391_v38 = vcombine.high %v381_v13, %v381_v13  ;;  %v2557_v13 = vld [vmem:[%s3664_s1 + $0x1a0] ss:$8 sps:$4 sm:$0xff]  }
  0x28   :  { %1872 = vmatpush1.bf16.msra.mxu0 %v2460_v39  ;;  %1709 = vmatprep.subr.bf16.mxu1 %v2461_v40  ;;  %v3071_v39 = vrot.slane %v358_v25, %v2981_v58  ;;  %v2503_v40 = vld [vmem:[%s3664_s1 + $0x110] ss:$8 sps:$4 sm:$0xff]  }
  0x29   :  { %1873 = vmatprep.subr.bf16.mxu0 %v2463_v44  ;;  %v2509_v44 = vld [vmem:[%s3664_s1 + $0x120] ss:$8 sps:$4 sm:$0xff]   ;;  %v2530_v58 = vld [vmem:[%s3664_s1 + $0x550] ss:$8 sps:$4 sm:$0xff]  }
  0x2a   :  { %v2575_v25 = vld [vmem:[%s3664_s1 + $0x1d0] ss:$8 sps:$4 sm:$0xff]  }
  0x2b   :  { %1710 = vmatpush1.bf16.msra.mxu1 %v2465_v45  ;;  %v2512_v45 = vld [vmem:[%s3664_s1 + $0x520] ss:$8 sps:$4 sm:$0xff]  }
  0x2c   :  { %1874 = vmatpush1.bf16.msra.mxu0 %v2466_v46  ;;  %1711 = vmatprep.subr.bf16.mxu1 %v2467_v47  ;;  %v2517_v46 = vld [vmem:[%s3664_s1 + $0x134] ss:$8 sps:$4 sm:$0xff]  }
  0x2d   :  { %1875 = vmatprep.subr.bf16.mxu0 %v2469_v50  ;;  %v2520_v47 = vld [vmem:[%s3664_s1 + $0x534] ss:$8 sps:$4 sm:$0xff]   ;;  %v2518_v50 = vld [vmem:[%s3664_s1 + $0x530] ss:$8 sps:$4 sm:$0xff]  }
  0x2f   :  { %1712 = vmatpush1.bf16.msra.mxu1 %v2471_v51  ;;  %v2523_v51 = vld [vmem:[%s3664_s1 + $0x144] ss:$8 sps:$4 sm:$0xff]  }
  0x30   :  { %1876 = vmatpush1.bf16.msra.mxu0 %v2472_v52  ;;  %1713 = vmatprep.subr.bf16.mxu1 %v2473_v55  ;;  %v2526_v52 = vld [vmem:[%s3664_s1 + $0x544] ss:$8 sps:$4 sm:$0xff]   ;;  %v2529_v55 = vld [vmem:[%s3664_s1 + $0x154] ss:$8 sps:$4 sm:$0xff]  }
  0x31   :  { %1877 = vmatprep.subr.bf16.mxu0 %v2475_v56  ;;  %v2532_v56 = vld [vmem:[%s3664_s1 + $0x554] ss:$8 sps:$4 sm:$0xff]  }
  0x33   :  { %1714 = vmatpush1.bf16.msra.mxu1 %v2477_v63  ;;  %v2541_v63 = vld [vmem:[%s3664_s1 + $0x174] ss:$8 sps:$4 sm:$0xff]  }
  0x34   :  { %1878 = vmatpush1.bf16.msra.mxu0 %v2478_v0  ;;  %1715 = vmatprep.subr.bf16.mxu1 %v2479_v3  ;;  %v2544_v0 = vld [vmem:[%s3664_s1 + $0x574] ss:$8 sps:$4 sm:$0xff]   ;;  %v2547_v3 = vld [vmem:[%s3664_s1 + $0x184] ss:$8 sps:$4 sm:$0xff]  }
  0x35   :  { %1879 = vmatprep.subr.bf16.mxu0 %v2481_v4  ;;  %v2550_v4 = vld [vmem:[%s3664_s1 + $0x584] ss:$8 sps:$4 sm:$0xff]  }
  0x37   :  { %1716 = vmatpush1.bf16.msra.mxu1 %v2483_v7  ;;  %v2553_v7 = vld [vmem:[%s3664_s1 + $0x194] ss:$8 sps:$4 sm:$0xff]  }
  0x38   :  { %1880 = vmatpush1.bf16.msra.mxu0 %v2484_v8  ;;  %1717 = vmatprep.subr.bf16.mxu1 %v2485_v11  ;;  %v2556_v8 = vld [vmem:[%s3664_s1 + $0x594] ss:$8 sps:$4 sm:$0xff]   ;;  %v2559_v11 = vld [vmem:[%s3664_s1 + $0x1a4] ss:$8 sps:$4 sm:$0xff]  }
  0x39   :  { %1881 = vmatprep.subr.bf16.mxu0 %v2487_v12  ;;  %v2562_v12 = vld [vmem:[%s3664_s1 + $0x5a4] ss:$8 sps:$4 sm:$0xff]  }
  0x3b   :  { %1718 = vmatpush1.bf16.msra.mxu1 %v2489_v14  ;;  %v2560_v14 = vld [vmem:[%s3664_s1 + $0x5a0] ss:$8 sps:$4 sm:$0xff]  }
  0x3c   :  { %1882 = vmatpush1.bf16.msra.mxu0 %v2490_v15  ;;  %1719 = vmatprep.subr.bf16.mxu1 %v2491_v16  ;;  %v2565_v15 = vld [vmem:[%s3664_s1 + $0x1b4] ss:$8 sps:$4 sm:$0xff]  }
  0x3d   :  { %1883 = vmatprep.subr.bf16.mxu0 %v2493_v17  ;;  %v2568_v16 = vld [vmem:[%s3664_s1 + $0x5b4] ss:$8 sps:$4 sm:$0xff]   ;;  %v2563_v17 = vld [vmem:[%s3664_s1 + $0x1b0] ss:$8 sps:$4 sm:$0xff]  }
  0x3f   :  { %1720 = vmatpush1.bf16.msra.mxu1 %v2495_v20  ;;  %v2574_v20 = vld [vmem:[%s3664_s1 + $0x5c4] ss:$8 sps:$4 sm:$0xff]  }
  0x40   :  { %1884 = vmatpush1.bf16.msra.mxu0 %v2496_v21  ;;  %1730 = vmatprep.subr.bf16.mxu1 %v2499_v22  ;;  %v2569_v21 = vld [vmem:[%s3664_s1 + $0x1c0] ss:$8 sps:$4 sm:$0xff]  }
  0x41   :  { %1894 = vmatprep.subr.bf16.mxu0 %v2502_v23  ;;  %v2572_v22 = vld [vmem:[%s3664_s1 + $0x5c0] ss:$8 sps:$4 sm:$0xff]   ;;  %v2577_v23 = vld [vmem:[%s3664_s1 + $0x1d4] ss:$8 sps:$4 sm:$0xff]  }
  0x42   :  { %1722 = vmatmul.mubr.bf16.vlgmr.msra.gmra.mrb[0].mxu1 %v3047_v27 }
  0x43   :  { %1886 = vmatmul.mubr.bf16.vlgmr.msra.gmra.mrb[0].mxu0 %v3050_v28  ;;  %1731 = vmatpush1.bf16.msra.mxu1 %v2497_v26  ;;  %v2578_v26 = vld [vmem:[%s3664_s1 + $0x5d0] ss:$8 sps:$4 sm:$0xff]  }
  0x44   :  { %1895 = vmatpush1.bf16.msra.mxu0 %v2500_v31  ;;  %1732 = vmatprep.subr.bf16.mxu1 %v2505_v32  ;;  %v2581_v31 = vld [vmem:[%s3664_s1 + $0x1e0] ss:$8 sps:$4 sm:$0xff]  }
  0x45   :  { %1896 = vmatprep.subr.bf16.mxu0 %v2508_v33  ;;  %1762 = vmatprep.mubr.bf16.mxu1 %v342_v37  ;;  %v2584_v32 = vld [vmem:[%s3664_s1 + $0x5e0] ss:$8 sps:$4 sm:$0xff]   ;;  %v2589_v33 = vld [vmem:[%s3664_s1 + $0x1f4] ss:$8 sps:$4 sm:$0xff]  }
  0x46   :  { %1926 = vmatprep.mubr.bf16.mxu0 %v391_v38  ;;  %v2592_v37 = vld [vmem:[%s3664_s1 + $0x5f4] ss:$8 sps:$4 sm:$0xff]   ;;  %v2587_v38 = vld [vmem:[%s3664_s1 + $0x1f0] ss:$8 sps:$4 sm:$0xff]  }
  0x47   :  { %1733 = vmatpush1.bf16.msra.mxu1 %v2503_v40  ;;  %v2590_v40 = vld [vmem:[%s3664_s1 + $0x5f0] ss:$8 sps:$4 sm:$0xff]  }
  0x48   :  { %1897 = vmatpush1.bf16.msra.mxu0 %v2506_v41  ;;  %1734 = vmatprep.subr.bf16.mxu1 %v2511_v42  ;;  %v2595_v41 = vld [vmem:[%s3664_s1 + $0x204] ss:$8 sps:$4 sm:$0xff]  }
  0x49   :  { %1898 = vmatprep.subr.bf16.mxu0 %v2514_v43  ;;  %v2598_v42 = vld [vmem:[%s3664_s1 + $0x604] ss:$8 sps:$4 sm:$0xff]   ;;  %v340_v43 = vcombine.high %v3047_v27, %v3047_v27  ;;  %v2604_v27 = vld [vmem:[%s3664_s1 + $0x614] ss:$8 sps:$4 sm:$0xff]  }
  0x4b   :  { %1735 = vmatpush1.bf16.msra.mxu1 %v2509_v44  ;;  %v389_v44 = vcombine.high %v3050_v28, %v3050_v28  ;;  %v2599_v28 = vld [vmem:[%s3664_s1 + $0x210] ss:$8 sps:$4 sm:$0xff]  }
  0x4c   :  { %1899 = vmatpush1.bf16.msra.mxu0 %v2512_v45  ;;  %1736 = vmatprep.subr.bf16.mxu1 %v2517_v46  ;;  %v2593_v45 = vld [vmem:[%s3664_s1 + $0x200] ss:$8 sps:$4 sm:$0xff]  }
  0x4d   :  { %1900 = vmatprep.subr.bf16.mxu0 %v2520_v47  ;;  %v2596_v46 = vld [vmem:[%s3664_s1 + $0x600] ss:$8 sps:$4 sm:$0xff]   ;;  %v2601_v47 = vld [vmem:[%s3664_s1 + $0x214] ss:$8 sps:$4 sm:$0xff]  }
  0x4f   :  { %1737 = vmatpush1.bf16.msra.mxu1 %v2515_v48  ;;  %v2602_v48 = vld [vmem:[%s3664_s1 + $0x610] ss:$8 sps:$4 sm:$0xff]  }
  0x50   :  { %1901 = vmatpush1.bf16.msra.mxu0 %v2518_v50  ;;  %1738 = vmatprep.subr.bf16.mxu1 %v2523_v51  ;;  %v2607_v50 = vld [vmem:[%s3664_s1 + $0x224] ss:$8 sps:$4 sm:$0xff]  }
  0x51   :  { %1902 = vmatprep.subr.bf16.mxu0 %v2526_v52  ;;  %v2610_v51 = vld [vmem:[%s3664_s1 + $0x624] ss:$8 sps:$4 sm:$0xff]   ;;  %v2605_v52 = vld [vmem:[%s3664_s1 + $0x220] ss:$8 sps:$4 sm:$0xff]  }
  0x53   :  { %1739 = vmatpush1.bf16.msra.mxu1 %v2521_v53  ;;  %v2608_v53 = vld [vmem:[%s3664_s1 + $0x620] ss:$8 sps:$4 sm:$0xff]  }
  0x54   :  { %1903 = vmatpush1.bf16.msra.mxu0 %v2524_v54  ;;  %1740 = vmatprep.subr.bf16.mxu1 %v2529_v55  ;;  %v2613_v54 = vld [vmem:[%s3664_s1 + $0x234] ss:$8 sps:$4 sm:$0xff]  }
  0x55   :  { %1904 = vmatprep.subr.bf16.mxu0 %v2532_v56  ;;  %v2616_v55 = vld [vmem:[%s3664_s1 + $0x634] ss:$8 sps:$4 sm:$0xff]   ;;  %v2611_v56 = vld [vmem:[%s3664_s1 + $0x230] ss:$8 sps:$4 sm:$0xff]  }
  0x57   :  { %1741 = vmatpush1.bf16.msra.mxu1 %v2527_v57  ;;  %v2614_v57 = vld [vmem:[%s3664_s1 + $0x630] ss:$8 sps:$4 sm:$0xff]  }
  0x58   :  { %1905 = vmatpush1.bf16.msra.mxu0 %v2530_v58  ;;  %1742 = vmatprep.subr.bf16.mxu1 %v2535_v59  ;;  %v2619_v58 = vld [vmem:[%s3664_s1 + $0x244] ss:$8 sps:$4 sm:$0xff]  }
  0x59   :  { %1906 = vmatprep.subr.bf16.mxu0 %v2538_v60  ;;  %v2622_v59 = vld [vmem:[%s3664_s1 + $0x644] ss:$8 sps:$4 sm:$0xff]   ;;  %v2617_v60 = vld [vmem:[%s3664_s1 + $0x240] ss:$8 sps:$4 sm:$0xff]  }
  0x5b   :  { %1743 = vmatpush1.bf16.msra.mxu1 %v2533_v61  ;;  %v2620_v61 = vld [vmem:[%s3664_s1 + $0x640] ss:$8 sps:$4 sm:$0xff]  }
  0x5c   :  { %1907 = vmatpush1.bf16.msra.mxu0 %v2536_v62  ;;  %1744 = vmatprep.subr.bf16.mxu1 %v2541_v63  ;;  %v2625_v62 = vld [vmem:[%s3664_s1 + $0x254] ss:$8 sps:$4 sm:$0xff]  }
  0x5d   :  { %1908 = vmatprep.subr.bf16.mxu0 %v2544_v0  ;;  %v2628_v63 = vld [vmem:[%s3664_s1 + $0x654] ss:$8 sps:$4 sm:$0xff]   ;;  %v2623_v0 = vld [vmem:[%s3664_s1 + $0x250] ss:$8 sps:$4 sm:$0xff]  }
  0x5f   :  { %1745 = vmatpush1.bf16.msra.mxu1 %v2539_v1  ;;  %v2626_v1 = vld [vmem:[%s3664_s1 + $0x650] ss:$8 sps:$4 sm:$0xff]  }
  0x60   :  { %1909 = vmatpush1.bf16.msra.mxu0 %v2542_v2  ;;  %1746 = vmatprep.subr.bf16.mxu1 %v2547_v3  ;;  %v2631_v2 = vld [vmem:[%s3664_s1 + $0x264] ss:$8 sps:$4 sm:$0xff]  }
  0x61   :  { %1910 = vmatprep.subr.bf16.mxu0 %v2550_v4  ;;  %v2634_v3 = vld [vmem:[%s3664_s1 + $0x664] ss:$8 sps:$4 sm:$0xff]   ;;  %v2629_v4 = vld [vmem:[%s3664_s1 + $0x260] ss:$8 sps:$4 sm:$0xff]  }
  0x63   :  { %1747 = vmatpush1.bf16.msra.mxu1 %v2545_v5  ;;  %v2632_v5 = vld [vmem:[%s3664_s1 + $0x660] ss:$8 sps:$4 sm:$0xff]  }
  0x64   :  { %1911 = vmatpush1.bf16.msra.mxu0 %v2548_v6  ;;  %1748 = vmatprep.subr.bf16.mxu1 %v2553_v7  ;;  %v2637_v6 = vld [vmem:[%s3664_s1 + $0x274] ss:$8 sps:$4 sm:$0xff]  }
  0x65   :  { %1912 = vmatprep.subr.bf16.mxu0 %v2556_v8  ;;  %v2640_v7 = vld [vmem:[%s3664_s1 + $0x674] ss:$8 sps:$4 sm:$0xff]   ;;  %v2635_v8 = vld [vmem:[%s3664_s1 + $0x270] ss:$8 sps:$4 sm:$0xff]  }
  0x67   :  { %1749 = vmatpush1.bf16.msra.mxu1 %v2551_v9  ;;  %v2638_v9 = vld [vmem:[%s3664_s1 + $0x670] ss:$8 sps:$4 sm:$0xff]  }
  0x68   :  { %1913 = vmatpush1.bf16.msra.mxu0 %v2554_v10  ;;  %1750 = vmatprep.subr.bf16.mxu1 %v2559_v11  ;;  %v2643_v10 = vld [vmem:[%s3664_s1 + $0x284] ss:$8 sps:$4 sm:$0xff]  }
  0x69   :  { %1914 = vmatprep.subr.bf16.mxu0 %v2562_v12  ;;  %v2646_v11 = vld [vmem:[%s3664_s1 + $0x684] ss:$8 sps:$4 sm:$0xff]   ;;  %v2641_v12 = vld [vmem:[%s3664_s1 + $0x280] ss:$8 sps:$4 sm:$0xff]  }
  0x6b   :  { %1751 = vmatpush1.bf16.msra.mxu1 %v2557_v13  ;;  %v2644_v13 = vld [vmem:[%s3664_s1 + $0x680] ss:$8 sps:$4 sm:$0xff]  }
  0x6c   :  { %1915 = vmatpush1.bf16.msra.mxu0 %v2560_v14  ;;  %1752 = vmatprep.subr.bf16.mxu1 %v2565_v15  ;;  %v2649_v14 = vld [vmem:[%s3664_s1 + $0x294] ss:$8 sps:$4 sm:$0xff]  }
  0x6d   :  { %1916 = vmatprep.subr.bf16.mxu0 %v2568_v16  ;;  %v2652_v15 = vld [vmem:[%s3664_s1 + $0x694] ss:$8 sps:$4 sm:$0xff]   ;;  %v2647_v16 = vld [vmem:[%s3664_s1 + $0x290] ss:$8 sps:$4 sm:$0xff]  }
  0x6f   :  { %1753 = vmatpush1.bf16.msra.mxu1 %v2563_v17  ;;  %v2650_v17 = vld [vmem:[%s3664_s1 + $0x690] ss:$8 sps:$4 sm:$0xff]  }
  0x70   :  { %1917 = vmatpush1.bf16.msra.mxu0 %v2566_v18  ;;  %1754 = vmatprep.subr.bf16.mxu1 %v2571_v19  ;;  %v2655_v18 = vld [vmem:[%s3664_s1 + $0x2a4] ss:$8 sps:$4 sm:$0xff]  }
  0x71   :  { %1918 = vmatprep.subr.bf16.mxu0 %v2574_v20  ;;  %v2658_v19 = vld [vmem:[%s3664_s1 + $0x6a4] ss:$8 sps:$4 sm:$0xff]   ;;  %v2653_v20 = vld [vmem:[%s3664_s1 + $0x2a0] ss:$8 sps:$4 sm:$0xff]  }
  0x73   :  { %1755 = vmatpush1.bf16.msra.mxu1 %v2569_v21  ;;  %v2656_v21 = vld [vmem:[%s3664_s1 + $0x6a0] ss:$8 sps:$4 sm:$0xff]  }
  0x74   :  { %1919 = vmatpush1.bf16.msra.mxu0 %v2572_v22  ;;  %1756 = vmatprep.subr.bf16.mxu1 %v2577_v23  ;;  %v2661_v22 = vld [vmem:[%s3664_s1 + $0x2b4] ss:$8 sps:$4 sm:$0xff]  }
  0x75   :  { %1920 = vmatprep.subr.bf16.mxu0 %v2580_v24  ;;  %v2664_v23 = vld [vmem:[%s3664_s1 + $0x6b4] ss:$8 sps:$4 sm:$0xff]   ;;  %v2659_v24 = vld [vmem:[%s3664_s1 + $0x2b0] ss:$8 sps:$4 sm:$0xff]  }
  0x77   :  { %1757 = vmatpush1.bf16.msra.mxu1 %v2575_v25  ;;  %v2662_v25 = vld [vmem:[%s3664_s1 + $0x6b0] ss:$8 sps:$4 sm:$0xff]  }
  0x78   :  { %1921 = vmatpush1.bf16.msra.mxu0 %v2578_v26  ;;  %1758 = vmatprep.subr.bf16.mxu1 %v2583_v29  ;;  %v2667_v26 = vld [vmem:[%s3664_s1 + $0x2c4] ss:$8 sps:$4 sm:$0xff]  }
  0x79   :  { %1922 = vmatprep.subr.bf16.mxu0 %v2586_v30  ;;  %v2670_v29 = vld [vmem:[%s3664_s1 + $0x6c4] ss:$8 sps:$4 sm:$0xff]   ;;  %v2665_v30 = vld [vmem:[%s3664_s1 + $0x2c0] ss:$8 sps:$4 sm:$0xff]  }
  0x7b   :  { %1759 = vmatpush1.bf16.msra.mxu1 %v2581_v31  ;;  %v2668_v31 = vld [vmem:[%s3664_s1 + $0x6c0] ss:$8 sps:$4 sm:$0xff]  }
  0x7c   :  { %1923 = vmatpush1.bf16.msra.mxu0 %v2584_v32  ;;  %1760 = vmatprep.subr.bf16.mxu1 %v2589_v33  ;;  %v2673_v32 = vld [vmem:[%s3664_s1 + $0x2d4] ss:$8 sps:$4 sm:$0xff]  }
  0x7d   :  { %1924 = vmatprep.subr.bf16.mxu0 %v2592_v37  ;;  %v2676_v33 = vld [vmem:[%s3664_s1 + $0x6d4] ss:$8 sps:$4 sm:$0xff]   ;;  %v2671_v37 = vld [vmem:[%s3664_s1 + $0x2d0] ss:$8 sps:$4 sm:$0xff]  }
  0x7f   :  { %1761 = vmatpush1.bf16.msra.mxu1 %v2587_v38  ;;  %v2674_v38 = vld [vmem:[%s3664_s1 + $0x6d0] ss:$8 sps:$4 sm:$0xff]  }
  0x80   :  { %1925 = vmatpush1.bf16.msra.mxu0 %v2590_v40  ;;  %1771 = vmatprep.subr.bf16.mxu1 %v2595_v41  ;;  %v2679_v40 = vld [vmem:[%s3664_s1 + $0x2e4] ss:$8 sps:$4 sm:$0xff]  }
  0x81   :  { %1935 = vmatprep.subr.bf16.mxu0 %v2598_v42  ;;  %v2682_v41 = vld [vmem:[%s3664_s1 + $0x6e4] ss:$8 sps:$4 sm:$0xff]   ;;  %v2677_v42 = vld [vmem:[%s3664_s1 + $0x2e0] ss:$8 sps:$4 sm:$0xff]  }
  0x82   :  { %1763 = vmatmul.mubr.bf16.vlgmr.msra.gmra.mrb[0].mxu1 %v340_v43  ;;  %v2680_v43 = vld [vmem:[%s3664_s1 + $0x6e0] ss:$8 sps:$4 sm:$0xff]  }
  0x83   :  { %1927 = vmatmul.mubr.bf16.vlgmr.msra.gmra.mrb[0].mxu0 %v389_v44  ;;  %1772 = vmatpush1.bf16.msra.mxu1 %v2593_v45  ;;  %v2685_v44 = vld [vmem:[%s3664_s1 + $0x2f4] ss:$8 sps:$4 sm:$0xff]  }
  0x84   :  { %1936 = vmatpush1.bf16.msra.mxu0 %v2596_v46  ;;  %1773 = vmatprep.subr.bf16.mxu1 %v2601_v47  ;;  %v2688_v45 = vld [vmem:[%s3664_s1 + $0x6f4] ss:$8 sps:$4 sm:$0xff]   ;;  %v2683_v46 = vld [vmem:[%s3664_s1 + $0x2f0] ss:$8 sps:$4 sm:$0xff]  }
  0x85   :  { %1937 = vmatprep.subr.bf16.mxu0 %v2604_v27  ;;  %1803 = vmatprep.mubr.bf16.mxu1 %v3062_v34  ;;  %v2686_v47 = vld [vmem:[%s3664_s1 + $0x6f0] ss:$8 sps:$4 sm:$0xff]   ;;  %v2691_v27 = vld [vmem:[%s3664_s1 + $0x304] ss:$8 sps:$4 sm:$0xff]  }
  0x86   :  { %1967 = vmatprep.mubr.bf16.mxu0 %v3065_v35 }
  0x87   :  { %1774 = vmatpush1.bf16.msra.mxu1 %v2599_v28  ;;  %v2694_v28 = vld [vmem:[%s3664_s1 + $0x704] ss:$8 sps:$4 sm:$0xff]  }
  0x88   :  { %1938 = vmatpush1.bf16.msra.mxu0 %v2602_v48  ;;  %1775 = vmatprep.subr.bf16.mxu1 %v2607_v50  ;;  %v2689_v48 = vld [vmem:[%s3664_s1 + $0x300] ss:$8 sps:$4 sm:$0xff]  }
  0x89   :  { %1939 = vmatprep.subr.bf16.mxu0 %v2610_v51  ;;  %v2692_v50 = vld [vmem:[%s3664_s1 + $0x700] ss:$8 sps:$4 sm:$0xff]   ;;  %v2697_v51 = vld [vmem:[%s3664_s1 + $0x314] ss:$8 sps:$4 sm:$0xff]  }
  0x8b   :  { %1776 = vmatpush1.bf16.msra.mxu1 %v2605_v52  ;;  %v2700_v52 = vld [vmem:[%s3664_s1 + $0x714] ss:$8 sps:$4 sm:$0xff]  }
  0x8c   :  { %1940 = vmatpush1.bf16.msra.mxu0 %v2608_v53  ;;  %1777 = vmatprep.subr.bf16.mxu1 %v2613_v54  ;;  %v343_v53 = vcombine.high %v3062_v34, %v3062_v34  ;;  %v392_v54 = vcombine.high %v3065_v35, %v3065_v35  ;;  %v2703_v34 = vld [vmem:[%s3664_s1 + $0x324] ss:$8 sps:$4 sm:$0xff]  }
  0x8d   :  { %1941 = vmatprep.subr.bf16.mxu0 %v2616_v55  ;;  %v2695_v55 = vld [vmem:[%s3664_s1 + $0x310] ss:$8 sps:$4 sm:$0xff]   ;;  %v2706_v35 = vld [vmem:[%s3664_s1 + $0x724] ss:$8 sps:$4 sm:$0xff]  }
  0x8f   :  { %1778 = vmatpush1.bf16.msra.mxu1 %v2611_v56  ;;  %v2698_v56 = vld [vmem:[%s3664_s1 + $0x710] ss:$8 sps:$4 sm:$0xff]  }
  0x90   :  { %1942 = vmatpush1.bf16.msra.mxu0 %v2614_v57  ;;  %1779 = vmatprep.subr.bf16.mxu1 %v2619_v58  ;;  %v2701_v57 = vld [vmem:[%s3664_s1 + $0x320] ss:$8 sps:$4 sm:$0xff]  }
  0x91   :  { %1943 = vmatprep.subr.bf16.mxu0 %v2622_v59  ;;  %v2704_v58 = vld [vmem:[%s3664_s1 + $0x720] ss:$8 sps:$4 sm:$0xff]   ;;  %v2709_v59 = vld [vmem:[%s3664_s1 + $0x334] ss:$8 sps:$4 sm:$0xff]  }
  0x93   :  { %1780 = vmatpush1.bf16.msra.mxu1 %v2617_v60  ;;  %v2712_v60 = vld [vmem:[%s3664_s1 + $0x734] ss:$8 sps:$4 sm:$0xff]  }
  0x94   :  { %1944 = vmatpush1.bf16.msra.mxu0 %v2620_v61  ;;  %1781 = vmatprep.subr.bf16.mxu1 %v2625_v62  ;;  %v2707_v61 = vld [vmem:[%s3664_s1 + $0x330] ss:$8 sps:$4 sm:$0xff]  }
  0x95   :  { %1945 = vmatprep.subr.bf16.mxu0 %v2628_v63  ;;  %v2710_v62 = vld [vmem:[%s3664_s1 + $0x730] ss:$8 sps:$4 sm:$0xff]   ;;  %v2715_v63 = vld [vmem:[%s3664_s1 + $0x344] ss:$8 sps:$4 sm:$0xff]  }
  0x97   :  { %1782 = vmatpush1.bf16.msra.mxu1 %v2623_v0  ;;  %v2718_v0 = vld [vmem:[%s3664_s1 + $0x744] ss:$8 sps:$4 sm:$0xff]  }
  0x98   :  { %1946 = vmatpush1.bf16.msra.mxu0 %v2626_v1  ;;  %1783 = vmatprep.subr.bf16.mxu1 %v2631_v2  ;;  %v2713_v1 = vld [vmem:[%s3664_s1 + $0x340] ss:$8 sps:$4 sm:$0xff]  }
  0x99   :  { %1947 = vmatprep.subr.bf16.mxu0 %v2634_v3  ;;  %v2716_v2 = vld [vmem:[%s3664_s1 + $0x740] ss:$8 sps:$4 sm:$0xff]   ;;  %v2721_v3 = vld [vmem:[%s3664_s1 + $0x354] ss:$8 sps:$4 sm:$0xff]  }
  0x9b   :  { %1784 = vmatpush1.bf16.msra.mxu1 %v2629_v4  ;;  %v2724_v4 = vld [vmem:[%s3664_s1 + $0x754] ss:$8 sps:$4 sm:$0xff]  }
  0x9c   :  { %1948 = vmatpush1.bf16.msra.mxu0 %v2632_v5  ;;  %1785 = vmatprep.subr.bf16.mxu1 %v2637_v6  ;;  %v2719_v5 = vld [vmem:[%s3664_s1 + $0x350] ss:$8 sps:$4 sm:$0xff]  }
  0x9d   :  { %1949 = vmatprep.subr.bf16.mxu0 %v2640_v7  ;;  %v2722_v6 = vld [vmem:[%s3664_s1 + $0x750] ss:$8 sps:$4 sm:$0xff]   ;;  %v2727_v7 = vld [vmem:[%s3664_s1 + $0x364] ss:$8 sps:$4 sm:$0xff]  }
  0x9f   :  { %1786 = vmatpush1.bf16.msra.mxu1 %v2635_v8  ;;  %v2730_v8 = vld [vmem:[%s3664_s1 + $0x764] ss:$8 sps:$4 sm:$0xff]  }
  0xa0   :  { %1950 = vmatpush1.bf16.msra.mxu0 %v2638_v9  ;;  %1787 = vmatprep.subr.bf16.mxu1 %v2643_v10  ;;  %v2725_v9 = vld [vmem:[%s3664_s1 + $0x360] ss:$8 sps:$4 sm:$0xff]  }
  0xa1   :  { %1951 = vmatprep.subr.bf16.mxu0 %v2646_v11  ;;  %v2728_v10 = vld [vmem:[%s3664_s1 + $0x760] ss:$8 sps:$4 sm:$0xff]   ;;  %v2733_v11 = vld [vmem:[%s3664_s1 + $0x374] ss:$8 sps:$4 sm:$0xff]  }
  0xa3   :  { %1788 = vmatpush1.bf16.msra.mxu1 %v2641_v12  ;;  %v2736_v12 = vld [vmem:[%s3664_s1 + $0x774] ss:$8 sps:$4 sm:$0xff]  }
  0xa4   :  { %1952 = vmatpush1.bf16.msra.mxu0 %v2644_v13  ;;  %1789 = vmatprep.subr.bf16.mxu1 %v2649_v14  ;;  %v2731_v13 = vld [vmem:[%s3664_s1 + $0x370] ss:$8 sps:$4 sm:$0xff]  }
  0xa5   :  { %1953 = vmatprep.subr.bf16.mxu0 %v2652_v15  ;;  %v2734_v14 = vld [vmem:[%s3664_s1 + $0x770] ss:$8 sps:$4 sm:$0xff]   ;;  %v2739_v15 = vld [vmem:[%s3664_s1 + $0x384] ss:$8 sps:$4 sm:$0xff]  }
  0xa7   :  { %1790 = vmatpush1.bf16.msra.mxu1 %v2647_v16  ;;  %v2742_v16 = vld [vmem:[%s3664_s1 + $0x784] ss:$8 sps:$4 sm:$0xff]  }
  0xa8   :  { %1954 = vmatpush1.bf16.msra.mxu0 %v2650_v17  ;;  %1791 = vmatprep.subr.bf16.mxu1 %v2655_v18  ;;  %v2737_v17 = vld [vmem:[%s3664_s1 + $0x380] ss:$8 sps:$4 sm:$0xff]  }
  0xa9   :  { %1955 = vmatprep.subr.bf16.mxu0 %v2658_v19  ;;  %v2740_v18 = vld [vmem:[%s3664_s1 + $0x780] ss:$8 sps:$4 sm:$0xff]   ;;  %v2745_v19 = vld [vmem:[%s3664_s1 + $0x394] ss:$8 sps:$4 sm:$0xff]  }
  0xab   :  { %1792 = vmatpush1.bf16.msra.mxu1 %v2653_v20  ;;  %v2748_v20 = vld [vmem:[%s3664_s1 + $0x794] ss:$8 sps:$4 sm:$0xff]  }
  0xac   :  { %1956 = vmatpush1.bf16.msra.mxu0 %v2656_v21  ;;  %1793 = vmatprep.subr.bf16.mxu1 %v2661_v22  ;;  %v2743_v21 = vld [vmem:[%s3664_s1 + $0x390] ss:$8 sps:$4 sm:$0xff]  }
  0xad   :  { %1957 = vmatprep.subr.bf16.mxu0 %v2664_v23  ;;  %v2746_v22 = vld [vmem:[%s3664_s1 + $0x790] ss:$8 sps:$4 sm:$0xff]   ;;  %v2751_v23 = vld [vmem:[%s3664_s1 + $0x3a4] ss:$8 sps:$4 sm:$0xff]  }
  0xaf   :  { %1794 = vmatpush1.bf16.msra.mxu1 %v2659_v24  ;;  %v2754_v24 = vld [vmem:[%s3664_s1 + $0x7a4] ss:$8 sps:$4 sm:$0xff]  }
  0xb0   :  { %1958 = vmatpush1.bf16.msra.mxu0 %v2662_v25  ;;  %1795 = vmatprep.subr.bf16.mxu1 %v2667_v26  ;;  %v2749_v25 = vld [vmem:[%s3664_s1 + $0x3a0] ss:$8 sps:$4 sm:$0xff]  }
  0xb1   :  { %1959 = vmatprep.subr.bf16.mxu0 %v2670_v29  ;;  %v2752_v26 = vld [vmem:[%s3664_s1 + $0x7a0] ss:$8 sps:$4 sm:$0xff]   ;;  %v2757_v29 = vld [vmem:[%s3664_s1 + $0x3b4] ss:$8 sps:$4 sm:$0xff]  }
  0xb3   :  { %1796 = vmatpush1.bf16.msra.mxu1 %v2665_v30  ;;  %v2760_v30 = vld [vmem:[%s3664_s1 + $0x7b4] ss:$8 sps:$4 sm:$0xff]  }
  0xb4   :  { %1960 = vmatpush1.bf16.msra.mxu0 %v2668_v31  ;;  %1797 = vmatprep.subr.bf16.mxu1 %v2673_v32  ;;  %v2755_v31 = vld [vmem:[%s3664_s1 + $0x3b0] ss:$8 sps:$4 sm:$0xff]  }
  0xb5   :  { %1961 = vmatprep.subr.bf16.mxu0 %v2676_v33  ;;  %v2758_v32 = vld [vmem:[%s3664_s1 + $0x7b0] ss:$8 sps:$4 sm:$0xff]   ;;  %v2763_v33 = vld [vmem:[%s3664_s1 + $0x3c4] ss:$8 sps:$4 sm:$0xff]  }
  0xb7   :  { %1798 = vmatpush1.bf16.msra.mxu1 %v2671_v37  ;;  %v2766_v37 = vld [vmem:[%s3664_s1 + $0x7c4] ss:$8 sps:$4 sm:$0xff]  }
  0xb8   :  { %1962 = vmatpush1.bf16.msra.mxu0 %v2674_v38  ;;  %1799 = vmatprep.subr.bf16.mxu1 %v2679_v40  ;;  %v2761_v38 = vld [vmem:[%s3664_s1 + $0x3c0] ss:$8 sps:$4 sm:$0xff]  }
  0xb9   :  { %1963 = vmatprep.subr.bf16.mxu0 %v2682_v41  ;;  %v2764_v40 = vld [vmem:[%s3664_s1 + $0x7c0] ss:$8 sps:$4 sm:$0xff]   ;;  %v2769_v41 = vld [vmem:[%s3664_s1 + $0x3d4] ss:$8 sps:$4 sm:$0xff]  }
  0xbb   :  { %1800 = vmatpush1.bf16.msra.mxu1 %v2677_v42  ;;  %v2772_v42 = vld [vmem:[%s3664_s1 + $0x7d4] ss:$8 sps:$4 sm:$0xff]  }
  0xbc   :  { %1964 = vmatpush1.bf16.msra.mxu0 %v2680_v43  ;;  %1801 = vmatprep.subr.bf16.mxu1 %v2685_v44  ;;  %v2767_v43 = vld [vmem:[%s3664_s1 + $0x3d0] ss:$8 sps:$4 sm:$0xff]  }
  0xbd   :  { %1965 = vmatprep.subr.bf16.mxu0 %v2688_v45  ;;  %v2770_v44 = vld [vmem:[%s3664_s1 + $0x7d0] ss:$8 sps:$4 sm:$0xff]   ;;  %v2775_v45 = vld [vmem:[%s3664_s1 + $0x3e4] ss:$8 sps:$4 sm:$0xff]  }
  0xbf   :  { %1802 = vmatpush1.bf16.msra.mxu1 %v2683_v46  ;;  %v2778_v46 = vld [vmem:[%s3664_s1 + $0x7e4] ss:$8 sps:$4 sm:$0xff]  }
  0xc0   :  { %1966 = vmatpush1.bf16.msra.mxu0 %v2686_v47  ;;  %1812 = vmatprep.subr.bf16.mxu1 %v2691_v27  ;;  %v2773_v47 = vld [vmem:[%s3664_s1 + $0x3e0] ss:$8 sps:$4 sm:$0xff]  }
  0xc1   :  { %1976 = vmatprep.subr.bf16.mxu0 %v2694_v28  ;;  %v2776_v27 = vld [vmem:[%s3664_s1 + $0x7e0] ss:$8 sps:$4 sm:$0xff]   ;;  %v2781_v28 = vld [vmem:[%s3664_s1 + $0x3f4] ss:$8 sps:$4 sm:$0xff]  }
  0xc2   :  { %1804 = vmatmul.mubr.bf16.vlgmr.msra.gmra.mrb[0].mxu1 %v3068_v36 }
  0xc3   :  { %1968 = vmatmul.mubr.bf16.vlgmr.msra.gmra.mrb[0].mxu0 %v3071_v39  ;;  %1813 = vmatpush1.bf16.msra.mxu1 %v2689_v48  ;;  %v2784_v48 = vld [vmem:[%s3664_s1 + $0x7f4] ss:$8 sps:$4 sm:$0xff]  }
  0xc4   :  { %1977 = vmatpush1.bf16.msra.mxu0 %v2692_v50  ;;  %1814 = vmatprep.subr.bf16.mxu1 %v2697_v51  ;;  %v2779_v50 = vld [vmem:[%s3664_s1 + $0x3f0] ss:$8 sps:$4 sm:$0xff]  }
  0xc5   :  { %1978 = vmatprep.subr.bf16.mxu0 %v2700_v52  ;;  %1844 = vmatprep.mubr.bf16.mxu1 %v343_v53  ;;  %v2782_v51 = vld [vmem:[%s3664_s1 + $0x7f0] ss:$8 sps:$4 sm:$0xff]   ;;  %v341_v52 = vcombine.high %v3068_v36, %v3068_v36  ;;  %v390_v53 = vcombine.high %v3071_v39, %v3071_v39 }
  0xc6   :  { %2008 = vmatprep.mubr.bf16.mxu0 %v392_v54  ;;  %v2790_v54 = vmov 0.0  }
  0xc7   :  { %1815 = vmatpush1.bf16.msra.mxu1 %v2695_v55  ;;  %26 = vst [vmem:[#allocation2] sm:$0xf] %v2790_v54  ;;  %v10_v55 = vstv %s3666_s4 }
  0xc8   :  { %1979 = vmatpush1.bf16.msra.mxu0 %v2698_v56  ;;  %1816 = vmatprep.subr.bf16.mxu1 %v2703_v34  ;;  %11 = vst [vmem:[#allocation3] sm:$0x1] %v10_v55  ;;  %v2791_v56 = vmov 1983009808  }
  0xc9   :  { %1980 = vmatprep.subr.bf16.mxu0 %v2706_v35  ;;  %v2021_v34 = vunpack.c.l.s4 %v2791_v56 }
  0xcb   :  { %1817 = vmatpush1.bf16.msra.mxu1 %v2701_v57  ;;  %v2022_v35 = vunpack.c.0.s8 %v2021_v34 }
  0xcc   :  { %1981 = vmatpush1.bf16.msra.mxu0 %v2704_v58  ;;  %1818 = vmatprep.subr.bf16.mxu1 %v2709_v59 }
  0xcd   :  { %1982 = vmatprep.subr.bf16.mxu0 %v2712_v60 }
  0xcf   :  { %1819 = vmatpush1.bf16.msra.mxu1 %v2707_v61  ;;  %v2025_v61 = vsub.s32 %v2022_v35, %v2957_v49 }
  0xd0   :  { %1983 = vmatpush1.bf16.msra.mxu0 %v2710_v62  ;;  %1820 = vmatprep.subr.bf16.mxu1 %v2715_v63 }
  0xd1   :  { %1984 = vmatprep.subr.bf16.mxu0 %v2718_v0  ;;  %v2038_v0 = vsub.s32 0, %v2957_v49 }
  0xd3   :  { %1821 = vmatpush1.bf16.msra.mxu1 %v2713_v1  ;;  %v2042_v1 = vsub.s32 1, %v2957_v49 }
  0xd4   :  { %1985 = vmatpush1.bf16.msra.mxu0 %v2716_v2  ;;  %1822 = vmatprep.subr.bf16.mxu1 %v2721_v3 }
  0xd5   :  { %1986 = vmatprep.subr.bf16.mxu0 %v2724_v4  ;;  %v2034_v4 = vld [vmem:[%s3667_s2] sm:$0x3] }
  0xd7   :  { %1823 = vmatpush1.bf16.msra.mxu1 %v2719_v5 }
  0xd8   :  { %1987 = vmatpush1.bf16.msra.mxu0 %v2722_v6  ;;  %1824 = vmatprep.subr.bf16.mxu1 %v2727_v7  ;;  %v36_v6 = vld [vmem:[#allocation2] sm:$0xf] }
  0xd9   :  { %1988 = vmatprep.subr.bf16.mxu0 %v2730_v8  ;;  %v2039_v8 = vrot.slane %v2034_v4, %v2038_v0 }
  0xdb   :  { %1825 = vmatpush1.bf16.msra.mxu1 %v2725_v9  ;;  %v2043_v9 = vrot.slane %v2034_v4, %v2042_v1 }
  0xdc   :  { %1989 = vmatpush1.bf16.msra.mxu0 %v2728_v10  ;;  %1826 = vmatprep.subr.bf16.mxu1 %v2733_v11  ;;  %v2055_v10 = vld [vmem:[%s3668_s3] sm:$0x3] }
  0xdd   :  { %1990 = vmatprep.subr.bf16.mxu0 %v2736_v12  ;;  %v2044_v12 = vcombine.low %v2039_v8, %v2043_v9  ;;  %v2064_v49 = vrot.slane %v2055_v10, %v2042_v1 }
  0xdf   :  { %1827 = vmatpush1.bf16.msra.mxu1 %v2731_v13  ;;  %v2060_v13 = vrot.slane %v2055_v10, %v2038_v0 }
  0xe0   :  { %1991 = vmatpush1.bf16.msra.mxu0 %v2734_v14  ;;  %1828 = vmatprep.subr.bf16.mxu1 %v2739_v15  ;;  %v2051_v14 = vrot.slane %v2044_v12, %v2025_v61 }
  0xe1   :  { %1992 = vmatprep.subr.bf16.mxu0 %v2742_v16  ;;  %v2065_v15 = vcombine.low %v2060_v13, %v2064_v49 }
  0xe3   :  { %1829 = vmatpush1.bf16.msra.mxu1 %v2737_v17 }
  0xe4   :  { %1993 = vmatpush1.bf16.msra.mxu0 %v2740_v18  ;;  %1830 = vmatprep.subr.bf16.mxu1 %v2745_v19  ;;  %v2072_v18 = vrot.slane %v2065_v15, %v2025_v61 }
  0xe5   :  { %1994 = vmatprep.subr.bf16.mxu0 %v2748_v20 }
  0xe7   :  { %1831 = vmatpush1.bf16.msra.mxu1 %v2743_v21 }
  0xe8   :  { %1995 = vmatpush1.bf16.msra.mxu0 %v2746_v22  ;;  %1832 = vmatprep.subr.bf16.mxu1 %v2751_v23 }
  0xe9   :  { %1996 = vmatprep.subr.bf16.mxu0 %v2754_v24 }
  0xeb   :  { %1833 = vmatpush1.bf16.msra.mxu1 %v2749_v25 }
  0xec   :  { %1997 = vmatpush1.bf16.msra.mxu0 %v2752_v26  ;;  %1834 = vmatprep.subr.bf16.mxu1 %v2757_v29  ;;  %v2370_v26 = vld [vmem:[#allocation3] ss:$0 sm:$0xff] }
  0xed   :  { %1998 = vmatprep.subr.bf16.mxu0 %v2760_v30 }
  0xef   :  { %1835 = vmatpush1.bf16.msra.mxu1 %v2755_v31 }
  0xf0   :  { %1999 = vmatpush1.bf16.msra.mxu0 %v2758_v32  ;;  %1836 = vmatprep.subr.bf16.mxu1 %v2763_v33 }
  0xf1   :  { %2000 = vmatprep.subr.bf16.mxu0 %v2766_v37 }
  0xf3   :  { %1837 = vmatpush1.bf16.msra.mxu1 %v2761_v38 }
  0xf4   :  { %2001 = vmatpush1.bf16.msra.mxu0 %v2764_v40  ;;  %1838 = vmatprep.subr.bf16.mxu1 %v2769_v41 }
  0xf5   :  { %2002 = vmatprep.subr.bf16.mxu0 %v2772_v42 }
  0xf7   :  { %1839 = vmatpush1.bf16.msra.mxu1 %v2767_v43 }
  0xf8   :  { %2003 = vmatpush1.bf16.msra.mxu0 %v2770_v44  ;;  %1840 = vmatprep.subr.bf16.mxu1 %v2775_v45 }
  0xf9   :  { %2004 = vmatprep.subr.bf16.mxu0 %v2778_v46 }
  0xfb   :  { %1841 = vmatpush1.bf16.msra.mxu1 %v2773_v47 }
  0xfc   :  { %2005 = vmatpush1.bf16.msra.mxu0 %v2776_v27  ;;  %1842 = vmatprep.subr.bf16.mxu1 %v2781_v28 }
  0xfd   :  { %2006 = vmatprep.subr.bf16.mxu0 %v2784_v48 }
  0xff   :  { %1843 = vmatpush1.bf16.msra.mxu1 %v2779_v50 }
 0x100   :  { %2007 = vmatpush1.bf16.msra.mxu0 %v2782_v51 }
 0x102   :  { %1845 = vmatmul.mubr.bf16.vlgmr.msra.gmra.mrb[0].mxu1 %v341_v52 }
 0x103   :  { %2009 = vmatmul.mubr.bf16.vlgmr.msra.gmra.mrb[0].mxu0 %v390_v53 }
 0x1d5   :  { %v1846_v57 = vpop.f32.mrb[0].mxu1 }
 0x1d6   :  { %v2010_v58 = vpop.f32.mrb[0].mxu0  ;;  %v1848_v59 = vpop.f32.mrb[1].mxu1 }
 0x1d7   :  { %v2372_v36 = vadd.f32 %v2010_v58, %v1846_v57  ;;  %v2012_v60 = vpop.f32.mrb[1].mxu0  ;;  %v1850_v62 = vpop.f32.mrb[2].mxu1 }
 0x1d8   :  { %v2373_v39 = vadd.f32 %v2012_v60, %v1848_v59  ;;  %v2014_v63 = vpop.f32.mrb[2].mxu0  ;;  %v1851_v2 = vpop.f32.mrb[3].mxu1 }
 0x1d9   :  { %v2015_v3 = vpop.f32.mrb[3].mxu0 }
 0x1da   :  { %v2019_v5 = vcombine.low %v2372_v36, %v2373_v39 }
 0x1dc   :  { %v2026_v7 = vrot.slane %v2019_v5, %v2025_v61 }
 0x1de   :  { %v2028_v11 = vadd.f32 %v2026_v7, %v36_v6 }
 0x1e0   :  { %2029 = vst [vmem:[#allocation2] sm:$0xf] %v2028_v11 }
 0x1e7   :  { %v2033_v16 = vld [vmem:[#allocation2] sm:$0xf] }
 0x1e8   :  { %v2053_v17 = vadd.f32 %v2051_v14, %v2033_v16 }
 0x1ea   :  { %v2054_v19 = vmax.f32 %v2053_v17, 0.0 }
 0x1ec   :  { %v2074_v20 = vmul.f32 %v2072_v18, %v2054_v19 }
 0x1ee   :  { %v2082_v21 = vrot.slane %v2074_v20, %v2025_v61 }
 0x1f0   :  { %v2083_v22 = vcombine.high %v2082_v21, %v2082_v21  ;;  %v2087_v23 = vsel %vm2086_vm0, %v2082_v21, 0.0 }
 0x1f2   :  { %v2088_v24 = vsel %vm2086_vm0, %v2083_v22, 0.0 }
 0x1f3   :  { %v2089_v25 = vadd.f32 %v2088_v24, %v2087_v23 }
 0x1f5   :  { %2090 = vadd.xlane.f32.xlu0 %v2089_v25 }
 0x282   :  { %v2091_v29 = vpop.xlane.xlu0 %2090 }
 0x283   :  { %v2099_v30 = vadd.f32 %v2370_v26, %v2091_v29 }
 0x285   :  { %v2371_v31 = vmul.f32 -1.442695, %v2099_v30 }
 0x287   :  { %2785 = vpow2.f32 %v2371_v31 }
 0x291   :  { %v2786_v32 = vpop.eup %2785 }
 0x292   :  { %v2103_v33 = vadd.f32 1.0, %v2786_v32 }
 0x294   :  { %2787 = vrcp.f32 %v2103_v33 }
 0x29e   :  { %v2788_v37 = vpop.eup %2787 }
 0x29f   :  { %2107 = vst.msk [vmem:[%s3669_s5] sm:$0x3] %vm2106_vm1, %v2788_v37 }

</bundles_post_ra>
